<compile_context>
chip_gen: v6e
topology: v6e:2x2x1
jax: 0.10.0
libtpu: 0.0.40
codegen_flags: <defaults>
</compile_context>

<pallas_src>
import functools
import math

import jax
import jax.numpy as jnp
from jax import lax
from jax.experimental import pallas as pl
from jax.experimental.pallas import tpu as pltpu


# ----------------------------------------------------------------------------
# Fused kernel: QKV projection + masked online-softmax attention + fc_out
# ----------------------------------------------------------------------------
def _fused_attn_kernel(q_ref, k_ref, v_ref, mb_ref,
                       wq_ref, wk_ref, wv_ref, wo_ref, b_ref,
                       o_ref,
                       q_scr, m_scr, l_scr, acc_scr,
                       *, heads, head_dim, mxu_dtype, approx_recip):
    f32 = jnp.float32
    kv = pl.program_id(1)
    n_kv = pl.num_programs(1)

    B, Lq, E = q_ref.shape          # batch block, query len, embed size
    Tk = k_ref.shape[1]             # KV tile length
    D = head_dim
    BH = B * heads

    def project(x, w_ref):
        # x: (B, L, E) -> head-batched (BH, L, D): one relayout + one MXU matmul
        # (shared per-head weight => plain (rows, D) @ (D, D), no batched dot).
        L = x.shape[1]
        xh = x.reshape(B, L, heads, D).transpose(0, 2, 1, 3).reshape(BH * L, D)
        y = jnp.dot(xh, w_ref[...], preferred_element_type=f32)
        return y.reshape(BH, L, D).astype(mxu_dtype)

    # ---- first KV step of each batch block: init accumulators, project Q once
    @pl.when(kv == 0)
    def _():
        m_scr[...] = jnp.full(m_scr.shape, -jnp.inf, dtype=m_scr.dtype)
        l_scr[...] = jnp.zeros(l_scr.shape, dtype=l_scr.dtype)
        acc_scr[...] = jnp.zeros(acc_scr.shape, dtype=acc_scr.dtype)
        # softmax scale 1/sqrt(E) is already folded into wq.
        q_scr[...] = project(q_ref[...].astype(mxu_dtype), wq_ref)

    # ---- per-KV-tile projections (each K/V element projected exactly once)
    kp = project(k_ref[...].astype(mxu_dtype), wk_ref)     # (BH, Tk, D)
    vp = project(v_ref[...].astype(mxu_dtype), wv_ref)     # (BH, Tk, D)

    # scores: head-batched q @ k^T, contracting D of both operands
    # (MXU consumes the transposed RHS natively — no materialized transpose).
    s = lax.dot_general(q_scr[...], kp, (((2,), (2,)), ((0,), (0,))),
                        preferred_element_type=f32)         # (BH, Lq, Tk)

    # additive mask bias: stored transposed (B, Tk, Lq); broadcast over heads.
    mb = jnp.transpose(mb_ref[...].astype(f32), (0, 2, 1))  # (B, Lq, Tk)
    s = (s.reshape(B, heads, Lq, Tk) + mb[:, None, :, :]).reshape(BH, Lq, Tk)

    # ---- online softmax (f32 throughout)
    m_prev = m_scr[...]                                      # (BH, Lq, 1)
    m_new = jnp.maximum(m_prev, jnp.max(s, axis=-1, keepdims=True))
    alpha = jnp.exp(m_prev - m_new)
    p = jnp.exp(s - m_new)
    l_scr[...] = alpha * l_scr[...] + jnp.sum(p, axis=-1, keepdims=True)
    acc_scr[...] = alpha * acc_scr[...] + lax.dot_general(
        p.astype(mxu_dtype), vp, (((2,), (1,)), ((0,), (0,))),
        preferred_element_type=f32)                          # (BH, Lq, D)
    m_scr[...] = m_new

    # ---- last KV step: normalize, re-assemble heads, single fc_out matmul
    @pl.when(kv == n_kv - 1)
    def _():
        inv_l = pl.reciprocal(l_scr[...], approx=approx_recip)
        ctx = acc_scr[...] * inv_l                           # (BH, Lq, D) f32
        ctx = (ctx.reshape(B, heads, Lq, D).transpose(0, 2, 1, 3)
               .reshape(B * Lq, E)).astype(mxu_dtype)        # concat heads
        out = jnp.dot(ctx, wo_ref[...], preferred_element_type=f32)  # (B*Lq, E)
        out = out + b_ref[...].astype(f32)
        o_ref[...] = out.reshape(B, Lq, E).astype(o_ref.dtype)


# ----------------------------------------------------------------------------
# Wrapper
# ----------------------------------------------------------------------------
def self_attention_forward(values, keys, query, mask, params, heads, *,
                           mxu_dtype=jnp.bfloat16, out_dtype=jnp.float32,
                           batch_block=None, kv_block=None, approx_recip=None):
    """values/keys/query: (N, L, E) f32; mask: (N, 1, Lq, Lk) int (or None)."""
    N, Lv, E = values.shape
    Lk = keys.shape[1]
    Lq = query.shape[1]
    assert Lv == Lk, "values/keys sequence lengths must match"
    assert E % heads == 0
    D = E // heads
    f32 = jnp.float32

    if approx_recip is None:
        approx_recip = (mxu_dtype == jnp.bfloat16)   # production: EUP approx recip

    # ---- tile selection ------------------------------------------------------
    if batch_block is None:
        # a few hundred query rows per grid step, but keep >=2 parallel steps
        # when N allows (v7x: 2 TensorCores share the "parallel" grid axis).
        divs = [d for d in range(1, N + 1) if N % d == 0 and d * Lq <= 1024]
        pref = [d for d in divs if N // d >= 2]
        batch_block = max(pref) if pref else (max(divs) if divs else 1)
    assert N % batch_block == 0

    if kv_block is None:
        kv_block = Lk if Lk <= 512 else 512
    if Lk % kv_block or (kv_block % 8 and kv_block != Lk):
        kv_block = Lk                                  # fall back: single KV step
    assert Lk % kv_block == 0

    # ---- one-time host-side weight prep (3*D^2 + E^2 + E elements) ----------
    # nn.Linear weight is (out, in); transpose so the kernel does x @ W.
    scale = jnp.float32(1.0 / math.sqrt(E))
    wq_t = (params["wq"].T * scale).astype(mxu_dtype)   # (D, D), scale folded in
    wk_t = params["wk"].T.astype(mxu_dtype)             # (D, D)
    wv_t = params["wv"].T.astype(mxu_dtype)             # (D, D)
    wo_t = params["w_out"].T.astype(mxu_dtype)          # (E, E)
    b_out = params["b_out"].reshape(1, E).astype(f32)

    # additive mask bias, stored transposed (N, Lk, Lq) bf16 so the KV axis is
    # the 8-divisible second-to-last BlockSpec dim. -1e20 is representable in
    # bf16 (same exponent range as f32) — do not "fix" this to f16.
    if mask is None:
        mask_bias_t = jnp.zeros((N, Lk, Lq), dtype=jnp.bfloat16)
    else:
        mb = jnp.where(mask == 0, jnp.float32(-1e20), jnp.float32(0.0))
        mask_bias_t = jnp.transpose(mb.reshape(N, Lq, Lk), (0, 2, 1)).astype(jnp.bfloat16)

    qx = query.astype(mxu_dtype)
    kx = keys.astype(mxu_dtype)
    vx = values.astype(mxu_dtype)

    grid = (N // batch_block, Lk // kv_block)
    BH = batch_block * heads

    kernel = functools.partial(_fused_attn_kernel, heads=heads, head_dim=D,
                               mxu_dtype=mxu_dtype, approx_recip=approx_recip)

    out = pl.pallas_call(
        kernel,
        out_shape=jax.ShapeDtypeStruct((N, Lq, E), out_dtype),
        grid_spec=pltpu.PrefetchScalarGridSpec(
            num_scalar_prefetch=0,
            grid=grid,
            in_specs=[
                pl.BlockSpec((batch_block, Lq, E), lambda b, k: (b, 0, 0)),        # q (resident over KV)
                pl.BlockSpec((batch_block, kv_block, E), lambda b, k: (b, k, 0)),  # k tile
                pl.BlockSpec((batch_block, kv_block, E), lambda b, k: (b, k, 0)),  # v tile
                pl.BlockSpec((batch_block, kv_block, Lq), lambda b, k: (b, k, 0)), # mask bias^T tile
                pl.BlockSpec((D, D), lambda b, k: (0, 0)),                          # wq (resident)
                pl.BlockSpec((D, D), lambda b, k: (0, 0)),                          # wk (resident)
                pl.BlockSpec((D, D), lambda b, k: (0, 0)),                          # wv (resident)
                pl.BlockSpec((E, E), lambda b, k: (0, 0)),                          # w_out^T (resident)
                pl.BlockSpec((1, E), lambda b, k: (0, 0)),                          # bias (resident)
            ],
            out_specs=pl.BlockSpec((batch_block, Lq, E), lambda b, k: (b, 0, 0)),
            scratch_shapes=[
                pltpu.VMEM((BH, Lq, D), mxu_dtype),   # projected Q, cached across KV steps
                pltpu.VMEM((BH, Lq, 1), f32),         # online-softmax running max
                pltpu.VMEM((BH, Lq, 1), f32),         # online-softmax running sum
                pltpu.VMEM((BH, Lq, D), f32),         # context accumulator
            ],
        ),
        compiler_params=pltpu.CompilerParams(
            dimension_semantics=("parallel", "arbitrary")),
        # TODO(synk): at production sizes set vmem_limit_bytes per generation
        # (v7x: 64 MiB/TC) and consider pl.Buffered(3) on the K/V specs for v5e.
    )(qx, kx, vx, mask_bias_t, wq_t, wk_t, wv_t, wo_t, b_out)

    return out


# ----------------------------------------------------------------------------
# Pure-JAX reference (mirrors the PyTorch forward exactly)
# ----------------------------------------------------------------------------
def ref_forward(values, keys, query, mask, p, heads):
    N = query.shape[0]
    Lv, Lk, Lq = values.shape[1], keys.shape[1], query.shape[1]
    E = values.shape[2]
    D = E // heads
    v = values.reshape(N, Lv, heads, D) @ p["wv"].T
    k = keys.reshape(N, Lk, heads, D) @ p["wk"].T
    q = query.reshape(N, Lq, heads, D) @ p["wq"].T
    ene = jnp.einsum('nqhd,nkhd->nhqk', q, k)
    if mask is not None:
        ene = jnp.where(mask == 0, jnp.float32(-1e20), ene)
    attn = jax.nn.softmax(ene / jnp.float32(math.sqrt(E)), axis=3)
    out = jnp.einsum('nhqk,nkhd->nqhd', attn, v).reshape(N, Lq, E)
    return out @ p["w_out"].T + p["b_out"].reshape(1, 1, E)


# ----------------------------------------------------------------------------
if __name__ == "__main__":
    embed_size, heads = 32, 4
    head_dim = embed_size // heads
    N, seq = 4, 16

    key = jax.random.PRNGKey(0)
    kv_, kk_, kq_, km_, k1, k2, k3, k4, k5 = jax.random.split(key, 9)

    values = jax.random.normal(kv_, (N, seq, embed_size), dtype=jnp.float32)
    keys_in = jax.random.normal(kk_, (N, seq, embed_size), dtype=jnp.float32)
    query = jax.random.normal(kq_, (N, seq, embed_size), dtype=jnp.float32)
    mask = (jax.random.uniform(km_, (N, 1, seq, seq)) > 0.2).astype(jnp.int32)

    # Deterministic parameter init (nn.Linear weight shape is (out, in)).
    s_h = 1.0 / math.sqrt(head_dim)
    s_e = 1.0 / math.sqrt(embed_size)
    params = {
        "wv": jax.random.uniform(k1, (head_dim, head_dim), jnp.float32, -s_h, s_h),
        "wk": jax.random.uniform(k2, (head_dim, head_dim), jnp.float32, -s_h, s_h),
        "wq": jax.random.uniform(k3, (head_dim, head_dim), jnp.float32, -s_h, s_h),
        "w_out": jax.random.uniform(k4, (embed_size, embed_size), jnp.float32, -s_e, s_e),
        "b_out": jax.random.uniform(k5, (1, embed_size), jnp.float32, -s_e, s_e),
    }

    ref = ref_forward(values, keys_in, query, mask, params, heads)

    # Strict f32 path: grid (2, 2) -> exercises batch blocking, the "parallel"
    # batch axis AND the multi-step online-softmax KV axis. Tight check.
    out = self_attention_forward(values, keys_in, query, mask, params, heads,
                                 mxu_dtype=jnp.float32,
                                 batch_block=2, kv_block=8)
    out = jax.block_until_ready(out)
    assert out.shape == (N, seq, embed_size)
    assert jnp.allclose(out, ref, rtol=1e-4, atol=1e-4), "f32 mismatch vs reference"

    # Production path (default): bf16 MXU operands, f32 softmax/accumulation,
    # approx (EUP) reciprocal. Looser tolerance only due to bf16 rounding.
    out_bf16 = self_attention_forward(values, keys_in, query, mask, params, heads)
    out_bf16 = jax.block_until_ready(out_bf16)
    assert out_bf16.shape == (N, seq, embed_size)
    assert jnp.allclose(out_bf16, ref, rtol=5e-2, atol=5e-2), "bf16 mismatch vs reference"

    print("KERNEL_OK")
</pallas_src>

<mosaic_0001>
module attributes {stable_mosaic.version = 11 : i64} {
  func.func @_fused_attn_kernel(%arg0: i32, %arg1: i32, %arg2: memref<2x16x32xf32, #tpu.memory_space<vmem>>, %arg3: memref<2x8x32xf32, #tpu.memory_space<vmem>>, %arg4: memref<2x8x32xf32, #tpu.memory_space<vmem>>, %arg5: memref<2x8x16xbf16, #tpu.memory_space<vmem>>, %arg6: memref<8x8xf32, #tpu.memory_space<vmem>>, %arg7: memref<8x8xf32, #tpu.memory_space<vmem>>, %arg8: memref<8x8xf32, #tpu.memory_space<vmem>>, %arg9: memref<32x32xf32, #tpu.memory_space<vmem>>, %arg10: memref<1x32xf32, #tpu.memory_space<vmem>>, %arg11: memref<2x16x32xf32, #tpu.memory_space<vmem>>, %arg12: memref<8x16x8xf32, #tpu.memory_space<vmem>>, %arg13: memref<8x16x1xf32, #tpu.memory_space<vmem>>, %arg14: memref<8x16x1xf32, #tpu.memory_space<vmem>>, %arg15: memref<8x16x8xf32, #tpu.memory_space<vmem>>) attributes {dimension_semantics = [#tpu.dimension_semantics<parallel>, #tpu.dimension_semantics<arbitrary>], iteration_bounds = array<i64: 2, 2>, scalar_prefetch = 0 : i64, scratch_operands = 4 : i64, tpu.core_type = #tpu.core_type<tc>, window_params = [{transform_indices = @transform_0, window_bounds = array<i64: 2, 16, 32>}, {transform_indices = @transform_1, window_bounds = array<i64: 2, 8, 32>}, {transform_indices = @transform_2, window_bounds = array<i64: 2, 8, 32>}, {transform_indices = @transform_3, window_bounds = array<i64: 2, 8, 16>}, {pipeline_mode = #tpu.pipeline_mode<synchronous>, transform_indices = @transform_4, window_bounds = array<i64: 8, 8>}, {pipeline_mode = #tpu.pipeline_mode<synchronous>, transform_indices = @transform_5, window_bounds = array<i64: 8, 8>}, {pipeline_mode = #tpu.pipeline_mode<synchronous>, transform_indices = @transform_6, window_bounds = array<i64: 8, 8>}, {pipeline_mode = #tpu.pipeline_mode<synchronous>, transform_indices = @transform_7, window_bounds = array<i64: 32, 32>}, {pipeline_mode = #tpu.pipeline_mode<synchronous>, transform_indices = @transform_8, window_bounds = array<i64: 1, 32>}, {transform_indices = @transform_9, window_bounds = array<i64: 2, 16, 32>}]} {
    %c0_i32 = arith.constant 0 : i32
    %0 = arith.cmpi eq, %arg1, %c0_i32 : i32
    %1 = arith.extui %0 : i1 to i32
    %c0_i32_0 = arith.constant 0 : i32
    %2 = arith.cmpi ne, %1, %c0_i32_0 : i32
    scf.if %2 {
      %cst_40 = arith.constant 0xFF800000 : f32
      %52 = vector.broadcast %cst_40 : f32 to vector<8x16x1xf32>
      %c0_41 = arith.constant 0 : index
      %c0_42 = arith.constant 0 : index
      %c0_43 = arith.constant 0 : index
      %53 = vector.load %arg13[%c0_41, %c0_42, %c0_43] : memref<8x16x1xf32, #tpu.memory_space<vmem>>, vector<8x16x1xf32>
      tpu.vector_store %arg13[%c0_41, %c0_42, %c0_43], %52 {strides = array<i32>} : memref<8x16x1xf32, #tpu.memory_space<vmem>>, vector<8x16x1xf32>,
      %cst_44 = arith.constant 0.000000e+00 : f32
      %54 = vector.broadcast %cst_44 : f32 to vector<8x16x1xf32>
      %c0_45 = arith.constant 0 : index
      %c0_46 = arith.constant 0 : index
      %c0_47 = arith.constant 0 : index
      %55 = vector.load %arg14[%c0_45, %c0_46, %c0_47] : memref<8x16x1xf32, #tpu.memory_space<vmem>>, vector<8x16x1xf32>
      tpu.vector_store %arg14[%c0_45, %c0_46, %c0_47], %54 {strides = array<i32>} : memref<8x16x1xf32, #tpu.memory_space<vmem>>, vector<8x16x1xf32>,
      %cst_48 = arith.constant 0.000000e+00 : f32
      %56 = vector.broadcast %cst_48 : f32 to vector<8x16x8xf32>
      %c0_49 = arith.constant 0 : index
      %c0_50 = arith.constant 0 : index
      %c0_51 = arith.constant 0 : index
      %57 = vector.load %arg15[%c0_49, %c0_50, %c0_51] : memref<8x16x8xf32, #tpu.memory_space<vmem>>, vector<8x16x8xf32>
      tpu.vector_store %arg15[%c0_49, %c0_50, %c0_51], %56 {strides = array<i32>} : memref<8x16x8xf32, #tpu.memory_space<vmem>>, vector<8x16x8xf32>,
      %c0_52 = arith.constant 0 : index
      %c0_53 = arith.constant 0 : index
      %c0_54 = arith.constant 0 : index
      %58 = vector.load %arg2[%c0_52, %c0_53, %c0_54] : memref<2x16x32xf32, #tpu.memory_space<vmem>>, vector<2x16x32xf32>
      %59 = vector.shape_cast %58 : vector<2x16x32xf32> to vector<2x16x4x8xf32>
      %60 = tpu.transpose %59, [0, 2, 1, 3] : vector<2x16x4x8xf32> -> vector<2x4x16x8xf32>
      %61 = vector.shape_cast %60 : vector<2x4x16x8xf32> to vector<128x8xf32>
      %c0_55 = arith.constant 0 : index
      %c0_56 = arith.constant 0 : index
      %62 = vector.load %arg6[%c0_55, %c0_56] : memref<8x8xf32, #tpu.memory_space<vmem>>, vector<8x8xf32>
      %cst_57 = arith.constant dense<0.000000e+00> : vector<128x8xf32>
      %63 = tpu.matmul %61, %62, %cst_57 {dimension_numbers = #tpu.dot_dimension_numbers<[1], [0], [0], [1], [0, 0, 1, 1], [], []>} : vector<128x8xf32>, vector<8x8xf32>, vector<128x8xf32> -> vector<128x8xf32>
      %64 = vector.shape_cast %63 : vector<128x8xf32> to vector<8x16x8xf32>
      %c0_58 = arith.constant 0 : index
      %c0_59 = arith.constant 0 : index
      %c0_60 = arith.constant 0 : index
      %65 = vector.load %arg12[%c0_58, %c0_59, %c0_60] : memref<8x16x8xf32, #tpu.memory_space<vmem>>, vector<8x16x8xf32>
      tpu.vector_store %arg12[%c0_58, %c0_59, %c0_60], %64 {strides = array<i32>} : memref<8x16x8xf32, #tpu.memory_space<vmem>>, vector<8x16x8xf32>,
    } else {
    }
    %c0 = arith.constant 0 : index
    %c0_1 = arith.constant 0 : index
    %c0_2 = arith.constant 0 : index
    %3 = vector.load %arg3[%c0, %c0_1, %c0_2] : memref<2x8x32xf32, #tpu.memory_space<vmem>>, vector<2x8x32xf32>
    %4 = vector.shape_cast %3 : vector<2x8x32xf32> to vector<2x8x4x8xf32>
    %5 = tpu.transpose %4, [0, 2, 1, 3] : vector<2x8x4x8xf32> -> vector<2x4x8x8xf32>
    %6 = vector.shape_cast %5 : vector<2x4x8x8xf32> to vector<64x8xf32>
    %c0_3 = arith.constant 0 : index
    %c0_4 = arith.constant 0 : index
    %7 = vector.load %arg7[%c0_3, %c0_4] : memref<8x8xf32, #tpu.memory_space<vmem>>, vector<8x8xf32>
    %cst = arith.constant dense<0.000000e+00> : vector<64x8xf32>
    %8 = tpu.matmul %6, %7, %cst {dimension_numbers = #tpu.dot_dimension_numbers<[1], [0], [0], [1], [0, 0, 1, 1], [], []>} : vector<64x8xf32>, vector<8x8xf32>, vector<64x8xf32> -> vector<64x8xf32>
    %9 = vector.shape_cast %8 : vector<64x8xf32> to vector<8x8x8xf32>
    %c0_5 = arith.constant 0 : index
    %c0_6 = arith.constant 0 : index
    %c0_7 = arith.constant 0 : index
    %10 = vector.load %arg4[%c0_5, %c0_6, %c0_7] : memref<2x8x32xf32, #tpu.memory_space<vmem>>, vector<2x8x32xf32>
    %11 = vector.shape_cast %10 : vector<2x8x32xf32> to vector<2x8x4x8xf32>
    %12 = tpu.transpose %11, [0, 2, 1, 3] : vector<2x8x4x8xf32> -> vector<2x4x8x8xf32>
    %13 = vector.shape_cast %12 : vector<2x4x8x8xf32> to vector<64x8xf32>
    %c0_8 = arith.constant 0 : index
    %c0_9 = arith.constant 0 : index
    %14 = vector.load %arg8[%c0_8, %c0_9] : memref<8x8xf32, #tpu.memory_space<vmem>>, vector<8x8xf32>
    %cst_10 = arith.constant dense<0.000000e+00> : vector<64x8xf32>
    %15 = tpu.matmul %13, %14, %cst_10 {dimension_numbers = #tpu.dot_dimension_numbers<[1], [0], [0], [1], [0, 0, 1, 1], [], []>} : vector<64x8xf32>, vector<8x8xf32>, vector<64x8xf32> -> vector<64x8xf32>
    %16 = vector.shape_cast %15 : vector<64x8xf32> to vector<8x8x8xf32>
    %c0_11 = arith.constant 0 : index
    %c0_12 = arith.constant 0 : index
    %c0_13 = arith.constant 0 : index
    %17 = vector.load %arg12[%c0_11, %c0_12, %c0_13] : memref<8x16x8xf32, #tpu.memory_space<vmem>>, vector<8x16x8xf32>
    %cst_14 = arith.constant dense<0.000000e+00> : vector<8x16x8xf32>
    %18 = tpu.matmul %17, %9, %cst_14 {dimension_numbers = #tpu.dot_dimension_numbers<[2], [2], [1], [1], [0, 0, 0, 1, 1, 1], [0], [0]>} : vector<8x16x8xf32>, vector<8x8x8xf32>, vector<8x16x8xf32> -> vector<8x16x8xf32>
    %c0_15 = arith.constant 0 : index
    %c0_16 = arith.constant 0 : index
    %c0_17 = arith.constant 0 : index
    %19 = vector.load %arg5[%c0_15, %c0_16, %c0_17] : memref<2x8x16xbf16, #tpu.memory_space<vmem>>, vector<2x8x16xbf16>
    %20 = arith.extf %19 : vector<2x8x16xbf16> to vector<2x8x16xf32>
    %21 = tpu.transpose %20, [0, 2, 1] : vector<2x8x16xf32> -> vector<2x16x8xf32>
    %22 = vector.shape_cast %18 : vector<8x16x8xf32> to vector<2x4x16x8xf32>
    %23 = vector.shape_cast %21 : vector<2x16x8xf32> to vector<2x1x16x8xf32>
    %24 = vector.broadcast %23 : vector<2x1x16x8xf32> to vector<2x4x16x8xf32>
    %25 = arith.addf %22, %24 : vector<2x4x16x8xf32>
    %26 = vector.shape_cast %25 : vector<2x4x16x8xf32> to vector<8x16x8xf32>
    %c0_18 = arith.constant 0 : index
    %c0_19 = arith.constant 0 : index
    %c0_20 = arith.constant 0 : index
    %27 = vector.load %arg13[%c0_18, %c0_19, %c0_20] : memref<8x16x1xf32, #tpu.memory_space<vmem>>, vector<8x16x1xf32>
    %cst_21 = arith.constant dense<0xFF800000> : vector<8x16xf32>
    %28 = vector.multi_reduction <maximumf>, %26, %cst_21 [2] : vector<8x16x8xf32> to vector<8x16xf32>
    %29 = vector.shape_cast %28 : vector<8x16xf32> to vector<8x16x1xf32>
    %30 = arith.maximumf %27, %29 : vector<8x16x1xf32>
    %31 = arith.subf %27, %30 : vector<8x16x1xf32>
    %32 = math.exp %31 : vector<8x16x1xf32>
    %33 = vector.broadcast %30 : vector<8x16x1xf32> to vector<8x16x8xf32>
    %34 = arith.subf %26, %33 : vector<8x16x8xf32>
    %35 = math.exp %34 : vector<8x16x8xf32>
    %c0_22 = arith.constant 0 : index
    %c0_23 = arith.constant 0 : index
    %c0_24 = arith.constant 0 : index
    %36 = vector.load %arg14[%c0_22, %c0_23, %c0_24] : memref<8x16x1xf32, #tpu.memory_space<vmem>>, vector<8x16x1xf32>
    %37 = arith.mulf %32, %36 : vector<8x16x1xf32>
    %cst_25 = arith.constant dense<0.000000e+00> : vector<8x16xf32>
    %38 = vector.multi_reduction <add>, %35, %cst_25 [2] : vector<8x16x8xf32> to vector<8x16xf32>
    %39 = vector.shape_cast %38 : vector<8x16xf32> to vector<8x16x1xf32>
    %40 = arith.addf %37, %39 : vector<8x16x1xf32>
    %c0_26 = arith.constant 0 : index
    %c0_27 = arith.constant 0 : index
    %c0_28 = arith.constant 0 : index
    %41 = vector.load %arg14[%c0_26, %c0_27, %c0_28] : memref<8x16x1xf32, #tpu.memory_space<vmem>>, vector<8x16x1xf32>
    tpu.vector_store %arg14[%c0_26, %c0_27, %c0_28], %40 {strides = array<i32>} : memref<8x16x1xf32, #tpu.memory_space<vmem>>, vector<8x16x1xf32>,
    %c0_29 = arith.constant 0 : index
    %c0_30 = arith.constant 0 : index
    %c0_31 = arith.constant 0 : index
    %42 = vector.load %arg15[%c0_29, %c0_30, %c0_31] : memref<8x16x8xf32, #tpu.memory_space<vmem>>, vector<8x16x8xf32>
    %43 = vector.broadcast %32 : vector<8x16x1xf32> to vector<8x16x8xf32>
    %44 = arith.mulf %43, %42 : vector<8x16x8xf32>
    %cst_32 = arith.constant dense<0.000000e+00> : vector<8x16x8xf32>
    %45 = tpu.matmul %35, %16, %cst_32 {dimension_numbers = #tpu.dot_dimension_numbers<[2], [1], [1], [2], [0, 0, 0, 1, 1, 2], [0], [0]>} : vector<8x16x8xf32>, vector<8x8x8xf32>, vector<8x16x8xf32> -> vector<8x16x8xf32>
    %46 = arith.addf %44, %45 : vector<8x16x8xf32>
    %c0_33 = arith.constant 0 : index
    %c0_34 = arith.constant 0 : index
    %c0_35 = arith.constant 0 : index
    %47 = vector.load %arg15[%c0_33, %c0_34, %c0_35] : memref<8x16x8xf32, #tpu.memory_space<vmem>>, vector<8x16x8xf32>
    tpu.vector_store %arg15[%c0_33, %c0_34, %c0_35], %46 {strides = array<i32>} : memref<8x16x8xf32, #tpu.memory_space<vmem>>, vector<8x16x8xf32>,
    %c0_36 = arith.constant 0 : index
    %c0_37 = arith.constant 0 : index
    %c0_38 = arith.constant 0 : index
    %48 = vector.load %arg13[%c0_36, %c0_37, %c0_38] : memref<8x16x1xf32, #tpu.memory_space<vmem>>, vector<8x16x1xf32>
    tpu.vector_store %arg13[%c0_36, %c0_37, %c0_38], %30 {strides = array<i32>} : memref<8x16x1xf32, #tpu.memory_space<vmem>>, vector<8x16x1xf32>,
    %c1_i32 = arith.constant 1 : i32
    %49 = arith.cmpi eq, %arg1, %c1_i32 : i32
    %50 = arith.extui %49 : i1 to i32
    %c0_i32_39 = arith.constant 0 : i32
    %51 = arith.cmpi ne, %50, %c0_i32_39 : i32
    scf.if %51 {
      %c0_40 = arith.constant 0 : index
      %c0_41 = arith.constant 0 : index
      %c0_42 = arith.constant 0 : index
      %52 = vector.load %arg14[%c0_40, %c0_41, %c0_42] : memref<8x16x1xf32, #tpu.memory_space<vmem>>, vector<8x16x1xf32>
      %53 = tpu.reciprocal %52 : vector<8x16x1xf32> -> vector<8x16x1xf32>
      %c0_43 = arith.constant 0 : index
      %c0_44 = arith.constant 0 : index
      %c0_45 = arith.constant 0 : index
      %54 = vector.load %arg15[%c0_43, %c0_44, %c0_45] : memref<8x16x8xf32, #tpu.memory_space<vmem>>, vector<8x16x8xf32>
      %55 = vector.broadcast %53 : vector<8x16x1xf32> to vector<8x16x8xf32>
      %56 = arith.mulf %54, %55 : vector<8x16x8xf32>
      %57 = vector.shape_cast %56 : vector<8x16x8xf32> to vector<2x4x16x8xf32>
      %58 = tpu.transpose %57, [0, 2, 1, 3] : vector<2x4x16x8xf32> -> vector<2x16x4x8xf32>
      %59 = vector.shape_cast %58 : vector<2x16x4x8xf32> to vector<32x32xf32>
      %c0_46 = arith.constant 0 : index
      %c0_47 = arith.constant 0 : index
      %60 = vector.load %arg9[%c0_46, %c0_47] : memref<32x32xf32, #tpu.memory_space<vmem>>, vector<32x32xf32>
      %cst_48 = arith.constant dense<0.000000e+00> : vector<32x32xf32>
      %61 = tpu.matmul %59, %60, %cst_48 {dimension_numbers = #tpu.dot_dimension_numbers<[1], [0], [0], [1], [0, 0, 1, 1], [], []>} : vector<32x32xf32>, vector<32x32xf32>, vector<32x32xf32> -> vector<32x32xf32>
      %c0_49 = arith.constant 0 : index
      %c0_50 = arith.constant 0 : index
      %62 = vector.load %arg10[%c0_49, %c0_50] : memref<1x32xf32, #tpu.memory_space<vmem>>, vector<1x32xf32>
      %63 = vector.broadcast %62 : vector<1x32xf32> to vector<32x32xf32>
      %64 = arith.addf %61, %63 : vector<32x32xf32>
      %65 = vector.shape_cast %64 : vector<32x32xf32> to vector<2x16x32xf32>
      %c0_51 = arith.constant 0 : index
      %c0_52 = arith.constant 0 : index
      %c0_53 = arith.constant 0 : index
      %66 = vector.load %arg11[%c0_51, %c0_52, %c0_53] : memref<2x16x32xf32, #tpu.memory_space<vmem>>, vector<2x16x32xf32>
      tpu.vector_store %arg11[%c0_51, %c0_52, %c0_53], %65 {strides = array<i32>} : memref<2x16x32xf32, #tpu.memory_space<vmem>>, vector<2x16x32xf32>,
    } else {
    }
    return
  }
  func.func @transform_0(%arg0: i32, %arg1: i32) -> (i32, i32, i32) {
    %c0_i32 = arith.constant 0 : i32
    %c0_i32_0 = arith.constant 0 : i32
    %c0_i32_1 = arith.constant 0 : i32
    return %arg0, %c0_i32, %c0_i32_0 : i32, i32, i32
  }
  func.func @transform_1(%arg0: i32, %arg1: i32) -> (i32, i32, i32) {
    %c0_i32 = arith.constant 0 : i32
    %c0_i32_0 = arith.constant 0 : i32
    return %arg0, %arg1, %c0_i32 : i32, i32, i32
  }
  func.func @transform_2(%arg0: i32, %arg1: i32) -> (i32, i32, i32) {
    %c0_i32 = arith.constant 0 : i32
    %c0_i32_0 = arith.constant 0 : i32
    return %arg0, %arg1, %c0_i32 : i32, i32, i32
  }
  func.func @transform_3(%arg0: i32, %arg1: i32) -> (i32, i32, i32) {
    %c0_i32 = arith.constant 0 : i32
    %c0_i32_0 = arith.constant 0 : i32
    return %arg0, %arg1, %c0_i32 : i32, i32, i32
  }
  func.func @transform_4(%arg0: i32, %arg1: i32) -> (i32, i32) {
    %c0_i32 = arith.constant 0 : i32
    %c0_i32_0 = arith.constant 0 : i32
    %c0_i32_1 = arith.constant 0 : i32
    return %c0_i32, %c0_i32_0 : i32, i32
  }
  func.func @transform_5(%arg0: i32, %arg1: i32) -> (i32, i32) {
    %c0_i32 = arith.constant 0 : i32
    %c0_i32_0 = arith.constant 0 : i32
    %c0_i32_1 = arith.constant 0 : i32
    return %c0_i32, %c0_i32_0 : i32, i32
  }
  func.func @transform_6(%arg0: i32, %arg1: i32) -> (i32, i32) {
    %c0_i32 = arith.constant 0 : i32
    %c0_i32_0 = arith.constant 0 : i32
    %c0_i32_1 = arith.constant 0 : i32
    return %c0_i32, %c0_i32_0 : i32, i32
  }
  func.func @transform_7(%arg0: i32, %arg1: i32) -> (i32, i32) {
    %c0_i32 = arith.constant 0 : i32
    %c0_i32_0 = arith.constant 0 : i32
    %c0_i32_1 = arith.constant 0 : i32
    return %c0_i32, %c0_i32_0 : i32, i32
  }
  func.func @transform_8(%arg0: i32, %arg1: i32) -> (i32, i32) {
    %c0_i32 = arith.constant 0 : i32
    %c0_i32_0 = arith.constant 0 : i32
    %c0_i32_1 = arith.constant 0 : i32
    return %c0_i32, %c0_i32_0 : i32, i32
  }
  func.func @transform_9(%arg0: i32, %arg1: i32) -> (i32, i32, i32) {
    %c0_i32 = arith.constant 0 : i32
    %c0_i32_0 = arith.constant 0 : i32
    %c0_i32_1 = arith.constant 0 : i32
    return %arg0, %c0_i32, %c0_i32_0 : i32, i32, i32
  }
}

</mosaic_0001>

<bundles_post_ra>
// kernel: tpu_custom_call.1
= control target key start
LH: loop header
LB: loop body
LE: loop exit
PB: predicated region body
PF: predicated region fallthrough
CT: control target
= control target key end

     0   :  { %s7636_s0 = inlined_call_operand.hbm [shape: f32[4,16,32], index: 0, kind: input, shape index: {}]   ;;  %s7637_s1 = inlined_call_operand.hbm [shape: f32[4,16,32], index: 1, kind: input, shape index: {}]   ;;  %s7638_s2 = inlined_call_operand.hbm [shape: f32[4,16,32], index: 2, kind: input, shape index: {}]   ;;  %s7639_s3 = inlined_call_operand.hbm [shape: bf16[4,16,16], index: 3, kind: input, shape index: {}]   ;;  %s7640_s4 = inlined_call_operand.hbm [shape: f32[8,8], index: 4, kind: input, shape index: {}]   ;;  %s7641_s5 = inlined_call_operand.vmem [shape: f32[8,8], index: 5, kind: input, shape index: {}]   ;;  %s7642_s6 = inlined_call_operand.hbm [shape: f32[8,8], index: 6, kind: input, shape index: {}]   ;;  %s7643_s7 = inlined_call_operand.hbm [shape: f32[32,32], index: 7, kind: input, shape index: {}]   ;;  %s7644_s8 = inlined_call_operand.vmem [shape: f32[1,32], index: 8, kind: input, shape index: {}]   ;;  %s7645_s9 = inlined_call_operand.hbm [shape: f32[4,16,32], index: 9, kind: output, shape index: {}]  }
   0x1   :  { %7664 = sst [smem:[#allocation38_spill]] %s7637_s1 }
   0x2   :  { %7665 = sst [smem:[#allocation39_spill]] %s7638_s2 }
   0x3   :  { %7666 = sst [smem:[#allocation40_spill]] %s7640_s4 }
   0x4   :  { %7667 = sst [smem:[#allocation41_spill]] %s7641_s5 }
   0x5   :  { %7668 = sst [smem:[#allocation42_spill]] %s7642_s6 }
   0x6   :  { %7669 = sst [smem:[#allocation43_spill]] %s7644_s8 }
   0x7   :  { %7670 = sst [smem:[#allocation44_spill]] %s7645_s9 }
   0x8   :  { %14 = vsyncpa [#allocation7], 0 }
   0x9   :  { %16 = vsyncpa [#allocation7 + $0x1], 0 }
   0xa   :  { %17 = vsyncpa [#allocation10], 0 }
   0xb   :  { %19 = vsyncpa [#allocation10 + $0x1], 0 }
   0xc   :  { %20 = vsyncpa [#allocation13], 0 }
   0xd   :  { %22 = vsyncpa [#allocation13 + $0x1], 0 }
   0xe   :  { %23 = vsyncpa [#allocation16], 0 }
   0xf   :  { %24 = vsyncpa [#allocation8], 0 }
  0x10   :  { %26 = vsyncpa [#allocation8 + $0x1], 0  ;;  %s6349_s30 = smov 0   ;;  %s6351_s10 = smov 0  }
  0x11   :  { %s6353_s11 = smov 0   ;;  %s6355_s12 = smov 0  }
  0x12   :  { %s6357_s13 = smov 0   ;;  %s6359_s14 = smov 0  }
  0x13   :  { %s6361_s15 = smov 0   ;;  %s6363_s16 = smov 0  }
  0x14   :  { %s6365_s17 = smov 0   ;;  %s6367_s18 = smov 0  }
  0x15   :  { %s6369_s19 = smov 0  }
  0x16 LB: > { %7671 = sst [smem:[#allocation25_spill]] %s6229_s10  ;;  %s6403_s20 = sadd.s32 4294967295, %s6265_s19   ;;  %s6265_s19 = sphi %s6369_s19, %s32_s19   ;;  %s6261_s18 = sphi %s6367_s18, %s7737_s18   ;;  %s6257_s17 = sphi %s6365_s17, %s7736_s17   ;;  %s6253_s16 = sphi %s6363_s16, %s7735_s16   ;;  %s6249_s15 = sphi %s6361_s15, %s7727_s15   ;;  %s6245_s14 = sphi %s6359_s14, %s7734_s14   ;;  %s6241_s13 = sphi %s6357_s13, %s7733_s13   ;;  %s6237_s12 = sphi %s6355_s12, %s7732_s12   ;;  %s6233_s11 = sphi %s6353_s11, %s7731_s11   ;;  %s6229_s10 = sphi %s6351_s10, %s7730_s10   ;;  %s6225_s30 = sphi %s6349_s30, %s7724_s30  }
  0x17   : > { %7672 = sst [smem:[#allocation26_spill]] %s6237_s12  ;;  %s5254_s21 = sadd.s32 4294967294, %s6265_s19  }
  0x18   : > { %7673 = sst [smem:[#allocation27_spill]] %s6249_s15  ;;  %p64_p0 = scmp.ne.s32.totalorder %s6241_s13, %s6237_s12 }
  0x19   : > { %7674 = sst [smem:[#allocation28_spill]] %s6253_s16  ;;  %p7647_p1 = scmp.eq.s32.totalorder %s6403_s20, 0 }
  0x1a   : > { %7675 = sst [smem:[#allocation29_spill]] %s6257_s17  ;;  %p92_p2 = scmp.ne.s32.totalorder %s6229_s10, %s6225_s30 }
  0x1b   : > { %p6413_p4 = por %p7647_p1, %p64_p0  ;;  %p283_p5 = scmp.eq.s32.totalorder %s5254_s21, 3 }
  0x1c   : > { %p6419_p6 = por %p92_p2, %p7647_p1  ;;  %p5255_p7 = scmp.ge.s32.totalorder %s6265_s19, 1 }
  0x1d   : > { %s7676_s22 = scalar_select %p6413_p4, 1, 0 }
  0x1e   : > { %s7678_s23 = scalar_select %p6419_p6, 1, 0 }
  0x1f   : > { %7677 = sst [smem:[#allocation30_spill]] %s7676_s22  ;;  %p6424_p8 = por %p283_p5, %p64_p0 }
  0x20   : > { %7679 = sst [smem:[#allocation31_spill]] %s7678_s23  ;;  %p290_p9 = scmp.lt.s32.totalorder %s6265_s19, 5 }
  0x21   : > { %s7680_s24 = scalar_select %p6424_p8, 1, 0 }
  0x22   : > { %p6429_p10 = pnand %p5255_p7, %p290_p9  ;;  %s6267_s26 = smov [#allocation14]  }
  0x23   : > { %7681 = sst [smem:[#allocation32_spill]] %s7680_s24  ;;  %s303_s27 = sshll.u32 %s6267_s26, 4  ;;  %s304_s27 = int_to_ptr.vmem [resolvable:$true] %s303_s27 }
  0x24   : > { %s7682_s25 = scalar_select %p6429_p10, 1, 0 }
  0x25   : > { %p5676_p11 = pneg %p6429_p10  ;;  %s6268_s28 = smov [#allocation15]  }
  0x26   : > { %7683 = sst [smem:[#allocation33_spill]] %s7682_s25  ;;  %s317_s29 = sshll.u32 %s6268_s28, 4  ;;  %s318_s29 = int_to_ptr.vmem [resolvable:$true] %s317_s29 }
  0x27   : > { %p6437_p12 = pnand %p5676_p11, %p7647_p1  ;;  %s5950_s21 = scalar_lea.vmem %s304_s27, 128 }
  0x28   : > { %p5951_p0 = scmp.ne.s32.totalorder %s304_s27, %s5950_s21  ;;  %p5958_p7 = scmp.lt.s32.totalorder %s304_s27, %s304_s27 }
  0x29   : > { %p5941_p13 = pneg %p6437_p12  ;;  %p5959_p9 = scmp.lt.s32.totalorder %s5950_s21, %s5950_s21 }
  0x2b   : > { %p5953_p2 = pnand %p5951_p0, %p5941_p13  ;;  %p5960_p3 = por %p5959_p9, %p5958_p7 }
  0x2d   : > { %p5954_p5 = pneg %p5953_p2 }
  0x2f   : > { %p5961_p8 = pnand %p5960_p3, %p5954_p5 }
  0x31   : > { %5964 = shalt.err (!%p5961_p8)
}
  0x32   : > { %s7685_s4 = sld [smem:[#allocation40_spill]]  ;;  %s5976_s24 = scalar_lea.vmem %s318_s29, 128 }
  0x33   : > { %p5977_p11 = scmp.ne.s32.totalorder %s318_s29, %s5976_s24  ;;  %p5984_p0 = scmp.lt.s32.totalorder %s318_s29, %s318_s29 }
  0x34   : > { %p5985_p2 = scmp.lt.s32.totalorder %s5976_s24, %s5976_s24 }
  0x35   : > { %p5979_p1 = pnand %p5977_p11, %p5941_p13 }
  0x36   : > { %p5986_p4 = por %p5985_p2, %p5984_p0 }
  0x37   : > { %p5980_p6 = pneg %p5979_p1 }
  0x38   : > { %5679 = dma.hbm_to_vmem [thread:$0]  (!%p6437_p12), %s7685_s4, 128, %s304_s27, [#allocation13]  }
  0x39   : > { %p5987_p10 = pnand %p5986_p4, %p5980_p6 }
  0x3b   : > { %5990 = shalt.err (!%p5987_p10)
}
  0x3c   : > { %s7686_s6 = sld [smem:[#allocation42_spill]]  ;;  %s41_s24 = sadd.s32 1, %s6257_s17 }
  0x3d   : > { %s44_s27 = sadd.s32 1, %s6261_s18  ;;  %p42_p1 = scmp.ge.s32.totalorder %s41_s24, 2 }
  0x3e   : > { %p59_p3 = scmp.eq.s32.totalorder %s6265_s19, 0  ;;  %s79_s12 = sadd.s32 1, %s6233_s11 }
  0x3f   : > { %p86_p4 = scmp.ne.s32.totalorder %s6233_s11, %s6229_s10  ;;  %s7739_s24 = smov (%p42_p1, %s41_s24), 0 }
  0x40   : > { %7687 = sst [smem:[#allocation34_spill]] %s7739_s24  ;;  %s7741_s27 = smov (!%p42_p1, %s44_s27), %s6261_s18 }
  0x41   : > { %s75_s26 = ssub.s32 %s6257_s17, %s7739_s24  ;;  %p6472_p6 = por %p86_p4, %p59_p3 }
  0x42   : > { %5682 = dma.hbm_to_vmem [thread:$0]  (!%p6437_p12), %s7686_s6, 128, %s318_s29, [#allocation16]  }
  0x43   : > { %p46_p8 = scmp.ge.s32.totalorder %s7741_s27, 2  ;;  %p5706_p10 = scmp.lt.s32.totalorder %s6265_s19, 4 }
  0x44   : > { %s7658_s21 = sand.u32 1, %s6233_s11   ;;  %s5396_s9 = sshll.u32 %s6261_s18, 2 }
  0x45   : > { %s7743_s27 = smov (%p46_p8, %s7741_s27), 0  ;;  %s6489_s24 = sshll.u32 %s7658_s21, 4 }
  0x46   : > { %7689 = sst [smem:[#allocation35_spill]] %s7743_s27  ;;  %s6483_s4 = ssub.s32 %s6261_s18, %s7743_s27 }
  0x47   : > { %p49_p5 = scmp.eq.s32.totalorder %s6483_s4, 0  ;;  %s76_s6 = sor.u32 %s75_s26, %s6483_s4 }
  0x48   : > { %p77_p7 = scmp.eq.s32.totalorder %s76_s6, 0  ;;  %s6496_s8 = sadd.s32 %s6257_s17, %s5396_s9 }
  0x49   : > { %s370_s29 = scalar_lea.vmem [#allocation9], %s6489_s24  ;;  %s5267_s15 = sshll.u32 %s6496_s8, 7 }
  0x4a   : > { %s6493_s16 = scalar_select %p77_p7, %s6233_s11, %s79_s12  }
  0x4b   : > { %s379_s5 = sshll.u32 %s370_s29, 4  ;;  %s7691_s1 = sld [smem:[#allocation38_spill]]  ;;  %s380_s5 = int_to_ptr.vmem [resolvable:$true] %s379_s5 }
  0x4c   : > { %7690 = sst [smem:[#allocation36_spill]] %s6493_s16  ;;  %p6507_p9 = pnand %p5706_p10, %p6472_p6 }
  0x4d   : > { %s7693_s2 = sld [smem:[#allocation39_spill]]  ;;  %s7695_s29 = sand.u32 1, %s6265_s19  }
  0x4e   : > { %s6518_s21 = scalar_lea.sflag [#allocation10], %s7695_s29  ;;  %p5993_p11 = pneg %p6507_p9 }
  0x4f   : > { %s6004_s23 = scalar_lea.vmem %s380_s5, 256  ;;  %s6269_s27 = smov [#allocation9]  }
  0x50   : > { %p6005_p0 = scmp.ne.s32.totalorder %s380_s5, %s6004_s23  ;;  %s6009_s28 = sshll.u32 %s6269_s27, 4  ;;  %s6010_s28 = int_to_ptr.vmem [resolvable:$false] %s6009_s28 }
  0x51   : > { %s378_s10 = scalar_lea.hbm %s7691_s1, %s5267_s15  ;;  %s6011_s1 = scalar_lea.vmem %s6010_s28, 512 }
  0x52   : > { %p6007_p2 = pnand %p6005_p0, %p5993_p11  ;;  %p6012_p4 = scmp.lt.s32.totalorder %s380_s5, %s6010_s28 }
  0x53   : > { %s6514_s9 = scalar_lea.hbm %s7693_s2, %s5267_s15  ;;  %p6013_p6 = scmp.lt.s32.totalorder %s6011_s1, %s6004_s23 }
  0x54   : > { %7694 = sst [smem:[#allocation37_spill]] %s6514_s9  ;;  %p6008_p1 = pneg %p6007_p2 }
  0x55   : > { %p6014_p8 = por %p6013_p6, %p6012_p4 }
  0x57   : > { %p6015_p7 = pnand %p6014_p8, %p6008_p1 }
  0x59   : > { %6018 = shalt.err (!%p6015_p7)
}
  0x5a   : > { %s7663_s15 = smov 256   ;;  %s6271_s26 = smov 128  }
  0x5b   : > { %s6272_s12 = smov 8   ;;  %s393_s29 = scalar_lea.vmem [#allocation11], %s6489_s24 }
  0x5c   : > { %5692 = dma.hbm_to_vmem [thread:$0]  (!%p6507_p9), %s378_s10, 256, %s380_s5, %s6518_s21, %s7663_s15, %s6271_s26, %s6272_s12  }
  0x5d   : > { %s402_s27 = sshll.u32 %s393_s29, 4  ;;  %s7696_s1 = sand.u32 1, %s6233_s11   ;;  %s6532_s27 = int_to_ptr.vmem [resolvable:$true] %s402_s27 }
  0x5e   : > { %s6536_s23 = sshll.u32 %s7696_s1, 3  ;;  %s5275_s28 = sshll.u32 %s6496_s8, 6 }
  0x5f   : > { %s6542_s16 = scalar_lea.hbm %s7639_s3, %s5275_s28  ;;  %s6273_s22 = smov [#allocation17]  }
  0x60   : > { %s327_s25 = sshll.u32 %s6273_s22, 4  ;;  %s328_s25 = int_to_ptr.vmem [resolvable:$true] %s327_s25 }
  0x61   : > { %s6030_s9 = scalar_lea.vmem %s328_s25, 512  ;;  %p6038_p4 = scmp.lt.s32.totalorder %s328_s25, %s328_s25 }
  0x62   : > { %p6031_p0 = scmp.ne.s32.totalorder %s328_s25, %s6030_s9  ;;  %p6039_p6 = scmp.lt.s32.totalorder %s6030_s9, %s6030_s9 }
  0x64   : > { %p6033_p2 = pnand %p6031_p0, %p5941_p13  ;;  %p6040_p8 = por %p6039_p6, %p6038_p4 }
  0x66   : > { %p6034_p1 = pneg %p6033_p2 }
  0x68   : > { %p6041_p7 = pnand %p6040_p8, %p6034_p1 }
  0x6a   : > { %6044 = shalt.err (!%p6041_p7)
}
  0x6b   : > { %5685 = dma.hbm_to_vmem [thread:$0]  (!%p6437_p12), %s7643_s7, 512, %s328_s25, [#allocation16], %s6271_s26, %s6271_s26, %s6272_s12  }
  0x6c   : > { %s51_s8 = sadd.s32 1, %s6245_s14  ;;  %p58_p13 = scmp.ne.s32.totalorder %s6245_s14, %s6241_s13 }
  0x6d   : > { %s6561_s10 = scalar_select %p49_p5, %s6245_s14, %s51_s8  }
  0x6e   : > { %p60_p0 = por %p59_p3, %p58_p13  ;;  %p7697_p2 = scmp.eq.s32.totalorder %s6403_s20, 3 }
  0x6f   : > { %s344_s22 = sand.u32 1, %s6245_s14   ;;  %s5395_s30 = sshll.u32 %s6261_s18, 9 }
  0x70   : > { %p6567_p1 = por %p7697_p2, %p58_p13  ;;  %s5260_s24 = sshll.u32 %s344_s22, 5 }
  0x71   : > { %s355_s1 = scalar_lea.hbm %s7636_s0, %s5395_s30  ;;  %s348_s25 = scalar_lea.vmem [#allocation6], %s5260_s24 }
  0x72   : > { %s356_s28 = sshll.u32 %s348_s25, 4  ;;  %p6578_p12 = pnand %p5706_p10, %p60_p0  ;;  %s357_s28 = int_to_ptr.vmem [resolvable:$true] %s356_s28 }
  0x73   : > { %s416_s2 = scalar_lea.vmem [#allocation12], %s6536_s23  ;;  %s345_s8 = scalar_lea.sflag [#allocation7], %s344_s22 }
  0x74   : > { %s425_s5 = sshll.u32 %s416_s2, 4  ;;  %p6047_p3 = pneg %p6578_p12  ;;  %s6583_s5 = int_to_ptr.vmem [resolvable:$true] %s425_s5 }
  0x75   : > { %s6058_s15 = scalar_lea.vmem %s357_s28, 512  ;;  %s6274_s30 = smov [#allocation6]  }
  0x76   : > { %p6059_p5 = scmp.ne.s32.totalorder %s357_s28, %s6058_s15  ;;  %s6063_s24 = sshll.u32 %s6274_s30, 4  ;;  %s6064_s24 = int_to_ptr.vmem [resolvable:$false] %s6063_s24 }
  0x77   : > { %s6065_s9 = scalar_lea.vmem %s6064_s24, 1024  ;;  %p6066_p10 = scmp.lt.s32.totalorder %s357_s28, %s6064_s24 }
  0x78   : > { %p6061_p4 = pnand %p6059_p5, %p6047_p3  ;;  %p6067_p8 = scmp.lt.s32.totalorder %s6065_s9, %s6058_s15 }
  0x7a   : > { %p6062_p6 = pneg %p6061_p4  ;;  %p6068_p7 = por %p6067_p8, %p6066_p10 }
  0x7c   : > { %p6069_p13 = pnand %p6068_p7, %p6062_p6 }
  0x7e   : > { %6072 = shalt.err (!%p6069_p13)
}
  0x7f   : > { %5689 = dma.hbm_to_vmem [thread:$0]  (!%p6578_p12), %s355_s1, 512, %s357_s28, %s345_s8, %s6271_s26, %s6271_s26, %s6272_s12  }
  0x80   : > { %s6086_s23 = scalar_lea.vmem %s6532_s27, 256  ;;  %s6275_s15 = smov [#allocation11]  }
  0x81   : > { %p6087_p0 = scmp.ne.s32.totalorder %s6532_s27, %s6086_s23  ;;  %s6091_s22 = sshll.u32 %s6275_s15, 4  ;;  %s6092_s22 = int_to_ptr.vmem [resolvable:$false] %s6091_s22 }
  0x82   : > { %s6093_s29 = scalar_lea.vmem %s6092_s22, 512  ;;  %p6094_p5 = scmp.lt.s32.totalorder %s6532_s27, %s6092_s22 }
  0x83   : > { %p6089_p2 = pnand %p6087_p0, %p5993_p11  ;;  %p6095_p4 = scmp.lt.s32.totalorder %s6093_s29, %s6086_s23 }
  0x85   : > { %p6090_p3 = pneg %p6089_p2  ;;  %p6096_p6 = por %p6095_p4, %p6094_p5 }
  0x87   : > { %p6097_p10 = pnand %p6096_p6, %p6090_p3 }
  0x89   : > { %6100 = shalt.err (!%p6097_p10)
}
  0x8a   : > { %s7700_s1 = smov 256   ;;  %s7701_s25 = sld [smem:[#allocation37_spill]] }
  0x8b   : > { %s7702_s28 = sand.u32 1, %s6265_s19   ;;  %s6114_s2 = scalar_lea.vmem %s6583_s5, 128 }
  0x8c   : > { %s413_s4 = scalar_lea.sflag [#allocation13], %s7702_s28  ;;  %p6115_p12 = scmp.ne.s32.totalorder %s6583_s5, %s6114_s2 }
  0x8d   : > { %s6276_s8 = smov [#allocation12]  }
  0x8e   : > { %p6117_p8 = pnand %p6115_p12, %p5993_p11  ;;  %s6119_s30 = sshll.u32 %s6276_s8, 4  ;;  %s6120_s30 = int_to_ptr.vmem [resolvable:$false] %s6119_s30 }
  0x8f   : > { %s6121_s24 = scalar_lea.vmem %s6120_s30, 256  ;;  %p6122_p13 = scmp.lt.s32.totalorder %s6583_s5, %s6120_s30 }
  0x90   : > { %5695 = dma.hbm_to_vmem [thread:$0]  (!%p6507_p9), %s7701_s25, 256, %s6532_s27, %s6518_s21, %s7700_s1, %s6271_s26, %s6272_s12  }
  0x91   : > { %p6118_p7 = pneg %p6117_p8  ;;  %p6123_p0 = scmp.lt.s32.totalorder %s6121_s24, %s6114_s2 }
  0x93   : > { %p6124_p2 = por %p6123_p0, %p6122_p13 }
  0x95   : > { %p6125_p3 = pnand %p6124_p2, %p6118_p7 }
  0x97   : > { %6128 = shalt.err (!%p6125_p3)
}
  0x98   : > { %s6277_s9 = smov 64   ;;  %s6278_s21 = smov 4  }
  0x99   : > { %5698 = dma.hbm_to_vmem [thread:$0]  (!%p6507_p9), %s6542_s16, 128, %s6583_s5, %s413_s4, %s6271_s26, %s6277_s9, %s6278_s21  }
  0x9a   : > { %s7703_s12 = sld [smem:[#allocation33_spill]] }
  0xa0   : > { %p7704_p11 = scmp.ne.s32.totalorder %s7703_s12, 0 }
  0xa1   : > { %s7705_s27 = sld [smem:[#allocation30_spill]] (!%p7704_p11)  ;;  %s6622_s23 = sand.u32 (!%p7704_p11), 1, %s6241_s13  }
  0xa2   : > { %437 = sbr.rel (%p7704_p11) target bundleno = 2177 (0x881), region = 56  ;;  %s5277_s15 = sshll.u32 (!%p7704_p11), %s6622_s23, 5 }
  0xa3   : > { %s440_s22 = scalar_lea.sflag (!%p7704_p11), [#allocation7], %s6622_s23  ;;  %s6626_s29 = scalar_lea.vmem (!%p7704_p11), [#allocation6], %s5277_s15 }
  0xa7   : > { %p7706_p5 = scmp.ne.s32.totalorder %s7705_s27, 0 }
  0xa9   : > { %6200 = dma.done.wait (%p7706_p5), %s440_s22, 512  }
  0xaa   : > { %6202 = vsyncadd (%p7706_p5), %s440_s22, 4294966784  ;;  %s7707_s16 = sld [smem:[#allocation25_spill]]  ;;  %s448_s26 = sand.u32 1, %s6403_s20  }
  0xab   : > { %s7708_s6 = sld [smem:[#allocation31_spill]]  ;;  %s449_s25 = scalar_lea.sflag [#allocation10], %s448_s26 }
  0xb0   : > { %s450_s5 = sand.u32 1, %s7707_s16  }
  0xb1   : > { %s6634_s1 = sshll.u32 %s450_s5, 4  ;;  %p7709_p9 = scmp.ne.s32.totalorder %s7708_s6, 0 }
  0xb2   : > { %s452_s28 = scalar_lea.vmem [#allocation9], %s6634_s1 }
  0xb3   : > { %6204 = dma.done.wait (%p7709_p9), %s449_s25, 512  }
  0xb4   : > { %6206 = vsyncadd (%p7709_p9), %s449_s25, 4294966784  ;;  %s6641_s4 = sshll.u32 %s450_s5, 3  ;;  %s461_s2 = scalar_lea.vmem [#allocation11], %s6634_s1 }
  0xb5   : > { %s467_s8 = scalar_lea.sflag [#allocation13], %s448_s26  ;;  %s470_s30 = scalar_lea.vmem [#allocation12], %s6641_s4 }
  0xb6   : > { %6208 = dma.done.wait (%p7709_p9), %s467_s8, 128  }
  0xb7   : > { %6210 = vsyncadd (%p7709_p9), %s467_s8, 4294967168  ;;  %p7710_p4 = scmp.eq.s32.totalorder %s6403_s20, 0 }
  0xb9   : > { %6212 = dma.done.wait (%p7710_p4), [#allocation13], 128   ;;  %p7711_p6 = pmov %p7710_p4 }
  0xba   : > { %p7712_p10 = pmov %p7710_p4 }
  0xbb   : > { %6214 = vsyncadd (%p7711_p6), [#allocation13], 4294967168 }
  0xbc   : > { %6216 = dma.done.wait (%p7712_p10), [#allocation16], 640   ;;  %p7713_p12 = pmov %p7710_p4 }
  0xbd   : > { %s6657_s24 = scalar_lea.vmem [#allocation18], %s5277_s15  ;;  %s7714_s9 = sld [smem:[#allocation27_spill]] }
  0xbe   : > { %6218 = vsyncadd (%p7713_p12), [#allocation16], 4294966656 }
  0xc3   : > { %p5285_p8 = scmp.ne.s32.totalorder %s7714_s9, 0 }
  0xc4   : > { %s6279_s21 = smov (!%p5285_p8), 112   ;;  %s6280_s12 = smov (!%p5285_p8), 120  }
  0xc5   : > { %540 = sbr.rel (%p5285_p8) target bundleno = 569 (0x239), region = 88  ;;  %s6281_s20 = smov (!%p5285_p8), 104  }
  0xca   : > { %v6661_v0 = vld [vmem:[%s6626_s29] sm:$0xff]  ;;  %v6666_v1 = vld [vmem:[%s6626_s29 + $0x10] sm:$0xff]  ;;  %v6673_v2 = vld [vmem:[%s6626_s29 + $0x18] sm:$0xff]  ;;  %vm574_vm0 = vcmask 64512   ;;  %vm541_vm1 = vcmask 7168   ;;  %v6282_v5 = vmov -inf   ;;  %v640_v9 = vlaneseq }
  0xcb   : > { %611 = vrot.lane.b32.xlu1 %v6661_v0, %s6279_s21  ;;  %599 = vrot.lane.b32.xlu0 %v6661_v0, %s6280_s12  ;;  %v6676_v3 = vld [vmem:[%s6626_s29 + $0x8] sm:$0xff]  ;;  %v1179_v4 = vld [vmem:[#allocation14] sm:$0xff]  ;;  %542 = vst.msk [vmem:[#allocation3] sm:$0xff] %vm541_vm1, %v6282_v5  ;;  %543 = vst.msk [vmem:[#allocation3 + $0x8] sm:$0xff] %vm541_vm1, %v6282_v5  ;;  %v6283_v6 = vmov 0.0  }
  0xcc   : > { %544 = vst.msk [vmem:[#allocation3 + $0x10] sm:$0xff] %vm541_vm1, %v6282_v5  ;;  %545 = vst.msk [vmem:[#allocation3 + $0x18] sm:$0xff] %vm541_vm1, %v6282_v5  ;;  %5496 = vmatprep.subr.mxu0 %v1179_v4  ;;  %5644 = vmatprep.subr.mxu1 %v1179_v4  ;;  %v6284_v7 = vmov 1983009808   ;;  %v6285_v12 = vmov 1934713408  }
  0xcd   : > { %546 = vst.msk [vmem:[#allocation3 + $0x20] sm:$0xff] %vm541_vm1, %v6282_v5  ;;  %547 = vst.msk [vmem:[#allocation3 + $0x28] sm:$0xff] %vm541_vm1, %v6282_v5  ;;  %5497 = vmatpush3.msra.mxu0 %v1179_v4  ;;  %5645 = vmatpush3.msra.mxu1 %v1179_v4  ;;  %v638_v8 = vunpack.c.l.s4 %v6284_v7  ;;  %v670_v13 = vunpack.c.l.s4 %v6285_v12  ;;  %v641_v15 = vshrl.u32 %v640_v9, 7 }
  0xce   : > { %548 = vst.msk [vmem:[#allocation3 + $0x30] sm:$0xff] %vm541_vm1, %v6282_v5  ;;  %549 = vst.msk [vmem:[#allocation3 + $0x38] sm:$0xff] %vm541_vm1, %v6282_v5 }
  0xcf   : > { %615 = vrot.lane.b32.xlu1 %v6666_v1, %s6279_s21  ;;  %603 = vrot.lane.b32.xlu0 %v6666_v1, %s6280_s12  ;;  %550 = vst.msk [vmem:[#allocation3 + $0x40] sm:$0xff] %vm541_vm1, %v6282_v5  ;;  %551 = vst.msk [vmem:[#allocation3 + $0x48] sm:$0xff] %vm541_vm1, %v6282_v5  ;;  %v639_v14 = vunpack.c.0.s8 %v638_v8  ;;  %v671_v19 = vunpack.c.0.s8 %v670_v13 }
  0xd0   : > { %552 = vst.msk [vmem:[#allocation3 + $0x50] sm:$0xff] %vm541_vm1, %v6282_v5  ;;  %553 = vst.msk [vmem:[#allocation3 + $0x58] sm:$0xff] %vm541_vm1, %v6282_v5 }
  0xd1   : > { %554 = vst.msk [vmem:[#allocation3 + $0x60] sm:$0xff] %vm541_vm1, %v6282_v5  ;;  %555 = vst.msk [vmem:[#allocation3 + $0x68] sm:$0xff] %vm541_vm1, %v6282_v5  ;;  %v6733_v20 = vsub.s32 %v639_v14, %v641_v15  ;;  %v6739_v31 = vsub.s32 %v671_v19, %v641_v15 }
  0xd2   : > { %556 = vst.msk [vmem:[#allocation3 + $0x70] sm:$0xff] %vm541_vm1, %v6282_v5  ;;  %557 = vst.msk [vmem:[#allocation3 + $0x78] sm:$0xff] %vm541_vm1, %v6282_v5 }
  0xd3   : > { %627 = vrot.lane.b32.xlu1 %v6666_v1, %s6281_s20  ;;  %623 = vrot.lane.b32.xlu0 %v6661_v0, %s6281_s20  ;;  %558 = vst.msk [vmem:[#allocation4] sm:$0xff] %vm541_vm1, %v6283_v6  ;;  %559 = vst.msk [vmem:[#allocation4 + $0x8] sm:$0xff] %vm541_vm1, %v6283_v6 }
  0xd4   : > { %560 = vst.msk [vmem:[#allocation4 + $0x10] sm:$0xff] %vm541_vm1, %v6283_v6  ;;  %561 = vst.msk [vmem:[#allocation4 + $0x18] sm:$0xff] %vm541_vm1, %v6283_v6 }
  0xd5   : > { %562 = vst.msk [vmem:[#allocation4 + $0x20] sm:$0xff] %vm541_vm1, %v6283_v6  ;;  %563 = vst.msk [vmem:[#allocation4 + $0x28] sm:$0xff] %vm541_vm1, %v6283_v6 }
  0xd6   : > { %564 = vst.msk [vmem:[#allocation4 + $0x30] sm:$0xff] %vm541_vm1, %v6283_v6  ;;  %565 = vst.msk [vmem:[#allocation4 + $0x38] sm:$0xff] %vm541_vm1, %v6283_v6 }
  0xd7   : > { %605 = vrot.lane.b32.xlu1 %v6673_v2, %s6280_s12  ;;  %601 = vrot.lane.b32.xlu0 %v6676_v3, %s6280_s12  ;;  %566 = vst.msk [vmem:[#allocation4 + $0x40] sm:$0xff] %vm541_vm1, %v6283_v6  ;;  %567 = vst.msk [vmem:[#allocation4 + $0x48] sm:$0xff] %vm541_vm1, %v6283_v6 }
  0xd8   : > { %568 = vst.msk [vmem:[#allocation4 + $0x50] sm:$0xff] %vm541_vm1, %v6283_v6  ;;  %569 = vst.msk [vmem:[#allocation4 + $0x58] sm:$0xff] %vm541_vm1, %v6283_v6 }
  0xd9   : > { %570 = vst.msk [vmem:[#allocation4 + $0x60] sm:$0xff] %vm541_vm1, %v6283_v6  ;;  %571 = vst.msk [vmem:[#allocation4 + $0x68] sm:$0xff] %vm541_vm1, %v6283_v6 }
  0xda   : > { %572 = vst.msk [vmem:[#allocation4 + $0x70] sm:$0xff] %vm541_vm1, %v6283_v6  ;;  %573 = vst.msk [vmem:[#allocation4 + $0x78] sm:$0xff] %vm541_vm1, %v6283_v6 }
  0xdb   : > { %617 = vrot.lane.b32.xlu1 %v6673_v2, %s6279_s21  ;;  %613 = vrot.lane.b32.xlu0 %v6676_v3, %s6279_s21  ;;  %575 = vst.msk [vmem:[#allocation5] sm:$0xff] %vm574_vm0, %v6283_v6  ;;  %576 = vst.msk [vmem:[#allocation5 + $0x8] sm:$0xff] %vm574_vm0, %v6283_v6 }
  0xdc   : > { %577 = vst.msk [vmem:[#allocation5 + $0x10] sm:$0xff] %vm574_vm0, %v6283_v6  ;;  %578 = vst.msk [vmem:[#allocation5 + $0x18] sm:$0xff] %vm574_vm0, %v6283_v6 }
  0xdd   : > { %579 = vst.msk [vmem:[#allocation5 + $0x20] sm:$0xff] %vm574_vm0, %v6283_v6  ;;  %580 = vst.msk [vmem:[#allocation5 + $0x28] sm:$0xff] %vm574_vm0, %v6283_v6 }
  0xde   : > { %581 = vst.msk [vmem:[#allocation5 + $0x30] sm:$0xff] %vm574_vm0, %v6283_v6  ;;  %582 = vst.msk [vmem:[#allocation5 + $0x38] sm:$0xff] %vm574_vm0, %v6283_v6 }
  0xdf   : > { %629 = vrot.lane.b32.xlu1 %v6673_v2, %s6281_s20  ;;  %625 = vrot.lane.b32.xlu0 %v6676_v3, %s6281_s20  ;;  %583 = vst.msk [vmem:[#allocation5 + $0x40] sm:$0xff] %vm574_vm0, %v6283_v6  ;;  %584 = vst.msk [vmem:[#allocation5 + $0x48] sm:$0xff] %vm574_vm0, %v6283_v6 }
  0xe0   : > { %585 = vst.msk [vmem:[#allocation5 + $0x50] sm:$0xff] %vm574_vm0, %v6283_v6  ;;  %586 = vst.msk [vmem:[#allocation5 + $0x58] sm:$0xff] %vm574_vm0, %v6283_v6 }
  0xe1   : > { %587 = vst.msk [vmem:[#allocation5 + $0x60] sm:$0xff] %vm574_vm0, %v6283_v6  ;;  %588 = vst.msk [vmem:[#allocation5 + $0x68] sm:$0xff] %vm574_vm0, %v6283_v6 }
  0xe2   : > { %589 = vst.msk [vmem:[#allocation5 + $0x70] sm:$0xff] %vm574_vm0, %v6283_v6  ;;  %590 = vst.msk [vmem:[#allocation5 + $0x78] sm:$0xff] %vm574_vm0, %v6283_v6 }
 0x13d   : > { %v612_v10 = vpop.permute.xlu1 %611  ;;  %v600_v11 = vpop.permute.xlu0 %599 }
 0x13e   : > { %v635_v21 = vcombine.low %v6661_v0, %v612_v10  ;;  %v636_v22 = vcombine.high %v6661_v0, %v612_v10 }
 0x140   : > { %v643_v36 = vrot.slane %v635_v21, %v6733_v20  ;;  %v650_v37 = vrot.slane %v636_v22, %v6733_v20 }
 0x141   : > { %v616_v16 = vpop.permute.xlu1 %615  ;;  %v604_v17 = vpop.permute.xlu0 %603 }
 0x142   : > { %v771_v18 = vcombine.low %v6666_v1, %v616_v16  ;;  %v772_v23 = vcombine.high %v6666_v1, %v616_v16 }
 0x144   : > { %v779_v30 = vrot.slane %v771_v18, %v6733_v20  ;;  %v786_v40 = vrot.slane %v772_v23, %v6733_v20 }
 0x145   : > { %v628_v24 = vpop.permute.xlu1 %627  ;;  %v624_v25 = vpop.permute.xlu0 %623 }
 0x146   : > { %v787_v26 = vcombine.low %v604_v17, %v628_v24  ;;  %v788_v27 = vcombine.high %v604_v17, %v628_v24  ;;  %v651_v28 = vcombine.low %v600_v11, %v624_v25  ;;  %v652_v29 = vcombine.high %v600_v11, %v624_v25 }
 0x148   : > { %v795_v32 = vrot.slane %v787_v26, %v6733_v20  ;;  %v802_v33 = vrot.slane %v788_v27, %v6733_v20  ;;  %v659_v34 = vrot.slane %v651_v28, %v6733_v20  ;;  %v666_v35 = vrot.slane %v652_v29, %v6733_v20 }
 0x149   : > { %v606_v38 = vpop.permute.xlu1 %605  ;;  %v602_v39 = vpop.permute.xlu0 %601 }
 0x14a   : > { %v803_v41 = vcombine.low %v779_v30, %v795_v32  ;;  %v804_v42 = vcombine.high %v779_v30, %v795_v32  ;;  %v667_v43 = vcombine.low %v643_v36, %v659_v34  ;;  %v668_v44 = vcombine.high %v643_v36, %v659_v34 }
 0x14b   : > { %v683_v45 = vcombine.low %v650_v37, %v666_v35  ;;  %v684_v46 = vcombine.high %v650_v37, %v666_v35  ;;  %v819_v49 = vcombine.low %v786_v40, %v802_v33  ;;  %v820_v50 = vcombine.high %v786_v40, %v802_v33 }
 0x14c   : > { %v6749_v47 = vrot.slane %v803_v41, %v6739_v31  ;;  %v6752_v48 = vrot.slane %v804_v42, %v6739_v31  ;;  %v675_v51 = vrot.slane %v667_v43, %v6739_v31  ;;  %v682_v52 = vrot.slane %v668_v44, %v6739_v31 }
 0x14d   : > { %v691_v53 = vrot.slane %v683_v45, %v6739_v31  ;;  %v698_v54 = vrot.slane %v684_v46, %v6739_v31  ;;  %v618_v55 = vpop.permute.xlu1 %617  ;;  %v614_v56 = vpop.permute.xlu0 %613  ;;  %v6763_v1 = vrot.slane %v819_v49, %v6739_v31  ;;  %v6766_v4 = vrot.slane %v820_v50, %v6739_v31 }
 0x14e   : > { %v839_v57 = vcombine.low %v6673_v2, %v618_v55  ;;  %v840_v58 = vcombine.high %v6673_v2, %v618_v55  ;;  %v703_v59 = vcombine.low %v6676_v3, %v614_v56  ;;  %v704_v60 = vcombine.high %v6676_v3, %v614_v56 }
 0x14f   : > { %v907_v61 = vcombine.low %v675_v51, %v682_v52  ;;  %v5286_v62 = vcombine.high %v675_v51, %v682_v52  ;;  %v923_v63 = vcombine.low %v691_v53, %v698_v54  ;;  %v5287_v0 = vcombine.high %v691_v53, %v698_v54 }
 0x150   : > { %v847_v5 = vrot.slane %v839_v57, %v6733_v20  ;;  %v854_v6 = vrot.slane %v840_v58, %v6733_v20  ;;  %v711_v15 = vrot.slane %v703_v59, %v6733_v20  ;;  %v718_v16 = vrot.slane %v704_v60, %v6733_v20 }
 0x151   : > { %v630_v7 = vpop.permute.xlu1 %629  ;;  %v626_v2 = vpop.permute.xlu0 %625  ;;  %v6771_v8 = vrot.slane %v907_v61, %v6733_v20  ;;  %v6774_v3 = vrot.slane %v5286_v62, %v6733_v20  ;;  %v6777_v9 = vrot.slane %v923_v63, %v6733_v20  ;;  %v6780_v10 = vrot.slane %v5287_v0, %v6733_v20 }
 0x152   : > { %v855_v11 = vcombine.low %v606_v38, %v630_v7  ;;  %v856_v12 = vcombine.high %v606_v38, %v630_v7  ;;  %v719_v13 = vcombine.low %v602_v39, %v626_v2  ;;  %v720_v14 = vcombine.high %v602_v39, %v626_v2 }
 0x153   : > { %v939_v17 = vcombine.low %v6771_v8, %v6774_v3  ;;  %v955_v18 = vcombine.low %v6777_v9, %v6780_v10  ;;  %v1043_v26 = vcombine.low %v6749_v47, %v6752_v48  ;;  %v5290_v27 = vcombine.high %v6749_v47, %v6752_v48 }
 0x154   : > { %v863_v19 = vrot.slane %v855_v11, %v6733_v20  ;;  %v870_v21 = vrot.slane %v856_v12, %v6733_v20  ;;  %v727_v22 = vrot.slane %v719_v13, %v6733_v20  ;;  %v734_v23 = vrot.slane %v720_v14, %v6733_v20 }
 0x155   : > { %v6793_v24 = vrot.slane %v939_v17, %v6739_v31  ;;  %v6796_v25 = vrot.slane %v955_v18, %v6739_v31  ;;  %v940_v61 = vcombine.high %v6771_v8, %v6774_v3  ;;  %v1050_v63 = vrot.slane %v1043_v26, %v6733_v20 }
 0x156   : > { %v871_v28 = vcombine.low %v847_v5, %v863_v19  ;;  %v872_v29 = vcombine.high %v847_v5, %v863_v19  ;;  %v887_v30 = vcombine.low %v854_v6, %v870_v21  ;;  %v888_v32 = vcombine.high %v854_v6, %v870_v21 }
 0x157   : > { %v735_v33 = vcombine.low %v711_v15, %v727_v22  ;;  %v736_v34 = vcombine.high %v711_v15, %v727_v22  ;;  %v751_v35 = vcombine.low %v718_v16, %v734_v23  ;;  %v752_v36 = vcombine.high %v718_v16, %v734_v23 }
 0x158   : > { %v879_v37 = vrot.slane %v871_v28, %v6739_v31  ;;  %v886_v38 = vrot.slane %v872_v29, %v6739_v31  ;;  %v895_v39 = vrot.slane %v887_v30, %v6739_v31  ;;  %v902_v40 = vrot.slane %v888_v32, %v6739_v31 }
 0x159   : > { %v743_v41 = vrot.slane %v735_v33, %v6739_v31  ;;  %v750_v42 = vrot.slane %v736_v34, %v6739_v31  ;;  %v759_v43 = vrot.slane %v751_v35, %v6739_v31  ;;  %v766_v44 = vrot.slane %v752_v36, %v6739_v31 }
 0x15a   : > { %v1111_v45 = vcombine.low %v879_v37, %v886_v38  ;;  %v5292_v46 = vcombine.high %v879_v37, %v886_v38  ;;  %v1127_v47 = vcombine.low %v895_v39, %v902_v40  ;;  %v5293_v48 = vcombine.high %v895_v39, %v902_v40 }
 0x15b   : > { %v975_v49 = vcombine.low %v743_v41, %v750_v42  ;;  %v5288_v50 = vcombine.high %v743_v41, %v750_v42  ;;  %v991_v51 = vcombine.low %v759_v43, %v766_v44  ;;  %v5289_v52 = vcombine.high %v759_v43, %v766_v44 }
 0x15c   : > { %v1118_v53 = vrot.slane %v1111_v45, %v6733_v20  ;;  %v1126_v54 = vrot.slane %v5292_v46, %v6733_v20  ;;  %v1134_v55 = vrot.slane %v1127_v47, %v6733_v20  ;;  %v1142_v56 = vrot.slane %v5293_v48, %v6733_v20 }
 0x15d   : > { %v982_v57 = vrot.slane %v975_v49, %v6733_v20  ;;  %v990_v58 = vrot.slane %v5288_v50, %v6733_v20  ;;  %v998_v59 = vrot.slane %v991_v51, %v6733_v20  ;;  %v1006_v60 = vrot.slane %v5289_v52, %v6733_v20 }
 0x15e   : > { %v971_v62 = vcombine.low %v6793_v24, %v6796_v25  ;;  %v1058_v0 = vrot.slane %v5290_v27, %v6733_v20  ;;  %v1059_v5 = vcombine.low %v6763_v1, %v6766_v4  ;;  %v5291_v6 = vcombine.high %v6763_v1, %v6766_v4 }
 0x15f   : > { %v1007_v7 = vcombine.low %v982_v57, %v990_v58  ;;  %v1023_v2 = vcombine.low %v998_v59, %v1006_v60  ;;  %v956_v11 = vcombine.high %v6777_v9, %v6780_v10  ;;  %v1143_v3 = vcombine.low %v1118_v53, %v1126_v54 }
 0x160   : > { %5498 = vmatprep.mubr.msk.f32.mxu0 %vm574_vm0, %v971_v62  ;;  %v1075_v8 = vcombine.low %v1050_v63, %v1058_v0  ;;  %v1159_v12 = vcombine.low %v1134_v55, %v1142_v56  ;;  %v1066_v13 = vrot.slane %v1059_v5, %v6733_v20  ;;  %v1074_v14 = vrot.slane %v5291_v6, %v6733_v20 }
 0x161   : > { %v1015_v15 = vrot.slane %v1007_v7, %v6739_v31  ;;  %v1031_v16 = vrot.slane %v1023_v2, %v6739_v31  ;;  %v1151_v1 = vrot.slane %v1143_v3, %v6739_v31  ;;  %v972_v18 = vcombine.high %v6793_v24, %v6796_v25 }
 0x162   : > { %v1167_v4 = vrot.slane %v1159_v12, %v6739_v31  ;;  %v1083_v17 = vrot.slane %v1075_v8, %v6739_v31  ;;  %v1091_v9 = vcombine.low %v1066_v13, %v1074_v14  ;;  %v1076_v19 = vcombine.high %v1050_v63, %v1058_v0 }
 0x163   : > { %v1039_v10 = vcombine.low %v1015_v15, %v1031_v16  ;;  %v954_v21 = vrot.slane %v940_v61, %v6739_v31  ;;  %v970_v20 = vrot.slane %v956_v11, %v6739_v31  ;;  %v1092_v22 = vcombine.high %v1066_v13, %v1074_v14 }
 0x164   : > { %v1099_v23 = vrot.slane %v1091_v9, %v6739_v31  ;;  %v1008_v26 = vcombine.high %v982_v57, %v990_v58  ;;  %v1024_v27 = vcombine.high %v998_v59, %v1006_v60  ;;  %v1175_v28 = vcombine.low %v1151_v1, %v1167_v4 }
 0x165   : > { %5499 = vmatmul.mubr.msk.f32.vlgmr.msra.gmra.mxu0 %vm574_vm0, %v1039_v10  ;;  %v1040_v30 = vcombine.high %v1015_v15, %v1031_v16  ;;  %v973_v24 = vcombine.low %v954_v21, %v970_v20  ;;  %v1144_v33 = vcombine.high %v1118_v53, %v1126_v54  ;;  %v1160_v34 = vcombine.high %v1134_v55, %v1142_v56 }
 0x166   : > { %5501 = vmatprep.mubr.msk.f32.mxu0 %vm574_vm0, %v972_v18  ;;  %v1107_v29 = vcombine.low %v1083_v17, %v1099_v23  ;;  %v1022_v32 = vrot.slane %v1008_v26, %v6739_v31  ;;  %v1038_v25 = vrot.slane %v1024_v27, %v6739_v31  ;;  %v1108_v35 = vcombine.high %v1083_v17, %v1099_v23 }
 0x167   : > { %v1090_v36 = vrot.slane %v1076_v19, %v6739_v31  ;;  %v1106_v37 = vrot.slane %v1092_v22, %v6739_v31  ;;  %v1176_v39 = vcombine.high %v1151_v1, %v1167_v4  ;;  %v1158_v40 = vrot.slane %v1144_v33, %v6739_v31 }
 0x168   : > { %5510 = vmatprep.mubr.msk.f32.mxu1 %vm574_vm0, %v1107_v29  ;;  %v1041_v38 = vcombine.low %v1022_v32, %v1038_v25  ;;  %v1174_v41 = vrot.slane %v1160_v34, %v6739_v31  ;;  %v974_v42 = vcombine.high %v954_v21, %v970_v20  ;;  %v1042_v44 = vcombine.high %v1022_v32, %v1038_v25 }
 0x169   : > { %5502 = vmatmul.mubr.msk.f32.gmra.mxu0 %vm574_vm0, %v1040_v30  ;;  %5511 = vmatmul.mubr.msk.f32.vlgmr.msra.gmra.mxu1 %vm574_vm0, %v1175_v28  ;;  %v1109_v43 = vcombine.low %v1090_v36, %v1106_v37  ;;  %v1110_v46 = vcombine.high %v1090_v36, %v1106_v37 }
 0x16a   : > { %5504 = vmatprep.mubr.msk.f32.mxu0 %vm574_vm0, %v973_v24  ;;  %5513 = vmatprep.mubr.msk.f32.mxu1 %vm574_vm0, %v1108_v35  ;;  %v1177_v45 = vcombine.low %v1158_v40, %v1174_v41  ;;  %v1178_v31 = vcombine.high %v1158_v40, %v1174_v41 }
 0x16d   : > { %5505 = vmatmul.mubr.msk.f32.gmra.mxu0 %vm574_vm0, %v1041_v38  ;;  %5514 = vmatmul.mubr.msk.f32.gmra.mxu1 %vm574_vm0, %v1176_v39 }
 0x16e   : > { %5507 = vmatprep.mubr.msk.f32.mxu0 %vm574_vm0, %v974_v42  ;;  %5516 = vmatprep.mubr.msk.f32.mxu1 %vm574_vm0, %v1109_v43 }
 0x171   : > { %5508 = vmatmul.mubr.msk.f32.gmra.mxu0 %vm574_vm0, %v1042_v44  ;;  %5517 = vmatmul.mubr.msk.f32.gmra.mxu1 %vm574_vm0, %v1177_v45 }
 0x172   : > { %5519 = vmatprep.mubr.msk.f32.mxu1 %vm574_vm0, %v1110_v46 }
 0x175   : > { %5520 = vmatmul.mubr.msk.f32.gmra.mxu1 %vm574_vm0, %v1178_v31 }
 0x225   : > { %v5500_v47 = vpop.f32.mrf.mxu0 }
 0x226   : > { %1374 = vst.msk [vmem:[#allocation2 + $0x8] sm:$0xff] %vm574_vm0, %v5500_v47 }
 0x227   : > { %v1294_v48 = vpop.f32.mrf.mxu0 }
 0x228   : > { %1373 = vst.msk [vmem:[#allocation2] sm:$0xff] %vm574_vm0, %v1294_v48 }
 0x229   : > { %v5503_v49 = vpop.f32.mrf.mxu0  ;;  %v5512_v50 = vpop.f32.mrf.mxu1 }
 0x22a   : > { %1376 = vst.msk [vmem:[#allocation2 + $0x18] sm:$0xff] %vm574_vm0, %v5503_v49  ;;  %1382 = vst.msk [vmem:[#allocation2 + $0x48] sm:$0xff] %vm574_vm0, %v5512_v50 }
 0x22b   : > { %v1304_v51 = vpop.f32.mrf.mxu0  ;;  %v1334_v52 = vpop.f32.mrf.mxu1 }
 0x22c   : > { %1375 = vst.msk [vmem:[#allocation2 + $0x10] sm:$0xff] %vm574_vm0, %v1304_v51  ;;  %1381 = vst.msk [vmem:[#allocation2 + $0x40] sm:$0xff] %vm574_vm0, %v1334_v52 }
 0x22d   : > { %v5506_v53 = vpop.f32.mrf.mxu0  ;;  %v5515_v54 = vpop.f32.mrf.mxu1 }
 0x22e   : > { %1378 = vst.msk [vmem:[#allocation2 + $0x28] sm:$0xff] %vm574_vm0, %v5506_v53  ;;  %1384 = vst.msk [vmem:[#allocation2 + $0x58] sm:$0xff] %vm574_vm0, %v5515_v54 }
 0x22f   : > { %v1314_v55 = vpop.f32.mrf.mxu0  ;;  %v1344_v56 = vpop.f32.mrf.mxu1 }
 0x230   : > { %1377 = vst.msk [vmem:[#allocation2 + $0x20] sm:$0xff] %vm574_vm0, %v1314_v55  ;;  %1383 = vst.msk [vmem:[#allocation2 + $0x50] sm:$0xff] %vm574_vm0, %v1344_v56 }
 0x231   : > { %v5509_v57 = vpop.f32.mrf.mxu0  ;;  %v5518_v58 = vpop.f32.mrf.mxu1 }
 0x232   : > { %1380 = vst.msk [vmem:[#allocation2 + $0x38] sm:$0xff] %vm574_vm0, %v5509_v57  ;;  %1386 = vst.msk [vmem:[#allocation2 + $0x68] sm:$0xff] %vm574_vm0, %v5518_v58 }
 0x233   : > { %v1324_v59 = vpop.f32.mrf.mxu0  ;;  %v1354_v60 = vpop.f32.mrf.mxu1 }
 0x234   : > { %1379 = vst.msk [vmem:[#allocation2 + $0x30] sm:$0xff] %vm574_vm0, %v1324_v59  ;;  %1385 = vst.msk [vmem:[#allocation2 + $0x60] sm:$0xff] %vm574_vm0, %v1354_v60 }
 0x235   : > { %v5521_v61 = vpop.f32.mrf.mxu1 }
 0x236   : > { %1388 = vst.msk [vmem:[#allocation2 + $0x78] sm:$0xff] %vm574_vm0, %v5521_v61 }
 0x237   : > { %v1364_v62 = vpop.f32.mrf.mxu1 }
 0x238   : > { %1387 = vst.msk [vmem:[#allocation2 + $0x70] sm:$0xff] %vm574_vm0, %v1364_v62 }
 0x239 PF: > { %v1389_v63 = vld [vmem:[%s452_s28] sm:$0xff]  ;;  %s6286_s27 = smov 104   ;;  %s6287_s15 = smov 120   ;;  %v1390_v0 = vld [vmem:[%s452_s28 + $0x8] sm:$0xff]  ;;  %v6289_v11 = vmov 1983009808   ;;  %v1416_v3 = vlaneseq }
 0x23a   : > { %1405 = vrot.lane.b32.xlu1 %v1389_v63, %s6286_s27  ;;  %1393 = vrot.lane.b32.xlu0 %v1389_v63, %s6287_s15  ;;  %s6288_s22 = smov 112   ;;  %s7715_s6 = sld [smem:[#allocation41_spill]]  ;;  %v6889_v6 = vld [vmem:[%s461_s2] sm:$0xff]  ;;  %v6895_v7 = vld [vmem:[%s461_s2 + $0x8] sm:$0xff]  ;;  %v1414_v8 = vunpack.c.l.s4 %v6289_v11  ;;  %v6290_v12 = vmov 1934713408  }
 0x23b   : > { %v2108_v2 = vld [vmem:[#allocation15] sm:$0xff]  ;;  %v1446_v13 = vunpack.c.l.s4 %v6290_v12  ;;  %v1417_v15 = vshrl.u32 %v1416_v3, 7  ;;  %vm1684_vm2 = vcmask 64512   ;;  %vm3362_vm3 = vcmask 7168   ;;  %s7716_s26 = sld [smem:[#allocation27_spill]] }
 0x23c   : > { %5536 = vmatprep.subr.mxu1 %v2108_v2  ;;  %v1415_v14 = vunpack.c.0.s8 %v1414_v8 }
 0x23d   : > { %5537 = vmatpush3.msra.mxu1 %v2108_v2  ;;  %v1447_v4 = vunpack.c.0.s8 %v1446_v13 }
 0x23e   : > { %1399 = vrot.lane.b32.xlu0 %v1389_v63, %s6288_s22  ;;  %1395 = vrot.lane.b32.xlu1 %v1390_v0, %s6287_s15  ;;  %v6901_v17 = vsub.s32 %v1415_v14, %v1417_v15 }
 0x23f   : > { %v6903_v22 = vsub.s32 %v1447_v4, %v1417_v15 }
 0x240   : > { %v1683_v5 = vld [vmem:[%s7715_s6] sm:$0xff] }
 0x241   : > { %5522 = vmatprep.subr.mxu0 %v1683_v5  ;;  %p5374_p7 = scmp.ne.s32.totalorder %s7716_s26, 1 }
 0x242   : > { %1407 = vrot.lane.b32.xlu1 %v1390_v0, %s6286_s27  ;;  %1401 = vrot.lane.b32.xlu0 %v1390_v0, %s6288_s22  ;;  %s6293_s5 = smov (!%p5374_p7), 8   ;;  %s6294_s1 = smov (!%p5374_p7), 16  }
 0x243   : > { %5523 = vmatpush3.msra.mxu0 %v1683_v5  ;;  %s6295_s25 = smov (!%p5374_p7), 24   ;;  %s7717_s2 = sld [smem:[#allocation43_spill]] (!%p5374_p7) }
 0x246   : > { %1818 = vrot.lane.b32.xlu0 %v6889_v6, %s6287_s15  ;;  %1824 = vrot.lane.b32.xlu1 %v6889_v6, %s6288_s22 }
 0x24a   : > { %1830 = vrot.lane.b32.xlu0 %v6889_v6, %s6286_s27  ;;  %1820 = vrot.lane.b32.xlu1 %v6895_v7, %s6287_s15 }
 0x24e   : > { %1832 = vrot.lane.b32.xlu1 %v6895_v7, %s6286_s27  ;;  %1826 = vrot.lane.b32.xlu0 %v6895_v7, %s6288_s22 }
 0x2ac   : > { %v1406_v16 = vpop.permute.xlu1 %1405  ;;  %v1394_v1 = vpop.permute.xlu0 %1393 }
 0x2ad   : > { %v1427_v9 = vcombine.low %v1394_v1, %v1406_v16  ;;  %v1428_v10 = vcombine.high %v1394_v1, %v1406_v16 }
 0x2af   : > { %v1435_v23 = vrot.slane %v1427_v9, %v6901_v17  ;;  %v1442_v26 = vrot.slane %v1428_v10, %v6901_v17 }
 0x2b0   : > { %v1400_v18 = vpop.permute.xlu0 %1399  ;;  %v1396_v19 = vpop.permute.xlu1 %1395 }
 0x2b1   : > { %v1411_v21 = vcombine.low %v1389_v63, %v1400_v18  ;;  %v1412_v20 = vcombine.high %v1389_v63, %v1400_v18 }
 0x2b3   : > { %v1419_v27 = vrot.slane %v1411_v21, %v6901_v17  ;;  %v1426_v28 = vrot.slane %v1412_v20, %v6901_v17 }
 0x2b4   : > { %v1408_v29 = vpop.permute.xlu1 %1407  ;;  %v1402_v30 = vpop.permute.xlu0 %1401 }
 0x2b5   : > { %v1443_v32 = vcombine.low %v1419_v27, %v1435_v23  ;;  %v1444_v24 = vcombine.high %v1419_v27, %v1435_v23  ;;  %v1459_v25 = vcombine.low %v1426_v28, %v1442_v26  ;;  %v1460_v33 = vcombine.high %v1426_v28, %v1442_v26 }
 0x2b6   : > { %v1495_v34 = vcombine.low %v1396_v19, %v1408_v29  ;;  %v1496_v35 = vcombine.high %v1396_v19, %v1408_v29  ;;  %v1479_v36 = vcombine.low %v1390_v0, %v1402_v30  ;;  %v1480_v37 = vcombine.high %v1390_v0, %v1402_v30 }
 0x2b7   : > { %v1451_v38 = vrot.slane %v1443_v32, %v6903_v22  ;;  %v1458_v39 = vrot.slane %v1444_v24, %v6903_v22  ;;  %v1467_v40 = vrot.slane %v1459_v25, %v6903_v22  ;;  %v1474_v41 = vrot.slane %v1460_v33, %v6903_v22 }
 0x2b8   : > { %v1503_v42 = vrot.slane %v1495_v34, %v6901_v17  ;;  %v1510_v43 = vrot.slane %v1496_v35, %v6901_v17  ;;  %v1487_v44 = vrot.slane %v1479_v36, %v6901_v17  ;;  %v1494_v45 = vrot.slane %v1480_v37, %v6901_v17  ;;  %v1819_v26 = vpop.permute.xlu0 %1818  ;;  %v1825_v27 = vpop.permute.xlu1 %1824 }
 0x2b9   : > { %v1547_v46 = vcombine.low %v1451_v38, %v1458_v39  ;;  %v5310_v31 = vcombine.high %v1451_v38, %v1458_v39  ;;  %v1563_v47 = vcombine.low %v1467_v40, %v1474_v41  ;;  %v5311_v48 = vcombine.high %v1467_v40, %v1474_v41 }
 0x2ba   : > { %v1511_v49 = vcombine.low %v1487_v44, %v1503_v42  ;;  %v1512_v50 = vcombine.high %v1487_v44, %v1503_v42  ;;  %v1527_v51 = vcombine.low %v1494_v45, %v1510_v43  ;;  %v1528_v52 = vcombine.high %v1494_v45, %v1510_v43 }
 0x2bb   : > { %v1554_v53 = vrot.slane %v1547_v46, %v6901_v17  ;;  %v1562_v54 = vrot.slane %v5310_v31, %v6901_v17  ;;  %v1570_v55 = vrot.slane %v1563_v47, %v6901_v17  ;;  %v1578_v56 = vrot.slane %v5311_v48, %v6901_v17 }
 0x2bc   : > { %v1519_v57 = vrot.slane %v1511_v49, %v6903_v22  ;;  %v1526_v58 = vrot.slane %v1512_v50, %v6903_v22  ;;  %v1535_v59 = vrot.slane %v1527_v51, %v6903_v22  ;;  %v1542_v60 = vrot.slane %v1528_v52, %v6903_v22  ;;  %v1831_v36 = vpop.permute.xlu0 %1830  ;;  %v1821_v37 = vpop.permute.xlu1 %1820 }
 0x2bd   : > { %v1579_v61 = vcombine.low %v1554_v53, %v1562_v54  ;;  %v1580_v62 = vcombine.high %v1554_v53, %v1562_v54  ;;  %v1595_v63 = vcombine.low %v1570_v55, %v1578_v56  ;;  %v1596_v0 = vcombine.high %v1570_v55, %v1578_v56 }
 0x2be   : > { %v1615_v5 = vcombine.low %v1519_v57, %v1526_v58  ;;  %v5312_v2 = vcombine.high %v1519_v57, %v1526_v58  ;;  %v1631_v11 = vcombine.low %v1535_v59, %v1542_v60  ;;  %v5313_v8 = vcombine.high %v1535_v59, %v1542_v60 }
 0x2bf   : > { %v1587_v3 = vrot.slane %v1579_v61, %v6903_v22  ;;  %v1603_v12 = vrot.slane %v1595_v63, %v6903_v22  ;;  %v1594_v13 = vrot.slane %v1580_v62, %v6903_v22  ;;  %v1610_v14 = vrot.slane %v1596_v0, %v6903_v22 }
 0x2c0   : > { %v1622_v15 = vrot.slane %v1615_v5, %v6901_v17  ;;  %v1630_v16 = vrot.slane %v5312_v2, %v6901_v17  ;;  %v1638_v1 = vrot.slane %v1631_v11, %v6901_v17  ;;  %v1646_v4 = vrot.slane %v5313_v8, %v6901_v17  ;;  %v1833_v45 = vpop.permute.xlu1 %1832  ;;  %v1827_v46 = vpop.permute.xlu0 %1826 }
 0x2c1   : > { %v1611_v9 = vcombine.low %v1587_v3, %v1603_v12  ;;  %v1612_v10 = vcombine.high %v1587_v3, %v1603_v12  ;;  %v1613_v23 = vcombine.low %v1594_v13, %v1610_v14  ;;  %v1836_v24 = vcombine.low %v6889_v6, %v1825_v27 }
 0x2c2   : > { %v1647_v18 = vcombine.low %v1622_v15, %v1630_v16  ;;  %v1663_v19 = vcombine.low %v1638_v1, %v1646_v4  ;;  %v1648_v21 = vcombine.high %v1622_v15, %v1630_v16  ;;  %v1664_v20 = vcombine.high %v1638_v1, %v1646_v4 }
 0x2c3   : > { %5524 = vmatprep.mubr.msk.f32.mxu0 %vm1684_vm2, %v1611_v9  ;;  %v1837_v25 = vcombine.high %v6889_v6, %v1825_v27  ;;  %v1614_v33 = vcombine.high %v1594_v13, %v1610_v14  ;;  %v1844_v38 = vrot.slane %v1836_v24, %v6901_v17  ;;  %v1852_v40 = vcombine.low %v1819_v26, %v1831_v36 }
 0x2c4   : > { %5525 = vmatmul.mubr.msk.f32.vlgmr.msra.gmra.mxu0 %vm1684_vm2, %v1612_v10  ;;  %v1655_v28 = vrot.slane %v1647_v18, %v6903_v22  ;;  %v1671_v29 = vrot.slane %v1663_v19, %v6903_v22  ;;  %v1662_v30 = vrot.slane %v1648_v21, %v6903_v22  ;;  %v1678_v32 = vrot.slane %v1664_v20, %v6903_v22 }
 0x2c5   : > { %5527 = vmatprep.mubr.msk.f32.mxu0 %vm1684_vm2, %v1613_v23  ;;  %v1851_v39 = vrot.slane %v1837_v25, %v6901_v17  ;;  %v1853_v41 = vcombine.high %v1819_v26, %v1831_v36  ;;  %v1860_v43 = vrot.slane %v1852_v40, %v6901_v17  ;;  %v1920_v50 = vcombine.low %v1821_v37, %v1833_v45 }
 0x2c6   : > { %v1679_v34 = vcombine.low %v1655_v28, %v1671_v29  ;;  %v1680_v35 = vcombine.high %v1655_v28, %v1671_v29  ;;  %v1681_v42 = vcombine.low %v1662_v30, %v1678_v32  ;;  %v1682_v44 = vcombine.high %v1662_v30, %v1678_v32 }
 0x2c7   : > { %v1867_v6 = vrot.slane %v1853_v41, %v6901_v17  ;;  %v1868_v31 = vcombine.low %v1844_v38, %v1860_v43  ;;  %v1869_v47 = vcombine.high %v1844_v38, %v1860_v43  ;;  %v1921_v51 = vcombine.high %v1821_v37, %v1833_v45 }
 0x2c8   : > { %5528 = vmatmul.mubr.msk.f32.gmra.mxu0 %vm1684_vm2, %v1614_v33  ;;  %v1904_v52 = vcombine.low %v6895_v7, %v1827_v46  ;;  %v1905_v53 = vcombine.high %v6895_v7, %v1827_v46  ;;  %v1928_v58 = vrot.slane %v1920_v50, %v6901_v17  ;;  %v5402_v50 = vld [vmem:[%s470_s30] sm:$0xff]  }
 0x2c9   : > { %5530 = vmatprep.mubr.msk.f32.mxu0 %vm1684_vm2, %v1679_v34  ;;  %v1884_v48 = vcombine.low %v1851_v39, %v1867_v6  ;;  %v1885_v49 = vcombine.high %v1851_v39, %v1867_v6  ;;  %v1876_v54 = vrot.slane %v1868_v31, %v6903_v22  ;;  %v1883_v55 = vrot.slane %v1869_v47, %v6903_v22 }
 0x2ca   : > { %v1935_v59 = vrot.slane %v1921_v51, %v6901_v17  ;;  %v1912_v60 = vrot.slane %v1904_v52, %v6901_v17  ;;  %v1919_v61 = vrot.slane %v1905_v53, %v6901_v17  ;;  %v5403_v51 = vunpack.c.l.bf16 %v5402_v50 }
 0x2cb   : > { %v1892_v56 = vrot.slane %v1884_v48, %v6903_v22  ;;  %v1899_v57 = vrot.slane %v1885_v49, %v6903_v22  ;;  %v1972_v62 = vcombine.low %v1876_v54, %v1883_v55  ;;  %v5322_v7 = vcombine.high %v1876_v54, %v1883_v55  ;;  %v2240_v48 = vld [vmem:[#allocation2 + $0x10] sm:$0xff]  ;;  %v2238_v49 = vld [vmem:[#allocation2] sm:$0xff] }
 0x2cc   : > { %5531 = vmatmul.mubr.msk.f32.gmra.mxu0 %vm1684_vm2, %v1680_v35  ;;  %v1936_v5 = vcombine.low %v1912_v60, %v1928_v58  ;;  %v1937_v2 = vcombine.high %v1912_v60, %v1928_v58  ;;  %v1952_v11 = vcombine.low %v1919_v61, %v1935_v59  ;;  %v1953_v8 = vcombine.high %v1919_v61, %v1935_v59  ;;  %v2239_v59 = vld [vmem:[#allocation2 + $0x8] sm:$0xff]  ;;  %v2242_v60 = vld [vmem:[#allocation2 + $0x20] sm:$0xff] }
 0x2cd   : > { %5533 = vmatprep.mubr.msk.f32.mxu0 %vm1684_vm2, %v1681_v42  ;;  %v1988_v63 = vcombine.low %v1892_v56, %v1899_v57  ;;  %v5323_v0 = vcombine.high %v1892_v56, %v1899_v57  ;;  %v1979_v3 = vrot.slane %v1972_v62, %v6901_v17  ;;  %v1987_v12 = vrot.slane %v5322_v7, %v6901_v17  ;;  %v2241_v56 = vld [vmem:[#allocation2 + $0x18] sm:$0xff]  ;;  %v2244_v57 = vld [vmem:[#allocation2 + $0x30] sm:$0xff] }
 0x2ce   : > { %v1944_v15 = vrot.slane %v1936_v5, %v6903_v22  ;;  %v1951_v16 = vrot.slane %v1937_v2, %v6903_v22  ;;  %v1960_v1 = vrot.slane %v1952_v11, %v6903_v22  ;;  %v1967_v4 = vrot.slane %v1953_v8, %v6903_v22  ;;  %v2245_v62 = vld [vmem:[#allocation2 + $0x38] sm:$0xff]  ;;  %v2248_v7 = vld [vmem:[#allocation2 + $0x50] sm:$0xff]  ;;  %v2246_v5 = vld [vmem:[#allocation2 + $0x40] sm:$0xff] }
 0x2cf   : > { %v1995_v13 = vrot.slane %v1988_v63, %v6901_v17  ;;  %v2003_v14 = vrot.slane %v5323_v0, %v6901_v17  ;;  %v2004_v9 = vcombine.low %v1979_v3, %v1987_v12  ;;  %v2005_v10 = vcombine.high %v1979_v3, %v1987_v12  ;;  %v2243_v0 = vld [vmem:[#allocation2 + $0x28] sm:$0xff]  ;;  %v2249_v11 = vld [vmem:[#allocation2 + $0x58] sm:$0xff]  ;;  %v2252_v8 = vld [vmem:[#allocation2 + $0x70] sm:$0xff] }
 0x2d0   : > { %5534 = vmatmul.mubr.msk.f32.gmra.mxu0 %vm1684_vm2, %v1682_v44  ;;  %v2040_v21 = vcombine.low %v1944_v15, %v1951_v16  ;;  %v5324_v20 = vcombine.high %v1944_v15, %v1951_v16  ;;  %v2056_v23 = vcombine.low %v1960_v1, %v1967_v4  ;;  %v5325_v26 = vcombine.high %v1960_v1, %v1967_v4  ;;  %v2247_v12 = vld [vmem:[#allocation2 + $0x48] sm:$0xff]  ;;  %v2253_v15 = vld [vmem:[#allocation2 + $0x78] sm:$0xff] }
 0x2d1   : > { %v2020_v18 = vcombine.low %v1995_v13, %v2003_v14  ;;  %v2021_v19 = vcombine.high %v1995_v13, %v2003_v14  ;;  %v2012_v27 = vrot.slane %v2004_v9, %v6903_v22  ;;  %v2019_v29 = vrot.slane %v2005_v10, %v6903_v22  ;;  %5552 = vmatprep.mubr.msk.f32.mxu0 %vm1684_vm2, %v2238_v49  ;;  %v2250_v13 = vld [vmem:[#allocation2 + $0x60] sm:$0xff]  ;;  %v2251_v16 = vld [vmem:[#allocation2 + $0x68] sm:$0xff] }
 0x2d2   : > { %v2047_v32 = vrot.slane %v2040_v21, %v6901_v17  ;;  %v2055_v24 = vrot.slane %v5324_v20, %v6901_v17  ;;  %v2063_v25 = vrot.slane %v2056_v23, %v6901_v17  ;;  %v2071_v33 = vrot.slane %v5325_v26, %v6901_v17 }
 0x2d3   : > { %v2028_v28 = vrot.slane %v2020_v18, %v6903_v22  ;;  %v2035_v30 = vrot.slane %v2021_v19, %v6903_v22  ;;  %v5404_v52 = vunpack.c.h.bf16 %v5402_v50  ;;  %v6291_v50 = vmov 0  }
 0x2d4   : > { %v2072_v37 = vcombine.low %v2047_v32, %v2055_v24  ;;  %v2088_v38 = vcombine.low %v2063_v25, %v2071_v33  ;;  %v2073_v6 = vcombine.high %v2047_v32, %v2055_v24  ;;  %v2089_v44 = vcombine.high %v2063_v25, %v2071_v33  ;;  %5840 = vset.pattern.permute.xlu1 %v6291_v50 }
 0x2d5   : > { %v2036_v34 = vcombine.low %v2012_v27, %v2028_v28  ;;  %v2037_v35 = vcombine.high %v2012_v27, %v2028_v28  ;;  %v2038_v36 = vcombine.low %v2019_v29, %v2035_v30  ;;  %v2039_v39 = vcombine.high %v2019_v29, %v2035_v30 }
 0x2d6   : > { %v2080_v40 = vrot.slane %v2072_v37, %v6903_v22  ;;  %v2096_v41 = vrot.slane %v2088_v38, %v6903_v22  ;;  %v2087_v45 = vrot.slane %v2073_v6, %v6903_v22  ;;  %v2103_v46 = vrot.slane %v2089_v44, %v6903_v22 }
 0x2d7   : > { %5538 = vmatprep.mubr.msk.f32.mxu1 %vm1684_vm2, %v2036_v34  ;;  %v5827_v53 = vpack.i.bf16 %v5404_v52, %v5403_v51 }
 0x2d8   : > { %5539 = vmatmul.mubr.msk.f32.vlgmr.msra.gmra.mxu1 %vm1684_vm2, %v2037_v35  ;;  %v2104_v42 = vcombine.low %v2080_v40, %v2096_v41  ;;  %v2105_v43 = vcombine.high %v2080_v40, %v2096_v41  ;;  %v2106_v31 = vcombine.low %v2087_v45, %v2103_v46  ;;  %v2107_v47 = vcombine.high %v2087_v45, %v2103_v46 }
 0x2d9   : > { %5541 = vmatprep.mubr.msk.f32.mxu1 %vm1684_vm2, %v2038_v36  ;;  %5828 = vxpose.xlu0.b32.start.end [1/1] (short) (narrow) %v5827_v53, 16 }
 0x2dc   : > { %5542 = vmatmul.mubr.msk.f32.gmra.mxu1 %vm1684_vm2, %v2039_v39 }
 0x2dd   : > { %5544 = vmatprep.mubr.msk.f32.mxu1 %vm1684_vm2, %v2104_v42 }
 0x2e0   : > { %5545 = vmatmul.mubr.msk.f32.gmra.mxu1 %vm1684_vm2, %v2105_v43 }
 0x2e1   : > { %5547 = vmatprep.mubr.msk.f32.mxu1 %vm1684_vm2, %v2106_v31 }
 0x2e4   : > { %5548 = vmatmul.mubr.msk.f32.gmra.mxu1 %vm1684_vm2, %v2107_v47 }
 0x2e5   : > { %5557 = vmatprep.mubr.msk.f32.mxu1 %vm1684_vm2, %v2240_v48 }
 0x302   : > { %5839 = vset.pattern.permute.xlu0 %v6291_v50 }
 0x355   : > { %v5829_v1 = vpop.trf.xlu0 }
 0x356   : > { %v5830_v29 = vunpack.i.l.bf16 %v5829_v1  ;;  %v5833_v45 = vunpack.i.h.bf16 %v5829_v1 }
 0x359   : > { %v5834_v9 = vpop.trf.xlu0 }
 0x35a   : > { %v5835_v26 = vunpack.i.l.bf16 %v5834_v9  ;;  %v5838_v31 = vunpack.i.h.bf16 %v5834_v9 }
 0x384   : > { %v5526_v54 = vpop.f32.mrf.mxu0 }
 0x385   : > { %5555 = vmatprep.subr.msk.mxu1 %vm1684_vm2, %v5526_v54 }
 0x386   : > { %v1775_v55 = vpop.f32.mrf.mxu0  ;;  %5556 = vmatpush3.xpose.msk.msra.mxu1 %vm1684_vm2, %v5526_v54 }
 0x387   : > { %5550 = vmatprep.subr.msk.mxu0 %vm1684_vm2, %v1775_v55 }
 0x388   : > { %v5529_v58 = vpop.f32.mrf.mxu0  ;;  %5551 = vmatpush3.xpose.msk.msra.mxu0 %vm1684_vm2, %v1775_v55 }
 0x389   : > { %5558 = vmatmul.mubr.msk.f32.vlgmr.msra.gmra.mxu1 %vm1684_vm2, %v2241_v56  ;;  %5565 = vmatprep.subr.msk.mxu1 %vm1684_vm2, %v5529_v58 }
 0x38a   : > { %v1785_v61 = vpop.f32.mrf.mxu0  ;;  %5566 = vmatpush3.xpose.msk.msra.mxu1 %vm1684_vm2, %v5529_v58  ;;  %5567 = vmatprep.mubr.msk.f32.mxu1 %vm1684_vm2, %v2244_v57 }
 0x38b   : > { %5553 = vmatmul.mubr.msk.f32.vlgmr.msra.gmra.mxu0 %vm1684_vm2, %v2239_v59  ;;  %5560 = vmatprep.subr.msk.mxu0 %vm1684_vm2, %v1785_v61 }
 0x38c   : > { %v5532_v63 = vpop.f32.mrf.mxu0  ;;  %5561 = vmatpush3.xpose.msk.msra.mxu0 %vm1684_vm2, %v1785_v61  ;;  %5562 = vmatprep.mubr.msk.f32.mxu0 %vm1684_vm2, %v2242_v60 }
 0x38d   : > { %5568 = vmatmul.mubr.msk.f32.vlgmr.msra.gmra.mxu1 %vm1684_vm2, %v2245_v62  ;;  %5575 = vmatprep.subr.msk.mxu1 %vm1684_vm2, %v5532_v63 }
 0x38e   : > { %v1795_v2 = vpop.f32.mrf.mxu0  ;;  %5576 = vmatpush3.xpose.msk.msra.mxu1 %vm1684_vm2, %v5532_v63  ;;  %5577 = vmatprep.mubr.msk.f32.mxu1 %vm1684_vm2, %v2248_v7 }
 0x38f   : > { %5563 = vmatmul.mubr.msk.f32.vlgmr.msra.gmra.mxu0 %vm1684_vm2, %v2243_v0  ;;  %5570 = vmatprep.subr.msk.mxu0 %vm1684_vm2, %v1795_v2 }
 0x390   : > { %v5535_v3 = vpop.f32.mrf.mxu0  ;;  %5571 = vmatpush3.xpose.msk.msra.mxu0 %vm1684_vm2, %v1795_v2  ;;  %5572 = vmatprep.mubr.msk.f32.mxu0 %vm1684_vm2, %v2246_v5 }
 0x391   : > { %5578 = vmatmul.mubr.msk.f32.vlgmr.msra.gmra.mxu1 %vm1684_vm2, %v2249_v11  ;;  %5585 = vmatprep.subr.msk.mxu1 %vm1684_vm2, %v5535_v3 }
 0x392   : > { %v1805_v14 = vpop.f32.mrf.mxu0  ;;  %5586 = vmatpush3.xpose.msk.msra.mxu1 %vm1684_vm2, %v5535_v3  ;;  %5587 = vmatprep.mubr.msk.f32.mxu1 %vm1684_vm2, %v2252_v8 }
 0x393   : > { %5573 = vmatmul.mubr.msk.f32.vlgmr.msra.gmra.mxu0 %vm1684_vm2, %v2247_v12  ;;  %5580 = vmatprep.subr.msk.mxu0 %vm1684_vm2, %v1805_v14 }
 0x394   : > { %5581 = vmatpush3.xpose.msk.msra.mxu0 %vm1684_vm2, %v1805_v14  ;;  %5582 = vmatprep.mubr.msk.f32.mxu0 %vm1684_vm2, %v2250_v13 }
 0x395   : > { %5588 = vmatmul.mubr.msk.f32.vlgmr.msra.gmra.mxu1 %vm1684_vm2, %v2253_v15 }
 0x397   : > { %5583 = vmatmul.mubr.msk.f32.vlgmr.msra.gmra.mxu0 %vm1684_vm2, %v2251_v16 }
 0x398   : > { %v5540_v4 = vpop.f32.mrf.mxu1 }
 0x399   : > { %5595 = vmatprep.subr.mxu1 %v5540_v4 }
 0x39a   : > { %v2199_v10 = vpop.f32.mrf.mxu1  ;;  %5596 = vmatpush3.msra.mxu1 %v5540_v4  ;;  %v7101_v4 = vld [vmem:[#allocation3 + $0x18] sm:$0xff] }
 0x39b   : > { %5590 = vmatprep.subr.mxu0 %v2199_v10 }
 0x39c   : > { %v7023_v18 = vpop.f32.mrf.mxu1  ;;  %5591 = vmatpush3.msra.mxu0 %v2199_v10  ;;  %v7103_v10 = vld [vmem:[#allocation3 + $0x10] sm:$0xff] }
 0x39d   : > { %5605 = vmatprep.subr.mxu1 %v7023_v18 }
 0x39e   : > { %v7026_v19 = vpop.f32.mrf.mxu1 }
 0x39f   : > { %5600 = vmatprep.subr.mxu0 %v7026_v19 }
 0x3a0   : > { %v7029_v21 = vpop.f32.mrf.mxu1 }
 0x3a2   : > { %v7031_v20 = vpop.f32.mrf.mxu1 }
 0x3a4   : > { %v7033_v23 = vpop.f32.mrf.mxu1 }
 0x3a6   : > { %v7035_v27 = vpop.f32.mrf.mxu1 }
 0x449   : > { %v5559_v28 = vpop.f32.mrf.mxu1 }
 0x44a   : > { %v7037_v30 = vadd.f32 %v5835_v26, %v5559_v28 }
 0x44b   : > { %v5554_v32 = vpop.f32.mrf.mxu0  ;;  %v2413_v24 = vpop.f32.mrf.mxu1 }
 0x44c   : > { %v7039_v25 = vadd.f32 %v5835_v26, %v5554_v32  ;;  %v7041_v33 = vadd.f32 %v5830_v29, %v2413_v24  ;;  %v3035_v34 = vsel %vm1684_vm2, %v7037_v30, -inf }
 0x44d   : > { %v2329_v35 = vpop.f32.mrf.mxu0  ;;  %v5569_v36 = vpop.f32.mrf.mxu1  ;;  %3036 = vmax.xlane.f32.xlu1 %v3035_v34 }
 0x44e   : > { %v3032_v37 = vsel %vm1684_vm2, %v7041_v33, -inf  ;;  %v7047_v39 = vadd.f32 %v5830_v29, %v2329_v35  ;;  %v3029_v40 = vsel %vm1684_vm2, %v7039_v25, -inf  ;;  %v7051_v43 = vadd.f32 %v5835_v26, %v5569_v36  ;;  %v7118_v35 = vld [vmem:[#allocation3] sm:$0xff] }
 0x44f   : > { %v2581_v38 = vpop.f32.mrf.mxu1  ;;  %3033 = vmax.xlane.f32.xlu0 %v3032_v37  ;;  %v5564_v51 = vpop.f32.mrf.mxu0 }
 0x450   : > { %v3026_v6 = vsel %vm1684_vm2, %v7047_v39, -inf  ;;  %v7055_v47 = vadd.f32 %v5830_v29, %v2581_v38  ;;  %v3047_v49 = vsel %vm1684_vm2, %v7051_v43, -inf  ;;  %v7065_v54 = vadd.f32 %v5835_v26, %v5564_v51  ;;  %v7126_v38 = vld [vmem:[#allocation3 + $0x38] sm:$0xff] }
 0x451   : > { %v5579_v41 = vpop.f32.mrf.mxu1  ;;  %3030 = vmax.xlane.f32.xlu1 %v3029_v40  ;;  %v2497_v56 = vpop.f32.mrf.mxu0 }
 0x452   : > { %v3044_v55 = vsel %vm1684_vm2, %v7055_v47, -inf  ;;  %v7071_v58 = vadd.f32 %v5830_v29, %v2497_v56  ;;  %v3041_v59 = vsel %vm1684_vm2, %v7065_v54, -inf  ;;  %v7075_v60 = vadd.f32 %v5838_v31, %v5579_v41  ;;  %v7106_v29 = vld [vmem:[#allocation3 + $0x8] sm:$0xff]  ;;  %v7131_v41 = vld [vmem:[#allocation3 + $0x70] sm:$0xff] }
 0x453   : > { %v2749_v42 = vpop.f32.mrf.mxu1  ;;  %v5574_v63 = vpop.f32.mrf.mxu0 }
 0x454   : > { %v3038_v61 = vsel %vm1684_vm2, %v7071_v58, -inf  ;;  %v7079_v62 = vadd.f32 %v5833_v45, %v2749_v42  ;;  %v3059_v7 = vsel %vm1684_vm2, %v7075_v60, -inf  ;;  %v7083_v0 = vadd.f32 %v5838_v31, %v5574_v63 }
 0x455   : > { %v5589_v44 = vpop.f32.mrf.mxu1  ;;  %3027 = vmax.xlane.f32.xlu1 %v3026_v6  ;;  %v2665_v2 = vpop.f32.mrf.mxu0 }
 0x456   : > { %v7061_v52 = vadd.f32 %v5838_v31, %v5589_v44  ;;  %v3056_v5 = vsel %vm1684_vm2, %v7079_v62, -inf  ;;  %v7087_v11 = vadd.f32 %v5833_v45, %v2665_v2  ;;  %v3053_v8 = vsel %vm1684_vm2, %v7083_v0, -inf  ;;  %v3016_v44 = vld [vmem:[#allocation3 + $0x30] sm:$0xff] }
 0x457   : > { %v2917_v46 = vpop.f32.mrf.mxu1  ;;  %v5584_v3 = vpop.f32.mrf.mxu0 }
 0x458   : > { %v7057_v48 = vadd.f32 %v5833_v45, %v2917_v46  ;;  %v3071_v57 = vsel %vm1684_vm2, %v7061_v52, -inf  ;;  %v7091_v12 = vadd.f32 %v5838_v31, %v5584_v3  ;;  %v3050_v13 = vsel %vm1684_vm2, %v7087_v11, -inf  ;;  %v7142_v31 = vld [vmem:[#allocation3 + $0x78] sm:$0xff]  ;;  %v3020_v3 = vld [vmem:[#allocation3 + $0x50] sm:$0xff] }
 0x459   : > { %3048 = vmax.xlane.f32.xlu1 %v3047_v49  ;;  %v2833_v14 = vpop.f32.mrf.mxu0 }
 0x45a   : > { %v3068_v53 = vsel %vm1684_vm2, %v7057_v48, -inf  ;;  %v7095_v15 = vadd.f32 %v5833_v45, %v2833_v14  ;;  %v3065_v16 = vsel %vm1684_vm2, %v7091_v12, -inf }
 0x45b   : > { %3069 = vmax.xlane.f32.xlu0 %v3068_v53  ;;  %v7148_v53 = vld [vmem:[#allocation3 + $0x28] sm:$0xff] }
 0x45c   : > { %v3062_v1 = vsel %vm1684_vm2, %v7095_v15, -inf }
 0x45d   : > { %3045 = vmax.xlane.f32.xlu1 %v3044_v55 }
 0x45f   : > { %3072 = vmax.xlane.f32.xlu0 %v3071_v57 }
 0x461   : > { %3042 = vmax.xlane.f32.xlu1 %v3041_v59 }
 0x465   : > { %3039 = vmax.xlane.f32.xlu1 %v3038_v61  ;;  %v3014_v61 = vld [vmem:[#allocation3 + $0x20] sm:$0xff] }
 0x469   : > { %3060 = vmax.xlane.f32.xlu1 %v3059_v7 }
 0x46d   : > { %3057 = vmax.xlane.f32.xlu1 %v3056_v5  ;;  %v7160_v5 = vld [vmem:[#allocation3 + $0x58] sm:$0xff] }
 0x471   : > { %3054 = vmax.xlane.f32.xlu1 %v3053_v8 }
 0x475   : > { %3051 = vmax.xlane.f32.xlu1 %v3050_v13 }
 0x479   : > { %3066 = vmax.xlane.f32.xlu1 %v3065_v16 }
 0x47d   : > { %3063 = vmax.xlane.f32.xlu1 %v3062_v1  ;;  %v7166_v1 = vld [vmem:[#allocation3 + $0x48] sm:$0xff] }
 0x4d6   : > { %v3037_v9 = vpop.xlane.xlu1 %3036 }
 0x4d7   : > { %v3077_v26 = vmax.f32 %v7101_v4, %v3037_v9 }
 0x4d8   : > { %v3034_v28 = vpop.xlane.xlu0 %3033 }
 0x4d9   : > { %4174 = vst.msk [vmem:[#allocation3 + $0x18] sm:$0xff] %vm3362_vm3, %v3077_v26  ;;  %v7110_v32 = vmax.f32 %v7103_v10, %v3034_v28  ;;  %3155 = vperm.xlu1 %5840, %v3077_v26   ;;  %v3093_v14 = vsub.f32 %v7101_v4, %v3077_v26 }
 0x4da   : > { %v3031_v24 = vpop.xlane.xlu1 %3030 }
 0x4db   : > { %4173 = vst.msk [vmem:[#allocation3 + $0x10] sm:$0xff] %vm3362_vm3, %v7110_v32  ;;  %v7115_v34 = vmax.f32 %v7106_v29, %v3031_v24  ;;  %3150 = vperm.xlu0 %5839, %v7110_v32   ;;  %v3092_v9 = vsub.f32 %v7103_v10, %v7110_v32  ;;  %v3112_v24 = vmul.f32 1.442695, %v3093_v14  ;;  %v3023_v32 = vld [vmem:[#allocation3 + $0x68] sm:$0xff] }
 0x4dd   : > { %4172 = vst.msk [vmem:[#allocation3 + $0x8] sm:$0xff] %vm3362_vm3, %v7115_v34  ;;  %3145 = vperm.xlu1 %5840, %v7115_v34   ;;  %v3110_v4 = vmul.f32 1.442695, %v3092_v9  ;;  %5841 = vpow2.f32 %v3112_v24 }
 0x4de   : > { %v3028_v36 = vpop.xlane.xlu1 %3027 }
 0x4df   : > { %v7124_v37 = vmax.f32 %v7118_v35, %v3028_v36  ;;  %v3091_v36 = vsub.f32 %v7106_v29, %v7115_v34  ;;  %5843 = vpow2.f32 %v3110_v4 }
 0x4e1   : > { %4171 = vst.msk [vmem:[#allocation3] sm:$0xff] %vm3362_vm3, %v7124_v37  ;;  %3140 = vperm.xlu1 %5840, %v7124_v37   ;;  %v3090_v26 = vsub.f32 %v7118_v35, %v7124_v37  ;;  %v3022_v35 = vld [vmem:[#allocation3 + $0x60] sm:$0xff] }
 0x4e2   : > { %v3049_v40 = vpop.xlane.xlu1 %3048 }
 0x4e3   : > { %v7134_v42 = vmax.f32 %v7126_v38, %v3049_v40  ;;  %v3106_v29 = vmul.f32 1.442695, %v3090_v26 }
 0x4e4   : > { %v3070_v6 = vpop.xlane.xlu0 %3069 }
 0x4e5   : > { %4178 = vst.msk [vmem:[#allocation3 + $0x38] sm:$0xff] %vm3362_vm3, %v7134_v42  ;;  %v7139_v45 = vmax.f32 %v7131_v41, %v3070_v6  ;;  %3175 = vperm.xlu1 %5840, %v7134_v42   ;;  %v3018_v6 = vld [vmem:[#allocation3 + $0x40] sm:$0xff]  ;;  %v3097_v34 = vsub.f32 %v7126_v38, %v7134_v42 }
 0x4e6   : > { %v3046_v46 = vpop.xlane.xlu1 %3045 }
 0x4e7   : > { %v3104_v49 = vsub.f32 %v7131_v41, %v7139_v45  ;;  %4185 = vst.msk [vmem:[#allocation3 + $0x70] sm:$0xff] %vm3362_vm3, %v7139_v45  ;;  %v3080_v50 = vmax.f32 %v3016_v44, %v3046_v46  ;;  %v3120_v37 = vmul.f32 1.442695, %v3097_v34 }
 0x4e8   : > { %v3073_v51 = vpop.xlane.xlu0 %3072 }
 0x4e9   : > { %4177 = vst.msk [vmem:[#allocation3 + $0x30] sm:$0xff] %vm3362_vm3, %v3080_v50  ;;  %v7152_v55 = vmax.f32 %v7142_v31, %v3073_v51  ;;  %3170 = vperm.xlu1 %5840, %v3080_v50   ;;  %v3108_v51 = vmul.f32 1.442695, %v3091_v36 }
 0x4ea   : > { %v3043_v56 = vpop.xlane.xlu1 %3042  ;;  %v7186_v36 = vpop.eup %5841 }
 0x4eb   : > { %v3105_v57 = vsub.f32 %v7142_v31, %v7152_v55  ;;  %4186 = vst.msk [vmem:[#allocation3 + $0x78] sm:$0xff] %vm3362_vm3, %v7152_v55  ;;  %v3079_v59 = vmax.f32 %v7148_v53, %v3043_v56  ;;  %v3096_v56 = vsub.f32 %v3016_v44, %v3080_v50  ;;  %5845 = vpow2.f32 %v3108_v51 }
 0x4ec   : > { %5847 = vpow2.f32 %v3106_v29  ;;  %v3134_v31 = vmul.f32 1.442695, %v3104_v49 }
 0x4ed   : > { %4176 = vst.msk [vmem:[#allocation3 + $0x28] sm:$0xff] %vm3362_vm3, %v3079_v59  ;;  %3165 = vperm.xlu1 %5840, %v3079_v59   ;;  %v3095_v44 = vsub.f32 %v7148_v53, %v3079_v59 }
 0x4ee   : > { %v3040_v7 = vpop.xlane.xlu1 %3039 }
 0x4ef   : > { %v3078_v63 = vmax.f32 %v3014_v61, %v3040_v7  ;;  %v3116_v38 = vmul.f32 1.442695, %v3095_v44 }
 0x4f1   : > { %4175 = vst.msk [vmem:[#allocation3 + $0x20] sm:$0xff] %vm3362_vm3, %v3078_v63  ;;  %3160 = vperm.xlu1 %5840, %v3078_v63  }
 0x4f2   : > { %v3061_v2 = vpop.xlane.xlu1 %3060 }
 0x4f3   : > { %v3085_v8 = vmax.f32 %v7160_v5, %v3061_v2  ;;  %v3118_v2 = vmul.f32 1.442695, %v3096_v56 }
 0x4f5   : > { %4182 = vst.msk [vmem:[#allocation3 + $0x58] sm:$0xff] %vm3362_vm3, %v3085_v8  ;;  %3195 = vperm.xlu1 %5840, %v3085_v8   ;;  %5849 = vpow2.f32 %v3118_v2  ;;  %v3101_v42 = vsub.f32 %v7160_v5, %v3085_v8 }
 0x4f6   : > { %v3058_v13 = vpop.xlane.xlu1 %3057  ;;  %5851 = vpow2.f32 %v3120_v37 }
 0x4f7   : > { %v3084_v16 = vmax.f32 %v3020_v3, %v3058_v13  ;;  %v3094_v13 = vsub.f32 %v3014_v61, %v3078_v63  ;;  %v3128_v53 = vmul.f32 1.442695, %v3101_v42 }
 0x4f9   : > { %4181 = vst.msk [vmem:[#allocation3 + $0x50] sm:$0xff] %vm3362_vm3, %v3084_v16  ;;  %3190 = vperm.xlu1 %5840, %v3084_v16   ;;  %v3114_v9 = vmul.f32 1.442695, %v3094_v13 }
 0x4fa   : > { %v3055_v28 = vpop.xlane.xlu1 %3054 }
 0x4fb   : > { %v3083_v40 = vmax.f32 %v7166_v1, %v3055_v28  ;;  %v3100_v28 = vsub.f32 %v3020_v3, %v3084_v16  ;;  %5853 = vpow2.f32 %v3114_v9  ;;  %v7190_v3 = vpop.eup %5843 }
 0x4fc   : > { %5855 = vpow2.f32 %v3116_v38  ;;  %v7192_v26 = vpop.eup %5845 }
 0x4fd   : > { %4180 = vst.msk [vmem:[#allocation3 + $0x48] sm:$0xff] %vm3362_vm3, %v3083_v40  ;;  %3185 = vperm.xlu0 %5839, %v3083_v40   ;;  %v3126_v61 = vmul.f32 1.442695, %v3100_v28  ;;  %v3099_v59 = vsub.f32 %v7166_v1, %v3083_v40  ;;  %v7196_v8 = vpop.eup %5847 }
 0x4fe   : > { %v3052_v46 = vpop.xlane.xlu1 %3051 }
 0x4ff   : > { %v3082_v10 = vmax.f32 %v3018_v6, %v3052_v46  ;;  %5857 = vpow2.f32 %v3126_v61  ;;  %v3124_v5 = vmul.f32 1.442695, %v3099_v59 }
 0x500   : > { %5859 = vpow2.f32 %v3128_v53 }
 0x501   : > { %4179 = vst.msk [vmem:[#allocation3 + $0x40] sm:$0xff] %vm3362_vm3, %v3082_v10  ;;  %3180 = vperm.xlu1 %5840, %v3082_v10   ;;  %v3098_v63 = vsub.f32 %v3018_v6, %v3082_v10 }
 0x502   : > { %v3067_v7 = vpop.xlane.xlu1 %3066  ;;  %v7198_v51 = vpop.eup %5849 }
 0x503   : > { %v3087_v14 = vmax.f32 %v3023_v32, %v3067_v7  ;;  %v3122_v16 = vmul.f32 1.442695, %v3098_v63  ;;  %v7202_v1 = vpop.eup %5851 }
 0x505   : > { %4184 = vst.msk [vmem:[#allocation3 + $0x68] sm:$0xff] %vm3362_vm3, %v3087_v14  ;;  %3210 = vperm.xlu1 %5840, %v7139_v45   ;;  %5861 = vpow2.f32 %v3122_v16  ;;  %v3103_v6 = vsub.f32 %v3023_v32, %v3087_v14 }
 0x506   : > { %v3064_v50 = vpop.xlane.xlu1 %3063  ;;  %5863 = vpow2.f32 %v3124_v5 }
 0x507   : > { %v3086_v24 = vmax.f32 %v3022_v35, %v3064_v50  ;;  %v3132_v40 = vmul.f32 1.442695, %v3103_v6 }
 0x508   : > { %v7204_v56 = vpop.eup %5853 }
 0x509   : > { %4183 = vst.msk [vmem:[#allocation3 + $0x60] sm:$0xff] %vm3362_vm3, %v3086_v24  ;;  %3215 = vperm.xlu1 %5840, %v7152_v55   ;;  %3200 = vperm.xlu0 %5839, %v3086_v24   ;;  %v3102_v4 = vsub.f32 %v3022_v35, %v3086_v24  ;;  %v7208_v10 = vpop.eup %5855 }
 0x50b   : > { %v3130_v46 = vmul.f32 1.442695, %v3102_v4 }
 0x50c   : > { %v7210_v32 = vpop.eup %5857 }
 0x50d   : > { %3412 = vperm.xlu1 %5840, %v7186_v36   ;;  %3205 = vperm.xlu0 %5839, %v3087_v14   ;;  %5865 = vpow2.f32 %v3130_v46  ;;  %v7214_v29 = vpop.eup %5859 }
 0x50e   : > { %5867 = vpow2.f32 %v3132_v40 }
 0x511   : > { %3407 = vperm.xlu1 %5840, %v7190_v3   ;;  %3402 = vperm.xlu0 %5839, %v7192_v26  }
 0x512   : > { %v7216_v34 = vpop.eup %5861 }
 0x513   : > { %v7220_v7 = vpop.eup %5863 }
 0x515   : > { %3397 = vperm.xlu1 %5840, %v7196_v8   ;;  %3427 = vperm.xlu0 %5839, %v7198_v51  }
 0x519   : > { %3432 = vperm.xlu1 %5840, %v7202_v1   ;;  %3417 = vperm.xlu0 %5839, %v7204_v56  }
 0x51a   : > { %v7222_v2 = vpop.eup %5865 }
 0x51b   : > { %v7226_v13 = vpop.eup %5867 }
 0x51d   : > { %3422 = vperm.xlu1 %5840, %v7208_v10   ;;  %3447 = vperm.xlu0 %5839, %v7210_v32  }
 0x521   : > { %3452 = vperm.xlu1 %5840, %v7214_v29   ;;  %3437 = vperm.xlu0 %5839, %v7216_v34  }
 0x525   : > { %3442 = vperm.xlu1 %5840, %v7220_v7   ;;  %3457 = vperm.xlu0 %5839, %v7222_v2  }
 0x529   : > { %3462 = vperm.xlu1 %5840, %v7226_v13  }
 0x554   : > { %v3156_v14 = vpop.permute.xlu1 %3155 }
 0x555   : > { %v3221_v35 = vsub.f32 %v7037_v30, %v3156_v14 }
 0x556   : > { %v3151_v37 = vpop.permute.xlu0 %3150 }
 0x557   : > { %v3240_v44 = vmul.f32 1.442695, %v3221_v35  ;;  %v3220_v50 = vsub.f32 %v7041_v33, %v3151_v37 }
 0x558   : > { %v3146_v9 = vpop.permute.xlu1 %3145 }
 0x559   : > { %5869 = vpow2.f32 %v3240_v44  ;;  %v3238_v28 = vmul.f32 1.442695, %v3220_v50  ;;  %v3219_v24 = vsub.f32 %v7039_v25, %v3146_v9 }
 0x55b   : > { %5871 = vpow2.f32 %v3238_v28  ;;  %v3236_v38 = vmul.f32 1.442695, %v3219_v24 }
 0x55c   : > { %v3141_v42 = vpop.permute.xlu1 %3140 }
 0x55d   : > { %5873 = vpow2.f32 %v3236_v38  ;;  %v3218_v61 = vsub.f32 %v7047_v39, %v3141_v42 }
 0x55f   : > { %v3234_v63 = vmul.f32 1.442695, %v3218_v61 }
 0x560   : > { %v3176_v53 = vpop.permute.xlu1 %3175 }
 0x561   : > { %5875 = vpow2.f32 %v3234_v63  ;;  %v3225_v30 = vsub.f32 %v7051_v43, %v3176_v53 }
 0x563   : > { %v3248_v59 = vmul.f32 1.442695, %v3225_v30 }
 0x564   : > { %v3171_v16 = vpop.permute.xlu1 %3170 }
 0x565   : > { %5877 = vpow2.f32 %v3248_v59  ;;  %v3224_v33 = vsub.f32 %v7055_v47, %v3171_v16 }
 0x566   : > { %v5870_v4 = vpop.eup %5869 }
 0x567   : > { %v3246_v5 = vmul.f32 1.442695, %v3224_v33  ;;  %v3307_v25 = vsel %vm1684_vm2, %v5870_v4, 0.0 }
 0x568   : > { %v5872_v6 = vpop.eup %5871  ;;  %3308 = vadd.xlane.f32.xlu0 %v3307_v25  ;;  %v3166_v46 = vpop.permute.xlu1 %3165 }
 0x569   : > { %5879 = vpow2.f32 %v3246_v5  ;;  %v3223_v39 = vsub.f32 %v7065_v54, %v3166_v46  ;;  %5597 = vmatprep.mubr.msk.f32.mxu1 %vm1684_vm2, %v5872_v6  ;;  %v3304_v47 = vsel %vm1684_vm2, %v5872_v6, 0.0 }
 0x56a   : > { %v5874_v40 = vpop.eup %5873  ;;  %5598 = vmatmul.mubr.msk.f32.vlgmr.msra.gmra.mxu1 %vm1684_vm2, %v5870_v4 }
 0x56b   : > { %v3244_v43 = vmul.f32 1.442695, %v3223_v39  ;;  %5606 = vmatpush3.msra.mxu1 %v7023_v18  ;;  %v3301_v14 = vsel %vm1684_vm2, %v5874_v40, 0.0 }
 0x56c   : > { %5615 = vmatprep.subr.mxu1 %v7029_v21  ;;  %3305 = vadd.xlane.f32.xlu0 %v3304_v47  ;;  %v3161_v35 = vpop.permute.xlu1 %3160 }
 0x56d   : > { %5881 = vpow2.f32 %v3244_v43  ;;  %3302 = vadd.xlane.f32.xlu1 %v3301_v14  ;;  %v3222_v54 = vsub.f32 %v7071_v58, %v3161_v35 }
 0x56e   : > { %v5876_v37 = vpop.eup %5875 }
 0x56f   : > { %v3242_v44 = vmul.f32 1.442695, %v3222_v54  ;;  %5592 = vmatprep.mubr.msk.f32.mxu0 %vm1684_vm2, %v5876_v37  ;;  %v3298_v50 = vsel %vm1684_vm2, %v5876_v37, 0.0 }
 0x570   : > { %5593 = vmatmul.mubr.msk.f32.vlgmr.msra.gmra.mxu0 %vm1684_vm2, %v5874_v40  ;;  %3299 = vadd.xlane.f32.xlu0 %v3298_v50  ;;  %v3196_v18 = vpop.permute.xlu1 %3195 }
 0x571   : > { %5883 = vpow2.f32 %v3242_v44  ;;  %5601 = vmatpush3.msra.mxu0 %v7026_v19  ;;  %v3229_v9 = vsub.f32 %v7075_v60, %v3196_v18 }
 0x572   : > { %v5878_v28 = vpop.eup %5877  ;;  %5610 = vmatprep.subr.mxu0 %v7031_v20 }
 0x573   : > { %v3256_v24 = vmul.f32 1.442695, %v3229_v9  ;;  %v3319_v58 = vsel %vm1684_vm2, %v5878_v28, 0.0 }
 0x574   : > { %3320 = vadd.xlane.f32.xlu0 %v3319_v58  ;;  %v3191_v38 = vpop.permute.xlu1 %3190 }
 0x575   : > { %5885 = vpow2.f32 %v3256_v24  ;;  %v3228_v42 = vsub.f32 %v7079_v62, %v3191_v38  ;;  %v3136_v24 = vmul.f32 1.442695, %v3105_v57 }
 0x576   : > { %v5880_v61 = vpop.eup %5879 }
 0x577   : > { %v3254_v63 = vmul.f32 1.442695, %v3228_v42  ;;  %5607 = vmatprep.mubr.msk.f32.mxu1 %vm1684_vm2, %v5880_v61  ;;  %v3316_v53 = vsel %vm1684_vm2, %v5880_v61, 0.0 }
 0x578   : > { %v3186_v19 = vpop.permute.xlu0 %3185  ;;  %5608 = vmatmul.mubr.msk.f32.vlgmr.msra.gmra.mxu1 %vm1684_vm2, %v5878_v28  ;;  %3317 = vadd.xlane.f32.xlu1 %v3316_v53 }
 0x579   : > { %5887 = vpow2.f32 %v3254_v63  ;;  %v3227_v60 = vsub.f32 %v7083_v0, %v3186_v19  ;;  %5616 = vmatpush3.msra.mxu1 %v7029_v21 }
 0x57a   : > { %v5882_v30 = vpop.eup %5881  ;;  %5625 = vmatprep.subr.mxu1 %v7033_v23 }
 0x57b   : > { %v3252_v59 = vmul.f32 1.442695, %v3227_v60  ;;  %v3313_v62 = vsel %vm1684_vm2, %v5882_v30, 0.0 }
 0x57c   : > { %3314 = vadd.xlane.f32.xlu0 %v3313_v62  ;;  %v3181_v16 = vpop.permute.xlu1 %3180 }
 0x57d   : > { %5889 = vpow2.f32 %v3252_v59  ;;  %v3226_v33 = vsub.f32 %v7087_v11, %v3181_v16 }
 0x57e   : > { %v5884_v4 = vpop.eup %5883 }
 0x57f   : > { %v3250_v5 = vmul.f32 1.442695, %v3226_v33  ;;  %5602 = vmatprep.mubr.msk.f32.mxu0 %vm1684_vm2, %v5884_v4  ;;  %v3310_v25 = vsel %vm1684_vm2, %v5884_v4, 0.0  ;;  %v3269_v4 = vld [vmem:[#allocation4 + $0x18] sm:$0xff] }
 0x580   : > { %5603 = vmatmul.mubr.msk.f32.vlgmr.msra.gmra.mxu0 %vm1684_vm2, %v5882_v30  ;;  %3311 = vadd.xlane.f32.xlu1 %v3310_v25  ;;  %v3211_v21 = vpop.permute.xlu1 %3210 }
 0x581   : > { %5891 = vpow2.f32 %v3250_v5  ;;  %5611 = vmatpush3.msra.mxu0 %v7031_v20  ;;  %v3232_v0 = vsub.f32 %v7057_v48, %v3211_v21  ;;  %v3285_v5 = vmul.f32 %v7186_v36, %v3269_v4  ;;  %v3268_v21 = vld [vmem:[#allocation4 + $0x10] sm:$0xff]  ;;  %v3275_v4 = vld [vmem:[#allocation4 + $0x48] sm:$0xff] }
 0x582   : > { %v5886_v6 = vpop.eup %5885  ;;  %5620 = vmatprep.subr.mxu0 %v7035_v27 }
 0x583   : > { %v3262_v46 = vmul.f32 1.442695, %v3232_v0  ;;  %v3331_v11 = vsel %vm1684_vm2, %v5886_v6, 0.0 }
 0x584   : > { %v3201_v39 = vpop.permute.xlu0 %3200  ;;  %3332 = vadd.xlane.f32.xlu0 %v3331_v11  ;;  %v3216_v40 = vpop.permute.xlu1 %3215  ;;  %v3284_v11 = vmul.f32 %v7190_v3, %v3268_v21  ;;  %v3274_v21 = vld [vmem:[#allocation4 + $0x40] sm:$0xff] }
 0x585   : > { %5893 = vpow2.f32 %v3262_v46  ;;  %v3230_v43 = vsub.f32 %v7095_v15, %v3201_v39  ;;  %v3233_v47 = vsub.f32 %v7061_v52, %v3216_v40  ;;  %v3267_v46 = vld [vmem:[#allocation4 + $0x8] sm:$0xff] }
 0x586   : > { %v5888_v14 = vpop.eup %5887  ;;  %v3283_v40 = vmul.f32 %v7192_v26, %v3267_v46 }
 0x587   : > { %v3258_v35 = vmul.f32 1.442695, %v3230_v43  ;;  %v3264_v54 = vmul.f32 1.442695, %v3233_v47  ;;  %5617 = vmatprep.mubr.msk.f32.mxu1 %vm1684_vm2, %v5888_v14  ;;  %v3328_v20 = vsel %vm1684_vm2, %v5888_v14, 0.0  ;;  %v3266_v43 = vld [vmem:[#allocation4] sm:$0xff] }
 0x588   : > { %v3206_v48 = vpop.permute.xlu0 %3205  ;;  %5618 = vmatmul.mubr.msk.f32.vlgmr.msra.gmra.mxu1 %vm1684_vm2, %v5886_v6  ;;  %3329 = vadd.xlane.f32.xlu1 %v3328_v20  ;;  %v7299_v61 = vpop.permute.xlu1 %3412  ;;  %v3282_v36 = vmul.f32 %v7196_v8, %v3266_v43  ;;  %v3273_v20 = vld [vmem:[#allocation4 + $0x38] sm:$0xff]  ;;  %v3278_v43 = vld [vmem:[#allocation4 + $0x60] sm:$0xff] }
 0x589   : > { %5895 = vpow2.f32 %v3258_v35  ;;  %v3231_v37 = vsub.f32 %v7091_v12, %v3206_v48  ;;  %5626 = vmatpush3.msra.mxu1 %v7033_v23  ;;  %v3289_v3 = vmul.f32 %v7202_v1, %v3273_v20  ;;  %v3279_v20 = vld [vmem:[#allocation4 + $0x68] sm:$0xff] }
 0x58a   : > { %v5890_v44 = vpop.eup %5889  ;;  %5897 = vpow2.f32 %v3264_v54 }
 0x58b   : > { %v3260_v15 = vmul.f32 1.442695, %v3231_v37  ;;  %v3325_v52 = vsel %vm1684_vm2, %v5890_v44, 0.0 }
 0x58c   : > { %3326 = vadd.xlane.f32.xlu0 %v3325_v52  ;;  %v7301_v63 = vpop.permute.xlu1 %3407  ;;  %v7303_v53 = vpop.permute.xlu0 %3402 }
 0x58d   : > { %5899 = vpow2.f32 %v3260_v15 }
 0x58e   : > { %v5892_v50 = vpop.eup %5891  ;;  %5901 = vpow2.f32 %v3136_v24  ;;  %v3277_v24 = vld [vmem:[#allocation4 + $0x58] sm:$0xff] }
 0x58f   : > { %5612 = vmatprep.mubr.msk.f32.mxu0 %vm1684_vm2, %v5892_v50  ;;  %v3322_v18 = vsel %vm1684_vm2, %v5892_v50, 0.0  ;;  %5903 = vpow2.f32 %v3134_v31  ;;  %v3271_v50 = vld [vmem:[#allocation4 + $0x28] sm:$0xff] }
 0x590   : > { %5613 = vmatmul.mubr.msk.f32.vlgmr.msra.gmra.mxu0 %vm1684_vm2, %v5890_v44  ;;  %3323 = vadd.xlane.f32.xlu1 %v3322_v18  ;;  %v7305_v19 = vpop.permute.xlu1 %3397  ;;  %v7307_v60 = vpop.permute.xlu0 %3427  ;;  %v3272_v44 = vld [vmem:[#allocation4 + $0x30] sm:$0xff]  ;;  %v3287_v8 = vmul.f32 %v7208_v10, %v3271_v50  ;;  %v3380_v50 = vld [vmem:[#allocation5 + $0x8] sm:$0xff] }
 0x591   : > { %5621 = vmatpush3.msra.mxu0 %v7035_v27  ;;  %v3288_v15 = vmul.f32 %v7198_v51, %v3272_v44  ;;  %v3293_v51 = vmul.f32 %v7214_v29, %v3277_v24  ;;  %v3290_v29 = vmul.f32 %v7216_v34, %v3274_v21  ;;  %v3385_v24 = vld [vmem:[#allocation5 + $0x30] sm:$0xff] }
 0x592   : > { %v5894_v12 = vpop.eup %5893  ;;  %v3389_v21 = vld [vmem:[#allocation5 + $0x50] sm:$0xff] }
 0x593   : > { %5627 = vmatprep.mubr.msk.f32.mxu1 %vm1684_vm2, %v5894_v12  ;;  %v3340_v23 = vsel %vm1684_vm2, %v5894_v12, 0.0 }
 0x594   : > { %3341 = vadd.xlane.f32.xlu1 %v3340_v23  ;;  %v7309_v41 = vpop.permute.xlu1 %3432  ;;  %v7311_v45 = vpop.permute.xlu0 %3417  ;;  %v3270_v23 = vld [vmem:[#allocation4 + $0x20] sm:$0xff] }
 0x595   : > { %v3286_v1 = vmul.f32 %v7204_v56, %v3270_v23  ;;  %v3291_v56 = vmul.f32 %v7220_v7, %v3275_v4  ;;  %v3294_v7 = vmul.f32 %v7222_v2, %v3278_v43 }
 0x596   : > { %v5896_v9 = vpop.eup %5895 }
 0x597   : > { %v5898_v28 = vpop.eup %5897  ;;  %5622 = vmatprep.mubr.msk.f32.mxu0 %vm1684_vm2, %v5896_v9  ;;  %v3334_v58 = vsel %vm1684_vm2, %v5896_v9, 0.0 }
 0x598   : > { %5628 = vmatmul.mubr.msk.f32.vlgmr.msra.gmra.mxu1 %vm1684_vm2, %v5898_v28  ;;  %3335 = vadd.xlane.f32.xlu1 %v3334_v58  ;;  %v3343_v27 = vsel %vm1684_vm2, %v5898_v28, 0.0  ;;  %v7313_v49 = vpop.permute.xlu1 %3422  ;;  %v7315_v30 = vpop.permute.xlu0 %3447 }
 0x599   : > { %3344 = vadd.xlane.f32.xlu0 %v3343_v27 }
 0x59a   : > { %v5900_v38 = vpop.eup %5899 }
 0x59b   : > { %5623 = vmatmul.mubr.msk.f32.vlgmr.msra.gmra.mxu0 %vm1684_vm2, %v5900_v38  ;;  %v3337_v42 = vsel %vm1684_vm2, %v5900_v38, 0.0  ;;  %v7293_v55 = vpop.eup %5901  ;;  %v3276_v38 = vld [vmem:[#allocation4 + $0x50] sm:$0xff] }
 0x59c   : > { %v7296_v57 = vpop.eup %5903  ;;  %v7317_v59 = vpop.permute.xlu1 %3452  ;;  %v3292_v10 = vmul.f32 %v7210_v32, %v3276_v38 }
 0x59d   : > { %3338 = vadd.xlane.f32.xlu0 %v3337_v42  ;;  %v7319_v62 = vpop.permute.xlu0 %3437 }
 0x5a0   : > { %v7321_v16 = vpop.permute.xlu1 %3442 }
 0x5a1   : > { %v7323_v33 = vpop.permute.xlu0 %3457 }
 0x5a4   : > { %v7326_v0 = vpop.permute.xlu1 %3462 }
 0x5a9   : > { %3472 = vperm.xlu1 %5840, %v7293_v55  }
 0x5b3   : > { %3467 = vperm.xlu0 %5839, %v7296_v57  }
 0x5f1   : > { %v3309_v25 = vpop.xlane.xlu0 %3308 }
 0x5f2   : > { %v3349_v6 = vadd.f32 %v3309_v25, %v3285_v5 }
 0x5f4   : > { %3366 = vst.msk [vmem:[#allocation4 + $0x18] sm:$0xff] %vm3362_vm3, %v3349_v6 }
 0x5f5   : > { %v3306_v39 = vpop.xlane.xlu0 %3305 }
 0x5f6   : > { %v3348_v47 = vadd.f32 %v3306_v39, %v3284_v11  ;;  %v3303_v14 = vpop.xlane.xlu1 %3302  ;;  %v3280_v11 = vld [vmem:[#allocation4 + $0x70] sm:$0xff] }
 0x5f7   : > { %v3347_v35 = vadd.f32 %v3303_v14, %v3283_v40  ;;  %v3296_v32 = vmul.f32 %v7296_v57, %v3280_v11  ;;  %v3281_v14 = vld [vmem:[#allocation4 + $0x78] sm:$0xff]  ;;  %v3295_v57 = vmul.f32 %v7226_v13, %v3279_v20  ;;  %v3476_v13 = vmul.f32 %v7303_v53, %v3380_v50 }
 0x5f8   : > { %3365 = vst.msk [vmem:[#allocation4 + $0x10] sm:$0xff] %vm3362_vm3, %v3348_v47 }
 0x5f9   : > { %3364 = vst.msk [vmem:[#allocation4 + $0x8] sm:$0xff] %vm3362_vm3, %v3347_v35  ;;  %v3300_v54 = vpop.xlane.xlu0 %3299  ;;  %v3297_v35 = vmul.f32 %v7293_v55, %v3281_v14 }
 0x5fa   : > { %v3346_v48 = vadd.f32 %v3300_v54, %v3282_v36 }
 0x5fc   : > { %3363 = vst.msk [vmem:[#allocation4] sm:$0xff] %vm3362_vm3, %v3346_v48 }
 0x5fd   : > { %v3321_v37 = vpop.xlane.xlu0 %3320 }
 0x5fe   : > { %v3353_v26 = vadd.f32 %v3321_v37, %v3289_v3  ;;  %v3382_v3 = vld [vmem:[#allocation5 + $0x18] sm:$0xff] }
 0x600   : > { %3370 = vst.msk [vmem:[#allocation4 + $0x38] sm:$0xff] %vm3362_vm3, %v3353_v26  ;;  %v3381_v26 = vld [vmem:[#allocation5 + $0x10] sm:$0xff] }
 0x601   : > { %v3318_v52 = vpop.xlane.xlu1 %3317  ;;  %v3477_v55 = vmul.f32 %v7301_v63, %v3381_v26  ;;  %v3386_v63 = vld [vmem:[#allocation5 + $0x38] sm:$0xff] }
 0x602   : > { %v3352_v18 = vadd.f32 %v3318_v52, %v3288_v15  ;;  %v3478_v15 = vmul.f32 %v7299_v61, %v3382_v3 }
 0x604   : > { %3369 = vst.msk [vmem:[#allocation4 + $0x30] sm:$0xff] %vm3362_vm3, %v3352_v18 }
 0x605   : > { %v3315_v12 = vpop.xlane.xlu0 %3314 }
 0x606   : > { %v3351_v9 = vadd.f32 %v3315_v12, %v3287_v8  ;;  %v3379_v12 = vld [vmem:[#allocation5] sm:$0xff] }
 0x608   : > { %3368 = vst.msk [vmem:[#allocation4 + $0x28] sm:$0xff] %vm3362_vm3, %v3351_v9  ;;  %v3475_v9 = vmul.f32 %v7305_v19, %v3379_v12  ;;  %v3384_v19 = vld [vmem:[#allocation5 + $0x28] sm:$0xff] }
 0x609   : > { %v3312_v28 = vpop.xlane.xlu1 %3311 }
 0x60a   : > { %v3350_v58 = vadd.f32 %v3312_v28, %v3286_v1 }
 0x60c   : > { %3367 = vst.msk [vmem:[#allocation4 + $0x20] sm:$0xff] %vm3362_vm3, %v3350_v58  ;;  %v3482_v58 = vmul.f32 %v7309_v41, %v3386_v63 }
 0x60d   : > { %v3333_v27 = vpop.xlane.xlu0 %3332 }
 0x60e   : > { %v3357_v42 = vadd.f32 %v3333_v27, %v3293_v51  ;;  %v3481_v27 = vmul.f32 %v7307_v60, %v3385_v24  ;;  %v3390_v60 = vld [vmem:[#allocation5 + $0x58] sm:$0xff] }
 0x610   : > { %3374 = vst.msk [vmem:[#allocation4 + $0x58] sm:$0xff] %vm3362_vm3, %v3357_v42 }
 0x611   : > { %v3330_v31 = vpop.xlane.xlu1 %3329 }
 0x612   : > { %v3356_v5 = vadd.f32 %v3330_v31, %v3292_v10  ;;  %v3383_v10 = vld [vmem:[#allocation5 + $0x20] sm:$0xff]  ;;  %v3480_v31 = vmul.f32 %v7313_v49, %v3384_v19 }
 0x614   : > { %3373 = vst.msk [vmem:[#allocation4 + $0x50] sm:$0xff] %vm3362_vm3, %v3356_v5  ;;  %v3479_v5 = vmul.f32 %v7311_v45, %v3383_v10  ;;  %v3388_v45 = vld [vmem:[#allocation5 + $0x48] sm:$0xff] }
 0x615   : > { %v3327_v25 = vpop.xlane.xlu0 %3326 }
 0x616   : > { %v3355_v6 = vadd.f32 %v3327_v25, %v3291_v56 }
 0x618   : > { %3372 = vst.msk [vmem:[#allocation4 + $0x48] sm:$0xff] %vm3362_vm3, %v3355_v6  ;;  %v3486_v6 = vmul.f32 %v7317_v59, %v3390_v60 }
 0x619   : > { %v3324_v46 = vpop.xlane.xlu1 %3323 }
 0x61a   : > { %v3354_v39 = vadd.f32 %v3324_v46, %v3290_v29  ;;  %v3485_v46 = vmul.f32 %v7315_v30, %v3389_v21  ;;  %v3394_v30 = vld [vmem:[#allocation5 + $0x78] sm:$0xff] }
 0x61c   : > { %3371 = vst.msk [vmem:[#allocation4 + $0x40] sm:$0xff] %vm3362_vm3, %v3354_v39 }
 0x61d   : > { %v3342_v40 = vpop.xlane.xlu1 %3341 }
 0x61e   : > { %v3360_v47 = vadd.f32 %v3342_v40, %v3296_v32  ;;  %v3387_v32 = vld [vmem:[#allocation5 + $0x40] sm:$0xff]  ;;  %v3484_v40 = vmul.f32 %v7321_v16, %v3388_v45 }
 0x620   : > { %3377 = vst.msk [vmem:[#allocation4 + $0x70] sm:$0xff] %vm3362_vm3, %v3360_v47  ;;  %v3483_v47 = vmul.f32 %v7319_v62, %v3387_v32 }
 0x621   : > { %v3336_v36 = vpop.xlane.xlu1 %3335 }
 0x622   : > { %v3345_v54 = vpop.xlane.xlu0 %3344  ;;  %v3358_v34 = vadd.f32 %v3336_v36, %v3294_v7  ;;  %v3393_v36 = vld [vmem:[#allocation5 + $0x70] sm:$0xff] }
 0x623   : > { %v3361_v48 = vadd.f32 %v3345_v54, %v3297_v35 }
 0x624   : > { %3375 = vst.msk [vmem:[#allocation4 + $0x60] sm:$0xff] %vm3362_vm3, %v3358_v34  ;;  %v3392_v34 = vld [vmem:[#allocation5 + $0x68] sm:$0xff] }
 0x625   : > { %3378 = vst.msk [vmem:[#allocation4 + $0x78] sm:$0xff] %vm3362_vm3, %v3361_v48  ;;  %v3473_v35 = vpop.permute.xlu1 %3472 }
 0x626   : > { %v3339_v37 = vpop.xlane.xlu0 %3338  ;;  %v3490_v20 = vmul.f32 %v3473_v35, %v3394_v30 }
 0x627   : > { %v3359_v44 = vadd.f32 %v3339_v37, %v3295_v57  ;;  %v3391_v57 = vld [vmem:[#allocation5 + $0x60] sm:$0xff]  ;;  %v3488_v37 = vmul.f32 %v7326_v0, %v3392_v34 }
 0x629   : > { %3376 = vst.msk [vmem:[#allocation4 + $0x68] sm:$0xff] %vm3362_vm3, %v3359_v44 }
 0x62a   : > { %v5599_v2 = vpop.f32.mrf.mxu1 }
 0x62b   : > { %v4142_v52 = vadd.f32 %v5599_v2, %v3478_v15  ;;  %v3487_v15 = vmul.f32 %v7323_v33, %v3391_v57 }
 0x62c   : > { %v3644_v18 = vpop.f32.mrf.mxu1 }
 0x62d   : > { %4158 = vst.msk [vmem:[#allocation5 + $0x18] sm:$0xff] %vm1684_vm2, %v4142_v52  ;;  %v4141_v8 = vadd.f32 %v3644_v18, %v3477_v55 }
 0x62e   : > { %v3468_v54 = vpop.permute.xlu0 %3467 }
 0x62f   : > { %4157 = vst.msk [vmem:[#allocation5 + $0x10] sm:$0xff] %vm1684_vm2, %v4141_v8  ;;  %v3489_v3 = vmul.f32 %v3468_v54, %v3393_v36 }
 0x630   : > { %v5594_v23 = vpop.f32.mrf.mxu0 }
 0x631   : > { %v4140_v61 = vadd.f32 %v5594_v23, %v3476_v13 }
 0x632   : > { %v3563_v1 = vpop.f32.mrf.mxu0 }
 0x633   : > { %4156 = vst.msk [vmem:[#allocation5 + $0x8] sm:$0xff] %vm1684_vm2, %v4140_v61  ;;  %v4139_v28 = vadd.f32 %v3563_v1, %v3475_v9 }
 0x635   : > { %4155 = vst.msk [vmem:[#allocation5] sm:$0xff] %vm1684_vm2, %v4139_v28 }
 0x638   : > { %v5609_v51 = vpop.f32.mrf.mxu1 }
 0x639   : > { %v4146_v53 = vadd.f32 %v5609_v51, %v3482_v58 }
 0x63a   : > { %v3806_v38 = vpop.f32.mrf.mxu1 }
 0x63b   : > { %4162 = vst.msk [vmem:[#allocation5 + $0x38] sm:$0xff] %vm1684_vm2, %v4146_v53  ;;  %v4145_v42 = vadd.f32 %v3806_v38, %v3481_v27 }
 0x63d   : > { %4161 = vst.msk [vmem:[#allocation5 + $0x30] sm:$0xff] %vm1684_vm2, %v4145_v42 }
 0x640   : > { %v5604_v4 = vpop.f32.mrf.mxu0 }
 0x641   : > { %v4144_v56 = vadd.f32 %v5604_v4, %v3480_v31 }
 0x642   : > { %v3725_v25 = vpop.f32.mrf.mxu0 }
 0x643   : > { %4160 = vst.msk [vmem:[#allocation5 + $0x28] sm:$0xff] %vm1684_vm2, %v4144_v56  ;;  %v4143_v41 = vadd.f32 %v3725_v25, %v3479_v5 }
 0x645   : > { %4159 = vst.msk [vmem:[#allocation5 + $0x20] sm:$0xff] %vm1684_vm2, %v4143_v41 }
 0x648   : > { %v5619_v29 = vpop.f32.mrf.mxu1 }
 0x649   : > { %v4150_v11 = vadd.f32 %v5619_v29, %v3486_v6 }
 0x64a   : > { %v3968_v39 = vpop.f32.mrf.mxu1 }
 0x64b   : > { %4166 = vst.msk [vmem:[#allocation5 + $0x58] sm:$0xff] %vm1684_vm2, %v4150_v11  ;;  %v4149_v49 = vadd.f32 %v3968_v39, %v3485_v46 }
 0x64d   : > { %4165 = vst.msk [vmem:[#allocation5 + $0x50] sm:$0xff] %vm1684_vm2, %v4149_v49 }
 0x650   : > { %v5614_v43 = vpop.f32.mrf.mxu0 }
 0x651   : > { %v4148_v14 = vadd.f32 %v5614_v43, %v3484_v40 }
 0x652   : > { %v3887_v7 = vpop.f32.mrf.mxu0 }
 0x653   : > { %4164 = vst.msk [vmem:[#allocation5 + $0x48] sm:$0xff] %vm1684_vm2, %v4148_v14  ;;  %v4147_v59 = vadd.f32 %v3887_v7, %v3483_v47 }
 0x655   : > { %4163 = vst.msk [vmem:[#allocation5 + $0x40] sm:$0xff] %vm1684_vm2, %v4147_v59 }
 0x658   : > { %v5629_v48 = vpop.f32.mrf.mxu1 }
 0x659   : > { %v4154_v16 = vadd.f32 %v5629_v48, %v3490_v20 }
 0x65a   : > { %v4130_v62 = vpop.f32.mrf.mxu1 }
 0x65b   : > { %4170 = vst.msk [vmem:[#allocation5 + $0x78] sm:$0xff] %vm1684_vm2, %v4154_v16  ;;  %v4153_v44 = vadd.f32 %v4130_v62, %v3489_v3  ;;  %v5624_v26 = vpop.f32.mrf.mxu0 }
 0x65c   : > { %v4152_v2 = vadd.f32 %v5624_v26, %v3488_v37  ;;  %4190 = sbr.rel (%p5374_p7) target bundleno = 2152 (0x868), region = 92 }
 0x65d   : > { %4169 = vst.msk [vmem:[#allocation5 + $0x70] sm:$0xff] %vm1684_vm2, %v4153_v44  ;;  %v4049_v55 = vpop.f32.mrf.mxu0 }
 0x65e   : > { %4168 = vst.msk [vmem:[#allocation5 + $0x68] sm:$0xff] %vm1684_vm2, %v4152_v2  ;;  %v4151_v52 = vadd.f32 %v4049_v55, %v3487_v15 }
 0x660   : > { %4167 = vst.msk [vmem:[#allocation5 + $0x60] sm:$0xff] %vm1684_vm2, %v4151_v52 }
 0x661   : > { %v4195_v0 = vld [vmem:[#allocation4 + $0x20] sm:$0xff]  ;;  %v4197_v18 = vld [vmem:[#allocation4 + $0x30] sm:$0xff]  ;;  %v6292_v8 = vmov 0   ;;  %v4194_v61 = vld [vmem:[#allocation4 + $0x18] sm:$0xff]  ;;  %vm4931_vm4 = vcmask 130048   ;;  %vm4936_vm5 = vcmask 195584  }
 0x662   : > { %v4191_v50 = vld [vmem:[#allocation4] sm:$0xff]  ;;  %5906 = vset.pattern.permute.xlu1 %v6292_v8  ;;  %5905 = vset.pattern.permute.xlu0 %v6292_v8  ;;  %5907 = vrcp.f32 %v4195_v0  ;;  %v4193_v33 = vld [vmem:[#allocation4 + $0x10] sm:$0xff]  ;;  %v4192_v1 = vld [vmem:[#allocation4 + $0x8] sm:$0xff]  ;;  %vm4952_vm6 = vcmask 261120  }
 0x663   : > { %5909 = vrcp.f32 %v4191_v50  ;;  %v4201_v12 = vld [vmem:[#allocation4 + $0x50] sm:$0xff]  ;;  %v4199_v13 = vld [vmem:[#allocation4 + $0x40] sm:$0xff]  ;;  %v4198_v58 = vld [vmem:[#allocation4 + $0x38] sm:$0xff] }
 0x664   : > { %5911 = vrcp.f32 %v4197_v18  ;;  %v4205_v23 = vld [vmem:[#allocation4 + $0x70] sm:$0xff]  ;;  %v4203_v9 = vld [vmem:[#allocation4 + $0x60] sm:$0xff]  ;;  %v4196_v27 = vld [vmem:[#allocation4 + $0x28] sm:$0xff] }
 0x665   : > { %5913 = vrcp.f32 %v4193_v33  ;;  %v4202_v38 = vld [vmem:[#allocation4 + $0x58] sm:$0xff]  ;;  %v4200_v19 = vld [vmem:[#allocation4 + $0x48] sm:$0xff]  ;;  %v4227_v11 = vld [vmem:[#allocation5 + $0x20] sm:$0xff] }
 0x666   : > { %5915 = vrcp.f32 %v4201_v12  ;;  %v4206_v31 = vld [vmem:[#allocation4 + $0x78] sm:$0xff]  ;;  %v4204_v5 = vld [vmem:[#allocation4 + $0x68] sm:$0xff]  ;;  %v4223_v39 = vld [vmem:[#allocation5] sm:$0xff] }
 0x667   : > { %5917 = vrcp.f32 %v4199_v13  ;;  %v4229_v43 = vld [vmem:[#allocation5 + $0x30] sm:$0xff]  ;;  %v4231_v52 = vld [vmem:[#allocation5 + $0x40] sm:$0xff] }
 0x668   : > { %5919 = vrcp.f32 %v4205_v23  ;;  %v4225_v47 = vld [vmem:[#allocation5 + $0x10] sm:$0xff]  ;;  %v4235_v50 = vld [vmem:[#allocation5 + $0x60] sm:$0xff] }
 0x669   : > { %5921 = vrcp.f32 %v4203_v9  ;;  %v4233_v62 = vld [vmem:[#allocation5 + $0x50] sm:$0xff] }
 0x66a   : > { %5923 = vrcp.f32 %v4194_v61  ;;  %v4237_v44 = vld [vmem:[#allocation5 + $0x70] sm:$0xff] }
 0x66b   : > { %5925 = vrcp.f32 %v4192_v1 }
 0x66c   : > { %5927 = vrcp.f32 %v4198_v58 }
 0x66d   : > { %5929 = vrcp.f32 %v4196_v27 }
 0x66e   : > { %5931 = vrcp.f32 %v4202_v38 }
 0x66f   : > { %v5908_v28 = vpop.eup %5907  ;;  %5933 = vrcp.f32 %v4200_v19 }
 0x670   : > { %v5910_v63 = vpop.eup %5909  ;;  %4261 = vperm.xlu1 %5906, %v5908_v28   ;;  %5935 = vrcp.f32 %v4206_v31 }
 0x671   : > { %v5912_v24 = vpop.eup %5911  ;;  %4241 = vperm.xlu0 %5905, %v5910_v63   ;;  %5937 = vrcp.f32 %v4204_v5 }
 0x672   : > { %v5914_v51 = vpop.eup %5913 }
 0x673   : > { %v5916_v53 = vpop.eup %5915 }
 0x674   : > { %4271 = vperm.xlu1 %5906, %v5912_v24   ;;  %v5918_v42 = vpop.eup %5917 }
 0x675   : > { %4251 = vperm.xlu0 %5905, %v5914_v51   ;;  %v5920_v10 = vpop.eup %5919 }
 0x676   : > { %v5922_v4 = vpop.eup %5921 }
 0x677   : > { %v5924_v56 = vpop.eup %5923 }
 0x678   : > { %4291 = vperm.xlu1 %5906, %v5916_v53   ;;  %v5926_v25 = vpop.eup %5925  ;;  %v4226_v53 = vld [vmem:[#allocation5 + $0x18] sm:$0xff] }
 0x679   : > { %4281 = vperm.xlu0 %5905, %v5918_v42   ;;  %v5928_v41 = vpop.eup %5927  ;;  %v4224_v42 = vld [vmem:[#allocation5 + $0x8] sm:$0xff] }
 0x67a   : > { %v5930_v60 = vpop.eup %5929 }
 0x67b   : > { %v5932_v21 = vpop.eup %5931 }
 0x67c   : > { %4311 = vperm.xlu1 %5906, %v5920_v10   ;;  %v5934_v6 = vpop.eup %5933 }
 0x67d   : > { %4301 = vperm.xlu0 %5905, %v5922_v4   ;;  %v5936_v29 = vpop.eup %5935 }
 0x67e   : > { %v5938_v46 = vpop.eup %5937 }
 0x680   : > { %4256 = vperm.xlu1 %5906, %v5924_v56  }
 0x681   : > { %4246 = vperm.xlu0 %5905, %v5926_v25  }
 0x684   : > { %4276 = vperm.xlu1 %5906, %v5928_v41  }
 0x685   : > { %4266 = vperm.xlu0 %5905, %v5930_v60  }
 0x688   : > { %4296 = vperm.xlu1 %5906, %v5932_v21  }
 0x689   : > { %4286 = vperm.xlu0 %5905, %v5934_v6  }
 0x68c   : > { %4316 = vperm.xlu1 %5906, %v5936_v29  }
 0x68d   : > { %4306 = vperm.xlu0 %5905, %v5938_v46  }
 0x6eb   : > { %v4262_v49 = vpop.permute.xlu1 %4261 }
 0x6ec   : > { %v4242_v45 = vpop.permute.xlu0 %4241  ;;  %v4323_v32 = vmul.f32 %v4262_v49, %v4227_v11  ;;  %v4230_v11 = vld [vmem:[#allocation5 + $0x38] sm:$0xff] }
 0x6ed   : > { %v4319_v40 = vmul.f32 %v4242_v45, %v4223_v39  ;;  %v4228_v39 = vld [vmem:[#allocation5 + $0x28] sm:$0xff] }
 0x6ef   : > { %v4272_v14 = vpop.permute.xlu1 %4271  ;;  %v4335_v30 = vcombine.low %v4319_v40, %v4323_v32  ;;  %v4336_v35 = vcombine.high %v4319_v40, %v4323_v32 }
 0x6f0   : > { %v4325_v7 = vmul.f32 %v4272_v14, %v4229_v43  ;;  %v4252_v59 = vpop.permute.xlu0 %4251 }
 0x6f1   : > { %v4321_v36 = vmul.f32 %v4252_v59, %v4225_v47  ;;  %v4343_v57 = vrot.slane %v4335_v30, %v6901_v17  ;;  %v4350_v3 = vrot.slane %v4336_v35, %v6901_v17 }
 0x6f3   : > { %v4351_v54 = vcombine.low %v4321_v36, %v4325_v7  ;;  %v4352_v34 = vcombine.high %v4321_v36, %v4325_v7  ;;  %v4292_v20 = vpop.permute.xlu1 %4291 }
 0x6f4   : > { %v4282_v48 = vpop.permute.xlu0 %4281  ;;  %v4329_v18 = vmul.f32 %v4292_v20, %v4233_v62 }
 0x6f5   : > { %v4359_v16 = vrot.slane %v4351_v54, %v6901_v17  ;;  %v4366_v37 = vrot.slane %v4352_v34, %v6901_v17  ;;  %v4327_v61 = vmul.f32 %v4282_v48, %v4231_v52 }
 0x6f7   : > { %v4367_v26 = vcombine.low %v4343_v57, %v4359_v16  ;;  %v4368_v15 = vcombine.high %v4343_v57, %v4359_v16  ;;  %v4383_v2 = vcombine.low %v4350_v3, %v4366_v37  ;;  %v4384_v55 = vcombine.high %v4350_v3, %v4366_v37  ;;  %v4312_v0 = vpop.permute.xlu1 %4311 }
 0x6f8   : > { %v4333_v8 = vmul.f32 %v4312_v0, %v4237_v44  ;;  %v4302_v33 = vpop.permute.xlu0 %4301 }
 0x6f9   : > { %v4375_v12 = vrot.slane %v4367_v26, %v6903_v22  ;;  %v4382_v13 = vrot.slane %v4368_v15, %v6903_v22  ;;  %v4391_v23 = vrot.slane %v4383_v2, %v6903_v22  ;;  %v4398_v9 = vrot.slane %v4384_v55, %v6903_v22 }
 0x6fa   : > { %v4487_v1 = vcombine.low %v4329_v18, %v4333_v8  ;;  %v4488_v28 = vcombine.high %v4329_v18, %v4333_v8  ;;  %v4331_v63 = vmul.f32 %v4302_v33, %v4235_v50 }
 0x6fb   : > { %v4607_v24 = vcombine.low %v4375_v12, %v4382_v13  ;;  %v5375_v58 = vcombine.high %v4375_v12, %v4382_v13  ;;  %v4623_v51 = vcombine.low %v4391_v23, %v4398_v9  ;;  %v5376_v27 = vcombine.high %v4391_v23, %v4398_v9  ;;  %v4257_v38 = vpop.permute.xlu1 %4256  ;;  %v4234_v12 = vld [vmem:[#allocation5 + $0x58] sm:$0xff]  ;;  %v4232_v13 = vld [vmem:[#allocation5 + $0x48] sm:$0xff] }
 0x6fc   : > { %v4495_v19 = vrot.slane %v4487_v1, %v6901_v17  ;;  %v4502_v10 = vrot.slane %v4488_v28, %v6901_v17  ;;  %v4471_v31 = vcombine.low %v4327_v61, %v4331_v63  ;;  %v4472_v4 = vcombine.high %v4327_v61, %v4331_v63  ;;  %v4247_v5 = vpop.permute.xlu0 %4246  ;;  %v4238_v23 = vld [vmem:[#allocation5 + $0x78] sm:$0xff] }
 0x6fd   : > { %v7401_v56 = vrot.slane %v4607_v24, %v6901_v17  ;;  %v7404_v25 = vrot.slane %v5375_v58, %v6901_v17  ;;  %v7407_v41 = vrot.slane %v4623_v51, %v6901_v17  ;;  %v7410_v60 = vrot.slane %v5376_v27, %v6901_v17 }
 0x6fe   : > { %v4479_v21 = vrot.slane %v4471_v31, %v6901_v17  ;;  %v4486_v6 = vrot.slane %v4472_v4, %v6901_v17  ;;  %v4322_v29 = vmul.f32 %v4257_v38, %v4226_v53  ;;  %v4320_v46 = vmul.f32 %v4247_v5, %v4224_v42  ;;  %v4236_v53 = vld [vmem:[#allocation5 + $0x68] sm:$0xff] }
 0x6ff   : > { %v4277_v49 = vpop.permute.xlu1 %4276  ;;  %v4639_v45 = vcombine.low %v7401_v56, %v7404_v25  ;;  %v4655_v32 = vcombine.low %v7407_v41, %v7410_v60  ;;  %v4640_v40 = vcombine.high %v7401_v56, %v7404_v25  ;;  %v4656_v43 = vcombine.high %v7407_v41, %v7410_v60  ;;  %v4944_v25 = vld [vmem:[#allocation17 + $0x18] sm:$0xff] }
 0x700   : > { %v4503_v47 = vcombine.low %v4479_v21, %v4495_v19  ;;  %v4504_v14 = vcombine.high %v4479_v21, %v4495_v19  ;;  %v4519_v7 = vcombine.low %v4486_v6, %v4502_v10  ;;  %v4520_v59 = vcombine.high %v4486_v6, %v4502_v10  ;;  %v4267_v30 = vpop.permute.xlu0 %4266  ;;  %5630 = vmatprep.subr.mxu0 %v4944_v25 }
 0x701   : > { %v4326_v35 = vmul.f32 %v4277_v49, %v4230_v11  ;;  %v4324_v36 = vmul.f32 %v4267_v30, %v4228_v39  ;;  %v7423_v54 = vrot.slane %v4639_v45, %v6903_v22  ;;  %v7426_v34 = vrot.slane %v4655_v32, %v6903_v22  ;;  %5631 = vmatpush3.msra.mxu0 %v4944_v25 }
 0x702   : > { %v4511_v20 = vrot.slane %v4503_v47, %v6903_v22  ;;  %v4518_v48 = vrot.slane %v4504_v14, %v6903_v22  ;;  %v4527_v57 = vrot.slane %v4519_v7, %v6903_v22  ;;  %v4534_v3 = vrot.slane %v4520_v59, %v6903_v22  ;;  %5646 = vmatprep.subr.mxu1 %v4944_v25 }
 0x703   : > { %v4419_v16 = vcombine.low %v4322_v29, %v4326_v35  ;;  %v4420_v37 = vcombine.high %v4322_v29, %v4326_v35  ;;  %v4403_v62 = vcombine.low %v4320_v46, %v4324_v36  ;;  %v4404_v44 = vcombine.high %v4320_v46, %v4324_v36  ;;  %v4297_v26 = vpop.permute.xlu1 %4296  ;;  %5650 = vmatpush3.msra.mxu1 %v4944_v25 }
 0x704   : > { %v4743_v15 = vcombine.low %v4511_v20, %v4518_v48  ;;  %v5379_v2 = vcombine.high %v4511_v20, %v4518_v48  ;;  %v4759_v55 = vcombine.low %v4527_v57, %v4534_v3  ;;  %v5380_v52 = vcombine.high %v4527_v57, %v4534_v3  ;;  %v4287_v0 = vpop.permute.xlu0 %4286 }
 0x705   : > { %v4427_v50 = vrot.slane %v4419_v16, %v6901_v17  ;;  %v4434_v18 = vrot.slane %v4420_v37, %v6901_v17  ;;  %v4411_v8 = vrot.slane %v4403_v62, %v6901_v17  ;;  %v4418_v33 = vrot.slane %v4404_v44, %v6901_v17 }
 0x706   : > { %v7437_v9 = vrot.slane %v4743_v15, %v6901_v17  ;;  %v7440_v61 = vrot.slane %v5379_v2, %v6901_v17  ;;  %v7443_v1 = vrot.slane %v4759_v55, %v6901_v17  ;;  %v7446_v28 = vrot.slane %v5380_v52, %v6901_v17 }
 0x707   : > { %v4435_v63 = vcombine.low %v4411_v8, %v4427_v50  ;;  %v4436_v24 = vcombine.high %v4411_v8, %v4427_v50  ;;  %v4451_v58 = vcombine.low %v4418_v33, %v4434_v18  ;;  %v4452_v51 = vcombine.high %v4418_v33, %v4434_v18  ;;  %v4317_v27 = vpop.permute.xlu1 %4316 }
 0x708   : > { %v4330_v38 = vmul.f32 %v4297_v26, %v4234_v12  ;;  %v4328_v42 = vmul.f32 %v4287_v0, %v4232_v13  ;;  %v4672_v19 = vcombine.high %v7423_v54, %v7426_v34  ;;  %v4334_v10 = vmul.f32 %v4317_v27, %v4238_v23  ;;  %v4307_v31 = vpop.permute.xlu0 %4306 }
 0x709   : > { %v4443_v4 = vrot.slane %v4435_v63, %v6903_v22  ;;  %v4450_v5 = vrot.slane %v4436_v24, %v6903_v22  ;;  %v4459_v21 = vrot.slane %v4451_v58, %v6903_v22  ;;  %v4466_v6 = vrot.slane %v4452_v51, %v6903_v22 }
 0x70a   : > { %4883 = vrot.lane.b32.xlu0 %v4672_v19, %s6293_s5  ;;  %v4555_v29 = vcombine.low %v4330_v38, %v4334_v10  ;;  %v4556_v46 = vcombine.high %v4330_v38, %v4334_v10  ;;  %v4332_v11 = vmul.f32 %v4307_v31, %v4236_v53  ;;  %v4775_v39 = vcombine.low %v7437_v9, %v7440_v61  ;;  %v4942_v38 = vld [vmem:[#allocation17 + $0x8] sm:$0xff] }
 0x70b   : > { %v4675_v49 = vcombine.low %v4443_v4, %v4450_v5  ;;  %v5377_v45 = vcombine.high %v4443_v4, %v4450_v5  ;;  %v4691_v32 = vcombine.low %v4459_v21, %v4466_v6  ;;  %v5378_v47 = vcombine.high %v4459_v21, %v4466_v6  ;;  %v4941_v5 = vld [vmem:[#allocation17] sm:$0xff] }
 0x70c   : > { %v4563_v14 = vrot.slane %v4555_v29, %v6901_v17  ;;  %v4570_v7 = vrot.slane %v4556_v46, %v6901_v17  ;;  %v4539_v59 = vcombine.low %v4328_v42, %v4332_v11  ;;  %v4540_v30 = vcombine.high %v4328_v42, %v4332_v11 }
 0x70d   : > { %v4682_v35 = vrot.slane %v4675_v49, %v6901_v17  ;;  %v4690_v36 = vrot.slane %v5377_v45, %v6901_v17  ;;  %v4698_v20 = vrot.slane %v4691_v32, %v6901_v17  ;;  %v4706_v48 = vrot.slane %v5378_v47, %v6901_v17 }
 0x70e   : > { %v4547_v57 = vrot.slane %v4539_v59, %v6901_v17  ;;  %v4554_v3 = vrot.slane %v4540_v30, %v6901_v17  ;;  %v4791_v16 = vcombine.low %v7443_v1, %v7446_v28  ;;  %v7468_v37 = vrot.slane %v4775_v39, %v6903_v22 }
 0x70f   : > { %v4707_v62 = vcombine.low %v4682_v35, %v4690_v36  ;;  %v4723_v44 = vcombine.low %v4698_v20, %v4706_v48  ;;  %v7474_v26 = vrot.slane %v4640_v40, %v6903_v22  ;;  %v7489_v56 = vrot.slane %v4656_v43, %v6903_v22  ;;  %v4943_v40 = vld [vmem:[#allocation17 + $0x10] sm:$0xff] }
 0x710   : > { %v4571_v15 = vcombine.low %v4547_v57, %v4563_v14  ;;  %v4572_v2 = vcombine.high %v4547_v57, %v4563_v14  ;;  %v4587_v55 = vcombine.low %v4554_v3, %v4570_v7  ;;  %v4588_v52 = vcombine.high %v4554_v3, %v4570_v7  ;;  %5632 = vmatprep.subr.mxu0 %v4943_v40 }
 0x711   : > { %v7477_v0 = vrot.slane %v4791_v16, %v6903_v22  ;;  %v7480_v50 = vrot.slane %v4707_v62, %v6903_v22  ;;  %v7483_v18 = vrot.slane %v4723_v44, %v6903_v22  ;;  %v4708_v41 = vcombine.high %v4682_v35, %v4690_v36  ;;  %5633 = vmatpush3.msra.mxu0 %v4943_v40 }
 0x712   : > { %v4579_v8 = vrot.slane %v4571_v15, %v6903_v22  ;;  %v4586_v33 = vrot.slane %v4572_v2, %v6903_v22  ;;  %v4595_v12 = vrot.slane %v4587_v55, %v6903_v22  ;;  %v4602_v13 = vrot.slane %v4588_v52, %v6903_v22  ;;  %5634 = vmatprep.subr.mxu0 %v4942_v38 }
 0x713   : > { %v4808_v23 = vcombine.high %v7468_v37, %v7477_v0  ;;  %v4740_v63 = vcombine.high %v7480_v50, %v7483_v18  ;;  %v4724_v60 = vcombine.high %v4698_v20, %v4706_v48  ;;  %v4722_v27 = vrot.slane %v4708_v41, %v6903_v22  ;;  %5635 = vmatpush3.msra.mxu0 %v4942_v38 }
 0x714   : > { %v4811_v43 = vcombine.low %v4579_v8, %v4586_v33  ;;  %v5381_v24 = vcombine.high %v4579_v8, %v4586_v33  ;;  %v4827_v58 = vcombine.low %v4595_v12, %v4602_v13  ;;  %v5382_v51 = vcombine.high %v4595_v12, %v4602_v13  ;;  %5636 = vmatprep.subr.mxu0 %v4941_v5 }
 0x715   : > { %4887 = vrot.lane.b32.xlu1 %v4808_v23, %s6293_s5  ;;  %4885 = vrot.lane.b32.xlu0 %v4740_v63, %s6293_s5  ;;  %v4738_v53 = vrot.slane %v4724_v60, %v6903_v22  ;;  %v4673_v4 = vcombine.low %v7474_v26, %v7489_v56  ;;  %v4776_v29 = vcombine.high %v7437_v9, %v7440_v61  ;;  %v5383_v63 = vld [vmem:[%s7717_s2] ss:$0 sm:$0xff] }
 0x716   : > { %v4818_v42 = vrot.slane %v4811_v43, %v6901_v17  ;;  %v4826_v19 = vrot.slane %v5381_v24, %v6901_v17  ;;  %v4834_v10 = vrot.slane %v4827_v58, %v6901_v17  ;;  %v4842_v31 = vrot.slane %v5382_v51, %v6901_v17  ;;  %5637 = vmatpush3.msra.mxu0 %v4941_v5 }
 0x717   : > { %v4792_v46 = vcombine.high %v7443_v1, %v7446_v28  ;;  %v4671_v17 = vcombine.low %v7423_v54, %v7426_v34  ;;  %v4807_v11 = vcombine.low %v7468_v37, %v7477_v0  ;;  %v4741_v39 = vcombine.low %v4722_v27, %v4738_v53  ;;  %5647 = vmatprep.subr.mxu1 %v4943_v40 }
 0x718   : > { %v4843_v21 = vcombine.low %v4818_v42, %v4826_v19  ;;  %v4859_v6 = vcombine.low %v4834_v10, %v4842_v31  ;;  %v4844_v9 = vcombine.high %v4818_v42, %v4826_v19  ;;  %v4860_v61 = vcombine.high %v4834_v10, %v4842_v31  ;;  %5651 = vmatpush3.msra.mxu1 %v4943_v40 }
 0x719   : > { %4899 = vrot.lane.b32.xlu0 %v4673_v4, %s6294_s1  ;;  %v4739_v1 = vcombine.low %v7480_v50, %v7483_v18  ;;  %v4790_v34 = vrot.slane %v4776_v29, %v6903_v22  ;;  %v4806_v28 = vrot.slane %v4792_v46, %v6903_v22  ;;  %v4674_v47 = vcombine.high %v7474_v26, %v7489_v56 }
 0x71a   : > { %v7519_v49 = vrot.slane %v4843_v21, %v6903_v22  ;;  %v7522_v45 = vrot.slane %v4859_v6, %v6903_v22  ;;  %5648 = vmatprep.subr.mxu1 %v4942_v38  ;;  %v4858_v7 = vrot.slane %v4844_v9, %v6903_v22  ;;  %v4874_v59 = vrot.slane %v4860_v61, %v6903_v22 }
 0x71b   : > { %v4809_v14 = vcombine.low %v4790_v34, %v4806_v28  ;;  %5652 = vmatpush3.msra.mxu1 %v4942_v38  ;;  %v4742_v30 = vcombine.high %v4722_v27, %v4738_v53  ;;  %v4810_v36 = vcombine.high %v4790_v34, %v4806_v28 }
 0x71c   : > { %v4876_v54 = vcombine.high %v7519_v49, %v7522_v45  ;;  %v4875_v32 = vcombine.low %v7519_v49, %v7522_v45  ;;  %5649 = vmatprep.subr.mxu1 %v4941_v5  ;;  %v4877_v35 = vcombine.low %v4858_v7, %v4874_v59  ;;  %v4878_v20 = vcombine.high %v4858_v7, %v4874_v59 }
 0x71d   : > { %4901 = vrot.lane.b32.xlu0 %v4741_v39, %s6294_s1  ;;  %5653 = vmatpush3.msra.mxu1 %v4941_v5 }
 0x71e   : > { %4889 = vrot.lane.b32.xlu1 %v4876_v54, %s6293_s5 }
 0x721   : > { %4915 = vrot.lane.b32.xlu0 %v4674_v47, %s6295_s25 }
 0x722   : > { %4903 = vrot.lane.b32.xlu1 %v4809_v14, %s6294_s1 }
 0x725   : > { %4917 = vrot.lane.b32.xlu0 %v4742_v30, %s6295_s25 }
 0x726   : > { %4905 = vrot.lane.b32.xlu1 %v4877_v35, %s6294_s1 }
 0x72a   : > { %4919 = vrot.lane.b32.xlu1 %v4810_v36, %s6295_s25 }
 0x72e   : > { %4921 = vrot.lane.b32.xlu1 %v4878_v20, %s6295_s25 }
 0x77c   : > { %v4884_v48 = vpop.permute.xlu0 %4883 }
 0x77d   : > { %v4927_v62 = vsel %vm1684_vm2, %v4671_v17, %v4884_v48 }
 0x787   : > { %v4886_v57 = vpop.permute.xlu0 %4885  ;;  %v4888_v22 = vpop.permute.xlu1 %4887 }
 0x788   : > { %v4928_v55 = vsel %vm1684_vm2, %v4739_v1, %v4886_v57  ;;  %v4929_v56 = vsel %vm1684_vm2, %v4807_v11, %v4888_v22 }
 0x78b   : > { %v4900_v3 = vpop.permute.xlu0 %4899 }
 0x78c   : > { %v4932_v44 = vsel %vm4931_vm4, %v4927_v62, %v4900_v3 }
 0x78f   : > { %v4902_v16 = vpop.permute.xlu0 %4901 }
 0x790   : > { %v4890_v37 = vpop.permute.xlu1 %4889  ;;  %v4933_v52 = vsel %vm4931_vm4, %v4928_v55, %v4902_v16 }
 0x791   : > { %v4930_v33 = vsel %vm1684_vm2, %v4875_v32, %v4890_v37 }
 0x793   : > { %v4916_v26 = vpop.permute.xlu0 %4915 }
 0x794   : > { %v4904_v15 = vpop.permute.xlu1 %4903  ;;  %v4937_v2 = vsel %vm4936_vm5, %v4932_v44, %v4916_v26 }
 0x795   : > { %5638 = vmatprep.mubr.msk.f32.mxu0 %vm4952_vm6, %v4937_v2  ;;  %v4934_v25 = vsel %vm4931_vm4, %v4929_v56, %v4904_v15 }
 0x797   : > { %v4918_v0 = vpop.permute.xlu0 %4917 }
 0x798   : > { %v4906_v50 = vpop.permute.xlu1 %4905  ;;  %v4938_v18 = vsel %vm4936_vm5, %v4933_v52, %v4918_v0 }
 0x799   : > { %5639 = vmatmul.mubr.msk.f32.vlgmr.msra.gmra.mxu0 %vm4952_vm6, %v4938_v18  ;;  %v4935_v12 = vsel %vm4931_vm4, %v4930_v33, %v4906_v50 }
 0x79c   : > { %v4920_v40 = vpop.permute.xlu1 %4919 }
 0x79d   : > { %v4939_v8 = vsel %vm4936_vm5, %v4934_v25, %v4920_v40 }
 0x79e   : > { %5641 = vmatprep.mubr.msk.f32.mxu1 %vm4952_vm6, %v4939_v8 }
 0x7a0   : > { %v4922_v13 = vpop.permute.xlu1 %4921 }
 0x7a1   : > { %v4940_v23 = vsel %vm4936_vm5, %v4935_v12, %v4922_v13 }
 0x7a2   : > { %5642 = vmatmul.mubr.msk.f32.vlgmr.msra.gmra.mxu1 %vm4952_vm6, %v4940_v23 }
 0x859   : > { %v5640_v41 = vpop.f32.mrf.mxu0 }
 0x85a   : > { %v5037_v60 = vadd.f32 %v5640_v41, %v5383_v63 }
 0x85b   : > { %v5031_v43 = vpop.f32.mrf.mxu0 }
 0x85c   : > { %5051 = vst.msk [vmem:[%s6657_s24 + $0x8] sm:$0xff] %vm4952_vm6, %v5037_v60  ;;  %v5032_v24 = vadd.f32 %v5383_v63, %v5031_v43 }
 0x85e   : > { %5050 = vst.msk [vmem:[%s6657_s24] sm:$0xff] %vm4952_vm6, %v5032_v24 }
 0x862   : > { %v5643_v58 = vpop.f32.mrf.mxu1 }
 0x863   : > { %v5047_v51 = vadd.f32 %v5643_v58, %v5383_v63 }
 0x864   : > { %v5041_v27 = vpop.f32.mrf.mxu1 }
 0x865   : > { %5053 = vst.msk [vmem:[%s6657_s24 + $0x18] sm:$0xff] %vm4952_vm6, %v5047_v51  ;;  %v5042_v53 = vadd.f32 %v5383_v63, %v5041_v27 }
 0x867   : > { %5052 = vst.msk [vmem:[%s6657_s24 + $0x10] sm:$0xff] %vm4952_vm6, %v5042_v53 }
 0x868 PF: > { %s7718_s8 = sld [smem:[#allocation28_spill]]  ;;  %s5069_s15 = sshll.u32 %s6657_s24, 4  ;;  %s7574_s15 = int_to_ptr.vmem [resolvable:$true] %s5069_s15 }
 0x869   : > { %s7719_s12 = sld [smem:[#allocation44_spill]]  ;;  %s5055_s22 = scalar_lea.sflag [#allocation8], %s6622_s23 }
 0x86a   : > { %s6129_s29 = scalar_lea.vmem %s7574_s15, 512  ;;  %s6296_s16 = smov [#allocation18]  }
 0x86b   : > { %p6130_p13 = scmp.ne.s32.totalorder %s7574_s15, %s6129_s29  ;;  %s6133_s6 = sshll.u32 %s6296_s16, 4  ;;  %s6134_s6 = int_to_ptr.vmem [resolvable:$false] %s6133_s6 }
 0x86c   : > { %s6135_s26 = scalar_lea.vmem %s6134_s6, 1024  ;;  %p6136_p3 = scmp.lt.s32.totalorder %s7574_s15, %s6134_s6 }
 0x86d   : > { %p6131_p0 = pnand %p6130_p13, %p6567_p1  ;;  %p6137_p11 = scmp.lt.s32.totalorder %s6135_s26, %s6129_s29 }
 0x86e   : > { %s5400_s30 = sshll.u32 %s7718_s8, 9 }
 0x86f   : > { %s7720_s20 = smov %s7719_s12  ;;  %s7571_s27 = scalar_lea.hbm %s7719_s12, %s5400_s30 }
 0x870   : > { %p6132_p2 = pneg %p6131_p0  ;;  %p6138_p5 = por %p6137_p11, %p6136_p3 }
 0x872   : > { %p6139_p9 = pnand %p6138_p5, %p6132_p2 }
 0x874   : > { %6142 = shalt.err (!%p6139_p9)
}
 0x875   : > { %s6143_s24 = scalar_lea.hbm %s7571_s27, 512  ;;  %s6147_s25 = scalar_lea.hbm %s7720_s20, 1024 }
 0x876   : > { %p6144_p4 = scmp.ne.s32.totalorder %s7571_s27, %s6143_s24  ;;  %p6148_p12 = scmp.lt.s32.totalorder %s7571_s27, %s7720_s20 }
 0x877   : > { %p6149_p8 = scmp.lt.s32.totalorder %s6147_s25, %s6143_s24 }
 0x878   : > { %p6145_p6 = pnand %p6144_p4, %p6567_p1 }
 0x879   : > { %p6150_p7 = por %p6149_p8, %p6148_p12 }
 0x87a   : > { %p6146_p10 = pneg %p6145_p6 }
 0x87c   : > { %p6151_p13 = pnand %p6150_p7, %p6146_p10 }
 0x87e   : > { %6154 = shalt.err (!%p6151_p13)
}
 0x87f   : > { %s6297_s2 = smov 128   ;;  %s6298_s8 = smov 8  }
 0x880   : > { %5674 = dma.vmem_to_hbm [thread:$0]  (%p6567_p1), %s7574_s15, 512, %s7571_s27, %s5055_s22, %s6297_s2, %s6297_s2, %s6298_s8  }
 0x881 PF: > { %s7721_s30 = sld [smem:[#allocation26_spill]]  ;;  %p5710_p0 = scmp.ge.s32.totalorder %s6265_s19, 2 }
 0x882   : > { %s7722_s9 = sld [smem:[#allocation32_spill]] }
 0x887   : > { %s5084_s21 = sand.u32 1, %s7721_s30  }
 0x888   : > { %p7723_p2 = scmp.ne.s32.totalorder %s7722_s9, 0  ;;  %s5085_s12 = scalar_lea.sflag [#allocation8], %s5084_s21 }
 0x88a   : > { %p5700_p3 = pnand %p5710_p0, %p7723_p2 }
 0x88c   : > { %p5701_p11 = pneg %p5700_p3 }
 0x88e   : > { %6220 = dma.done.wait (%p5701_p11), %s5085_s12, 512  }
 0x88f   : > { %6222 = vsyncadd (%p5701_p11), %s5085_s12, 4294966784  ;;  %s32_s19 = sadd.s32 1, %s6265_s19   ;;  %s7724_s30 = sld [smem:[#allocation25_spill]] }
 0x890   : > { %p29_p5 = scmp.ge.s32.totalorder %s32_s19, 6   ;;  %s7725_s17 = sld [smem:[#allocation36_spill]] }
 0x891   : > { %s7726_s23 = smov %s6561_s10  ;;  %s7727_s15 = sld [smem:[#allocation29_spill]] }
 0x892   : > { %s7728_s27 = sld [smem:[#allocation34_spill]]  ;;  %s7730_s10 = smov %s6233_s11 }
 0x893   : > { %s7729_s22 = sld [smem:[#allocation35_spill]]  ;;  %s7732_s12 = smov %s6241_s13 }
 0x894   : > { %s7733_s13 = smov %s6245_s14  ;;  %s7734_s14 = smov %s7726_s23 }
 0x895   : > { %s7735_s16 = smov %s6261_s18  ;;  %31 = sbr.rel (!%p29_p5) target bundleno = 22 (0x16), region = 158 }
 0x896   : > { %s7731_s11 = smov %s7725_s17 }
 0x898   : > { %s7736_s17 = smov %s7728_s27 }
 0x899   : > { %s7737_s18 = smov %s7729_s22 }
 0x89a   :  { %5090 = vsyncpa [#allocation7], 1 }
 0x89b   :  { %5092 = vsyncpa [#allocation7 + $0x1], 1 }
 0x89c   :  { %5093 = vsyncpa [#allocation10], 1 }
 0x89d   :  { %5095 = vsyncpa [#allocation10 + $0x1], 1 }
 0x89e   :  { %5096 = vsyncpa [#allocation13], 1 }
 0x89f   :  { %5098 = vsyncpa [#allocation13 + $0x1], 1 }
 0x8a0   :  { %5099 = vsyncpa [#allocation16], 1 }
 0x8a1   :  { %5100 = vsyncpa [#allocation8], 1 }
 0x8a2   :  { %5102 = vsyncpa [#allocation8 + $0x1], 1 }

</bundles_post_ra>
